<compile_context>
chip_gen: v7x
topology: tpu7x:2x2x1
jax: 0.10.0
libtpu: 0.0.40
codegen_flags: <defaults>
</compile_context>

<pallas_src>
import jax
import jax.numpy as jnp
from jax.experimental import pallas as pl
from jax.experimental.pallas import tpu as pltpu

POOL = 3
H1 = 512
H2 = 256
H3 = 1
OUT_LANES = 128       # lane-dense output width (wrapper keeps only column 0)
FINAL_LANES = 128     # final layer's packed/padded lane width
NEG_LARGE = -1e30     # bias value for padded final-layer lanes (ignored by max)


def _fused_maxout(x_bf16, w_ref, b_ref, out_dim):
    """Maxout with a single fused matmul.

    w_ref: (in, POOL*out) bf16, column p*out + o == PyTorch linear row o*POOL + p.
    b_ref: (1, POOL*out) f32, same ordering.
    Returns f32 (TB, out).
    """
    z = jnp.dot(x_bf16, w_ref[...], preferred_element_type=jnp.float32)
    z = z + b_ref[...]                       # single broadcast bias add
    h = z[:, :out_dim]
    for p in range(1, POOL):
        h = jnp.maximum(h, z[:, p * out_dim:(p + 1) * out_dim])
    return h


def _final_maxout(x_bf16, w_ref, b_ref):
    """Final layer (out_dim == 1): weight padded to 128 lanes, bias padded
    with NEG_LARGE, so the pool-max is a full-lane reduce on one vreg."""
    z = jnp.dot(x_bf16, w_ref[...], preferred_element_type=jnp.float32)
    z = z + b_ref[...]
    return jnp.max(z, axis=-1, keepdims=True)            # (TB, 1) f32


def discriminator_kernel(x_ref, w1_ref, b1_ref, w2_ref, b2_ref, w3_ref, b3_ref, o_ref):
    x = x_ref[...]                                        # (TB, K1p) bf16
    h1 = _fused_maxout(x, w1_ref, b1_ref, H1)             # (TB, 512) f32
    # Dropout(0.3) -> identity (inference).
    h2 = _fused_maxout(h1.astype(jnp.bfloat16), w2_ref, b2_ref, H2)   # (TB, 256)
    # Dropout(0.3) -> identity (inference).
    h3 = _final_maxout(h2.astype(jnp.bfloat16), w3_ref, b3_ref)       # (TB, 1)
    sig = jax.nn.sigmoid(h3)                              # f32
    # Lane-dense store: broadcast the scalar-per-row result across 128 lanes.
    o_ref[...] = jnp.broadcast_to(sig, o_ref.shape).astype(o_ref.dtype)


def init_linear_params(key, in_dim, out_times_pool):
    """PyTorch nn.Linear init: U(-1/sqrt(in), 1/sqrt(in)); weight (out*pool, in)."""
    kw, kb = jax.random.split(key)
    bound = 1.0 / (in_dim ** 0.5)
    w = jax.random.uniform(kw, (out_times_pool, in_dim), jnp.float32, -bound, bound)
    b = jax.random.uniform(kb, (out_times_pool,), jnp.float32, -bound, bound)
    return w, b


def pack_maxout_params(w, b, dtype=jnp.bfloat16):
    """Repack PyTorch-layout (out*pool, in) weights into fused (in, pool*out).

    PyTorch maxout: y[:, o] = max_p (x @ W.T + b)[:, o*POOL + p].
    Packed column p*out + o holds W[o*POOL + p, :], so the kernel's max over
    lane slices [p*out:(p+1)*out] reproduces .view(B, out, pool).max(-1).
    """
    out_pool, in_dim = w.shape
    out_dim = out_pool // POOL
    w_cat = (w.reshape(out_dim, POOL, in_dim)
              .transpose(1, 0, 2)
              .reshape(POOL * out_dim, in_dim)
              .T)                                         # (in, POOL*out)
    b_cat = b.reshape(out_dim, POOL).T.reshape(1, POOL * out_dim)
    return w_cat.astype(dtype), b_cat.astype(jnp.float32)


def discriminator_forward(x, raw_params, *, batch_tile=128):
    """x: (B, img_dim) f32. raw_params: [(W1,b1),(W2,b2),(W3,b3)] in PyTorch layout."""
    B, img_dim = x.shape
    (w1, b1), (w2, b2), (w3, b3) = [pack_maxout_params(w, b) for (w, b) in raw_params]

    # Pad layer-1 contraction dim (img_dim) to a multiple of 128 (lane-aligned K).
    k1 = w1.shape[0]
    k1p = ((k1 + 127) // 128) * 128
    if k1p != k1:
        w1 = jnp.pad(w1, ((0, k1p - k1), (0, 0)))
        x = jnp.pad(x, ((0, 0), (0, k1p - k1)))

    # Pad final layer to a full 128-lane width; padded lanes never win the max.
    n3 = w3.shape[1]                                      # POOL * 1 = 3
    if n3 != FINAL_LANES:
        w3 = jnp.pad(w3, ((0, 0), (0, FINAL_LANES - n3)))
        b3 = jnp.pad(b3, ((0, 0), (0, FINAL_LANES - n3)),
                     constant_values=NEG_LARGE)

    # Pad batch to a multiple of the batch tile.
    bp = ((B + batch_tile - 1) // batch_tile) * batch_tile
    if bp != B:
        x = jnp.pad(x, ((0, bp - B), (0, 0)))
    x = x.astype(jnp.bfloat16)

    grid = (bp // batch_tile,)  # keep >= 2 steps when possible (v7x dual TC)
    full2 = lambda i: (0, 0)    # constant index map: weights never re-fetched

    out = pl.pallas_call(
        discriminator_kernel,
        out_shape=jax.ShapeDtypeStruct((bp, OUT_LANES), jnp.float32),
        grid_spec=pltpu.PrefetchScalarGridSpec(
            num_scalar_prefetch=0,
            grid=grid,
            in_specs=[
                pl.BlockSpec((batch_tile, k1p), lambda i: (i, 0)),
                pl.BlockSpec(tuple(w1.shape), full2),
                pl.BlockSpec(tuple(b1.shape), full2),
                pl.BlockSpec(tuple(w2.shape), full2),
                pl.BlockSpec(tuple(b2.shape), full2),
                pl.BlockSpec(tuple(w3.shape), full2),
                pl.BlockSpec(tuple(b3.shape), full2),
            ],
            out_specs=pl.BlockSpec((batch_tile, OUT_LANES), lambda i: (i, 0)),
        ),
        compiler_params=pltpu.CompilerParams(
            dimension_semantics=("parallel",),
            # Explicit budget: bf16 weights ~1.3 MiB + double-buffered x/out
            # tiles + f32 temps stay well under 32 MiB on all generations.
            vmem_limit_bytes=32 * 1024 * 1024,
        ),
    )(x, w1, b1, w2, b2, w3, b3)

    return out[:B, :1]


def reference_forward(x, raw_params):
    """Plain-JAX f32 reference reproducing the PyTorch forward (eval mode)."""
    h = x
    for (w, b) in raw_params:  # w: (out*pool, in), b: (out*pool,)
        z = h @ w.T + b
        out_dim = w.shape[0] // POOL
        h = z.reshape(h.shape[0], out_dim, POOL).max(axis=-1)
    return jax.nn.sigmoid(h)


if __name__ == "__main__":
    img_dim = 64     # exercises the K-padding path (64 -> 128)
    batch = 256      # batch_tile=128 -> grid of 2 steps

    key = jax.random.PRNGKey(0)
    kx, k1, k2, k3 = jax.random.split(key, 4)

    x = jax.random.normal(kx, (batch, img_dim), jnp.float32)
    raw_params = [
        init_linear_params(k1, img_dim, H1 * POOL),
        init_linear_params(k2, H1, H2 * POOL),
        init_linear_params(k3, H2, H3 * POOL),
    ]

    out = discriminator_forward(x, raw_params)
    out = jax.block_until_ready(out)

    ref = reference_forward(x, raw_params)
    assert out.shape == (batch, 1), out.shape
    # bf16 MXU inputs -> loosened tolerance vs the f32 reference.
    assert jnp.allclose(out, ref, atol=2e-2, rtol=2e-2), (
        float(jnp.max(jnp.abs(out - ref))))

    print("KERNEL_OK")
</pallas_src>

<mosaic_0001>
module attributes {stable_mosaic.version = 11 : i64} {
  func.func @discriminator_kernel(%arg0: i32, %arg1: memref<128x128xbf16, #tpu.memory_space<vmem>>, %arg2: memref<128x1536xbf16, #tpu.memory_space<vmem>>, %arg3: memref<1x1536xf32, #tpu.memory_space<vmem>>, %arg4: memref<512x768xbf16, #tpu.memory_space<vmem>>, %arg5: memref<1x768xf32, #tpu.memory_space<vmem>>, %arg6: memref<256x128xbf16, #tpu.memory_space<vmem>>, %arg7: memref<1x128xf32, #tpu.memory_space<vmem>>, %arg8: memref<128x128xf32, #tpu.memory_space<vmem>>) attributes {dimension_semantics = [#tpu.dimension_semantics<parallel>], iteration_bounds = array<i64: 2>, scalar_prefetch = 0 : i64, scratch_operands = 0 : i64, tpu.core_type = #tpu.core_type<tc>, window_params = [{transform_indices = @transform_0, window_bounds = array<i64: 128, 128>}, {pipeline_mode = #tpu.pipeline_mode<synchronous>, transform_indices = @transform_1, window_bounds = array<i64: 128, 1536>}, {pipeline_mode = #tpu.pipeline_mode<synchronous>, transform_indices = @transform_2, window_bounds = array<i64: 1, 1536>}, {pipeline_mode = #tpu.pipeline_mode<synchronous>, transform_indices = @transform_3, window_bounds = array<i64: 512, 768>}, {pipeline_mode = #tpu.pipeline_mode<synchronous>, transform_indices = @transform_4, window_bounds = array<i64: 1, 768>}, {pipeline_mode = #tpu.pipeline_mode<synchronous>, transform_indices = @transform_5, window_bounds = array<i64: 256, 128>}, {pipeline_mode = #tpu.pipeline_mode<synchronous>, transform_indices = @transform_6, window_bounds = array<i64: 1, 128>}, {transform_indices = @transform_7, window_bounds = array<i64: 128, 128>}]} {
    %c0 = arith.constant 0 : index
    %c0_0 = arith.constant 0 : index
    %0 = vector.load %arg1[%c0, %c0_0] : memref<128x128xbf16, #tpu.memory_space<vmem>>, vector<128x128xbf16>
    %c0_1 = arith.constant 0 : index
    %c0_2 = arith.constant 0 : index
    %1 = vector.load %arg2[%c0_1, %c0_2] : memref<128x1536xbf16, #tpu.memory_space<vmem>>, vector<128x1536xbf16>
    %cst = arith.constant dense<0.000000e+00> : vector<128x1536xf32>
    %2 = tpu.matmul %0, %1, %cst {dimension_numbers = #tpu.dot_dimension_numbers<[1], [0], [0], [1], [0, 0, 1, 1], [], []>} : vector<128x128xbf16>, vector<128x1536xbf16>, vector<128x1536xf32> -> vector<128x1536xf32>
    %c0_3 = arith.constant 0 : index
    %c0_4 = arith.constant 0 : index
    %3 = vector.load %arg3[%c0_3, %c0_4] : memref<1x1536xf32, #tpu.memory_space<vmem>>, vector<1x1536xf32>
    %4 = vector.broadcast %3 : vector<1x1536xf32> to vector<128x1536xf32>
    %5 = arith.addf %2, %4 : vector<128x1536xf32>
    %6 = vector.extract_strided_slice %5 {offsets = [0, 0], sizes = [128, 512], strides = [1, 1]} : vector<128x1536xf32> to vector<128x512xf32>
    %7 = vector.extract_strided_slice %5 {offsets = [0, 512], sizes = [128, 512], strides = [1, 1]} : vector<128x1536xf32> to vector<128x512xf32>
    %8 = arith.maximumf %6, %7 : vector<128x512xf32>
    %9 = vector.extract_strided_slice %5 {offsets = [0, 1024], sizes = [128, 512], strides = [1, 1]} : vector<128x1536xf32> to vector<128x512xf32>
    %10 = arith.maximumf %8, %9 : vector<128x512xf32>
    %11 = arith.truncf %10 : vector<128x512xf32> to vector<128x512xbf16>
    %c0_5 = arith.constant 0 : index
    %c0_6 = arith.constant 0 : index
    %12 = vector.load %arg4[%c0_5, %c0_6] : memref<512x768xbf16, #tpu.memory_space<vmem>>, vector<512x768xbf16>
    %cst_7 = arith.constant dense<0.000000e+00> : vector<128x768xf32>
    %13 = tpu.matmul %11, %12, %cst_7 {dimension_numbers = #tpu.dot_dimension_numbers<[1], [0], [0], [1], [0, 0, 1, 1], [], []>} : vector<128x512xbf16>, vector<512x768xbf16>, vector<128x768xf32> -> vector<128x768xf32>
    %c0_8 = arith.constant 0 : index
    %c0_9 = arith.constant 0 : index
    %14 = vector.load %arg5[%c0_8, %c0_9] : memref<1x768xf32, #tpu.memory_space<vmem>>, vector<1x768xf32>
    %15 = vector.broadcast %14 : vector<1x768xf32> to vector<128x768xf32>
    %16 = arith.addf %13, %15 : vector<128x768xf32>
    %17 = vector.extract_strided_slice %16 {offsets = [0, 0], sizes = [128, 256], strides = [1, 1]} : vector<128x768xf32> to vector<128x256xf32>
    %18 = vector.extract_strided_slice %16 {offsets = [0, 256], sizes = [128, 256], strides = [1, 1]} : vector<128x768xf32> to vector<128x256xf32>
    %19 = arith.maximumf %17, %18 : vector<128x256xf32>
    %20 = vector.extract_strided_slice %16 {offsets = [0, 512], sizes = [128, 256], strides = [1, 1]} : vector<128x768xf32> to vector<128x256xf32>
    %21 = arith.maximumf %19, %20 : vector<128x256xf32>
    %22 = arith.truncf %21 : vector<128x256xf32> to vector<128x256xbf16>
    %c0_10 = arith.constant 0 : index
    %c0_11 = arith.constant 0 : index
    %23 = vector.load %arg6[%c0_10, %c0_11] : memref<256x128xbf16, #tpu.memory_space<vmem>>, vector<256x128xbf16>
    %cst_12 = arith.constant dense<0.000000e+00> : vector<128x128xf32>
    %24 = tpu.matmul %22, %23, %cst_12 {dimension_numbers = #tpu.dot_dimension_numbers<[1], [0], [0], [1], [0, 0, 1, 1], [], []>} : vector<128x256xbf16>, vector<256x128xbf16>, vector<128x128xf32> -> vector<128x128xf32>
    %c0_13 = arith.constant 0 : index
    %c0_14 = arith.constant 0 : index
    %25 = vector.load %arg7[%c0_13, %c0_14] : memref<1x128xf32, #tpu.memory_space<vmem>>, vector<1x128xf32>
    %26 = vector.broadcast %25 : vector<1x128xf32> to vector<128x128xf32>
    %27 = arith.addf %24, %26 : vector<128x128xf32>
    %cst_15 = arith.constant dense<0xFF800000> : vector<128xf32>
    %28 = vector.multi_reduction <maximumf>, %27, %cst_15 [1] : vector<128x128xf32> to vector<128xf32>
    %29 = vector.shape_cast %28 : vector<128xf32> to vector<128x1xf32>
    %30 = arith.negf %29 : vector<128x1xf32>
    %31 = math.exp %30 : vector<128x1xf32>
    %cst_16 = arith.constant 1.000000e+00 : f32
    %32 = vector.broadcast %cst_16 : f32 to vector<128x1xf32>
    %33 = arith.addf %32, %31 : vector<128x1xf32>
    %34 = arith.divf %32, %33 : vector<128x1xf32>
    %35 = vector.shape_cast %34 : vector<128x1xf32> to vector<128x1xf32>
    %36 = vector.broadcast %35 : vector<128x1xf32> to vector<128x128xf32>
    %c0_17 = arith.constant 0 : index
    %c0_18 = arith.constant 0 : index
    %37 = vector.load %arg8[%c0_17, %c0_18] : memref<128x128xf32, #tpu.memory_space<vmem>>, vector<128x128xf32>
    tpu.vector_store %arg8[%c0_17, %c0_18], %36 {strides = array<i32>} : memref<128x128xf32, #tpu.memory_space<vmem>>, vector<128x128xf32>,
    return
  }
  func.func @transform_0(%arg0: i32) -> (i32, i32) {
    %c0_i32 = arith.constant 0 : i32
    %c0_i32_0 = arith.constant 0 : i32
    return %arg0, %c0_i32 : i32, i32
  }
  func.func @transform_1(%arg0: i32) -> (i32, i32) {
    %c0_i32 = arith.constant 0 : i32
    %c0_i32_0 = arith.constant 0 : i32
    %c0_i32_1 = arith.constant 0 : i32
    return %c0_i32, %c0_i32_0 : i32, i32
  }
  func.func @transform_2(%arg0: i32) -> (i32, i32) {
    %c0_i32 = arith.constant 0 : i32
    %c0_i32_0 = arith.constant 0 : i32
    %c0_i32_1 = arith.constant 0 : i32
    return %c0_i32, %c0_i32_0 : i32, i32
  }
  func.func @transform_3(%arg0: i32) -> (i32, i32) {
    %c0_i32 = arith.constant 0 : i32
    %c0_i32_0 = arith.constant 0 : i32
    %c0_i32_1 = arith.constant 0 : i32
    return %c0_i32, %c0_i32_0 : i32, i32
  }
  func.func @transform_4(%arg0: i32) -> (i32, i32) {
    %c0_i32 = arith.constant 0 : i32
    %c0_i32_0 = arith.constant 0 : i32
    %c0_i32_1 = arith.constant 0 : i32
    return %c0_i32, %c0_i32_0 : i32, i32
  }
  func.func @transform_5(%arg0: i32) -> (i32, i32) {
    %c0_i32 = arith.constant 0 : i32
    %c0_i32_0 = arith.constant 0 : i32
    %c0_i32_1 = arith.constant 0 : i32
    return %c0_i32, %c0_i32_0 : i32, i32
  }
  func.func @transform_6(%arg0: i32) -> (i32, i32) {
    %c0_i32 = arith.constant 0 : i32
    %c0_i32_0 = arith.constant 0 : i32
    %c0_i32_1 = arith.constant 0 : i32
    return %c0_i32, %c0_i32_0 : i32, i32
  }
  func.func @transform_7(%arg0: i32) -> (i32, i32) {
    %c0_i32 = arith.constant 0 : i32
    %c0_i32_0 = arith.constant 0 : i32
    return %arg0, %c0_i32 : i32, i32
  }
}

</mosaic_0001>

<bundles_post_ra>
// kernel: tpu_custom_call.1
= control target key start
LH: loop header
LB: loop body
LE: loop exit
PB: predicated region body
PF: predicated region fallthrough
CT: control target
= control target key end

     0   :  { %s7903_s0 = inlined_call_operand.hbm [shape: bf16[256,128], index: 0, kind: input, shape index: {}]   ;;  %s7904_s1 = inlined_call_operand.hbm [shape: bf16[128,1536], index: 1, kind: input, shape index: {}]   ;;  %s7905_s2 = inlined_call_operand.hbm [shape: f32[1,1536], index: 2, kind: input, shape index: {}]   ;;  %s7906_s3 = inlined_call_operand.hbm [shape: bf16[512,768], index: 3, kind: input, shape index: {}]   ;;  %s7907_s4 = inlined_call_operand.vmem [shape: f32[1,768], index: 4, kind: input, shape index: {}]   ;;  %s7908_s5 = inlined_call_operand.hbm [shape: bf16[256,128], index: 5, kind: input, shape index: {}]   ;;  %s7909_s6 = inlined_call_operand.vmem [shape: f32[1,128], index: 6, kind: input, shape index: {}]   ;;  %s7910_s7 = inlined_call_operand.hbm [shape: f32[256,128], index: 7, kind: output, shape index: {}]  }
   0x1   :  { %8019 = sst [smem:[#allocation83_spill]] %s7904_s1 }
   0x2   :  { %12 = vsyncpa [#allocation3], 0 }
   0x3   :  { %14 = vsyncpa [#allocation3 + $0x1], 0 }
   0x4   :  { %15 = vsyncpa [#allocation6], 0 }
   0x5   :  { %16 = vsyncpa [#allocation9], 0 }
   0x6   :  { %17 = vsyncpa [#allocation4], 0 }
   0x7   :  { %19 = vsyncpa [#allocation4 + $0x1], 0  ;;  %s5863_s24 = smov 0   ;;  %s5865_s25 = smov 0  }
   0x8   :  { %s5867_s26 = smov 0   ;;  %s5869_s27 = smov 0  }
   0x9 LB: > { %s5884_s28 = sadd.s32 4294967295, %s5806_s27   ;;  %s4341_s29 = sadd.s32 4294967294, %s5806_s27   ;;  %s5806_s27 = sphi %s5869_s27, %s8374_s27   ;;  %s5802_s26 = sphi %s5867_s26, %s8373_s26   ;;  %s5798_s25 = sphi %s5865_s25, %s8372_s25   ;;  %s5794_s24 = sphi %s5863_s24, %s8371_s24  }
   0xa   : > { %p45_p0 = scmp.ne.s32.totalorder %s5798_s25, %s5794_s24  ;;  %p7911_p1 = scmp.eq.s32.totalorder %s5884_s28, 0 }
   0xb   : > { %p201_p3 = scmp.eq.s32.totalorder %s4341_s29, 1  ;;  %p4342_p5 = scmp.ge.s32.totalorder %s5806_s27, 1 }
   0xc   : > { %p5893_p4 = por %p7911_p1, %p45_p0  ;;  %p208_p7 = scmp.lt.s32.totalorder %s5806_s27, 3 }
   0xd   : > { %p5898_p6 = por %p201_p3, %p45_p0  ;;  %s5808_s10 = smov [#allocation5]  }
   0xe   : > { %s8020_s30 = scalar_select %p5893_p4, 1, 0 }
   0xf   : > { %s8021_s8 = scalar_select %p5898_p6, 1, 0 }
  0x10   : > { %p5903_p8 = pnand %p4342_p5, %p208_p7  ;;  %s220_s11 = sshll.u32 %s5808_s10, 4  ;;  %s5907_s11 = int_to_ptr.vmem [resolvable:$true] %s220_s11 }
  0x11   : > { %s5809_s13 = smov [#allocation8]   ;;  %s8024_s1 = sld [smem:[#allocation83_spill]] }
  0x12   : > { %s8022_s9 = scalar_select %p5903_p8, 1, 0 }
  0x13   : > { %p4986_p9 = pneg %p5903_p8  ;;  %s244_s14 = sshll.u32 %s5809_s13, 4  ;;  %s5918_s14 = int_to_ptr.vmem [resolvable:$true] %s244_s14 }
  0x15   : > { %p5914_p11 = pnand %p4986_p9, %p7911_p1 }
  0x17   : > { %s5590_s17 = scalar_lea.hbm %s8024_s1, 12288  ;;  %p5928_p13 = pneg %p5914_p11 }
  0x18   : > { %p5591_p12 = scmp.ne.s32.totalorder %s8024_s1, %s5590_s17  ;;  %p5597_p5 = scmp.lt.u32.totalorder %s5590_s17, %s8024_s1 }
  0x1a   : > { %p5593_p0 = pnand %p5928_p13, %p5591_p12 }
  0x1c   : > { %p5594_p3 = pneg %p5593_p0 }
  0x1e   : > { %p5599_p7 = pnand %p5597_p5, %p5594_p3 }
  0x20   : > { %5602 = shalt.err (!%p5599_p7)
}
  0x21   : > { %s5603_s23 = scalar_lea.vmem %s5907_s11, 12288  ;;  %p5611_p2 = scmp.lt.s32.totalorder %s5907_s11, %s5907_s11 }
  0x22   : > { %p5604_p9 = scmp.ne.s32.totalorder %s5907_s11, %s5603_s23  ;;  %p5612_p6 = scmp.lt.s32.totalorder %s5603_s23, %s5603_s23 }
  0x24   : > { %p5606_p10 = pnand %p5604_p9, %p5928_p13  ;;  %p5613_p12 = por %p5612_p6, %p5611_p2 }
  0x26   : > { %p5607_p1 = pneg %p5606_p10 }
  0x28   : > { %p5614_p0 = pnand %p5613_p12, %p5607_p1 }
  0x2a   : > { %5617 = shalt.err (!%p5614_p0)
}
  0x2b   : > { %s5810_s29 = smov 768   ;;  %s5811_s10 = smov 48  }
  0x2c   : > { %4989 = dma.hbm_to_vmem [thread:$0]  (!%p5914_p11), %s8024_s1, 12288, %s5907_s11, [#allocation6], %s5810_s29, %s5810_s29, %s5811_s10  }
  0x2d   : > { %s5618_s18 = scalar_lea.hbm %s7906_s3, 24576 }
  0x2e   : > { %p5619_p2 = scmp.ne.s32.totalorder %s7906_s3, %s5618_s18  ;;  %p5625_p10 = scmp.lt.u32.totalorder %s5618_s18, %s7906_s3 }
  0x30   : > { %p5621_p1 = pnand %p5619_p2, %p5928_p13 }
  0x32   : > { %p5622_p6 = pneg %p5621_p1 }
  0x34   : > { %p5627_p3 = pnand %p5625_p10, %p5622_p6 }
  0x36   : > { %5630 = shalt.err (!%p5627_p3)
}
  0x37   : > { %s5631_s11 = scalar_lea.vmem %s5918_s14, 24576  ;;  %p5639_p12 = scmp.lt.s32.totalorder %s5918_s14, %s5918_s14 }
  0x38   : > { %p5632_p5 = scmp.ne.s32.totalorder %s5918_s14, %s5631_s11  ;;  %p5640_p0 = scmp.lt.s32.totalorder %s5631_s11, %s5631_s11 }
  0x3a   : > { %p5634_p7 = pnand %p5632_p5, %p5928_p13  ;;  %p5641_p2 = por %p5640_p0, %p5639_p12 }
  0x3c   : > { %p5635_p9 = pneg %p5634_p7 }
  0x3e   : > { %p5642_p1 = pnand %p5641_p2, %p5635_p9 }
  0x40   : > { %5645 = shalt.err (!%p5642_p1)
}
  0x41   : > { %s5812_s29 = smov 384   ;;  %s5813_s10 = smov 24  }
  0x42   : > { %4995 = dma.hbm_to_vmem [thread:$0]  (!%p5914_p11), %s7906_s3, 24576, %s5918_s14, [#allocation9], %s5812_s29, %s5812_s29, %s5813_s10  }
  0x43   : > { %s5814_s16 = smov [#allocation7]   ;;  %s5815_s18 = smov [#allocation10]  }
  0x44   : > { %s234_s17 = sshll.u32 %s5814_s16, 4  ;;  %s260_s19 = sshll.u32 %s5815_s18, 4  ;;  %s235_s17 = int_to_ptr.vmem [resolvable:$true] %s234_s17  ;;  %s5972_s19 = int_to_ptr.vmem [resolvable:$true] %s260_s19 }
  0x45   : > { %s5646_s23 = scalar_lea.hbm %s7905_s2, 192 }
  0x46   : > { %p5647_p6 = scmp.ne.s32.totalorder %s7905_s2, %s5646_s23  ;;  %p5653_p5 = scmp.lt.u32.totalorder %s5646_s23, %s7905_s2 }
  0x48   : > { %p5649_p10 = pnand %p5647_p6, %p5928_p13 }
  0x4a   : > { %p5650_p3 = pneg %p5649_p10 }
  0x4c   : > { %p5655_p7 = pnand %p5653_p5, %p5650_p3 }
  0x4e   : > { %5658 = shalt.err (!%p5655_p7)
}
  0x4f   : > { %s5659_s29 = scalar_lea.vmem %s235_s17, 192  ;;  %p5667_p2 = scmp.lt.s32.totalorder %s235_s17, %s235_s17 }
  0x50   : > { %p5660_p9 = scmp.ne.s32.totalorder %s235_s17, %s5659_s29  ;;  %p5668_p1 = scmp.lt.s32.totalorder %s5659_s29, %s5659_s29 }
  0x52   : > { %p5662_p12 = pnand %p5660_p9, %p5928_p13  ;;  %p5669_p4 = por %p5668_p1, %p5667_p2 }
  0x54   : > { %p5663_p0 = pneg %p5662_p12 }
  0x56   : > { %p5670_p8 = pnand %p5669_p4, %p5663_p0 }
  0x58   : > { %5673 = shalt.err (!%p5670_p8)
}
  0x59   : > { %4992 = dma.hbm_to_vmem [thread:$0]  (!%p5914_p11), %s7905_s2, 192, %s235_s17, [#allocation6]  }
  0x5a   : > { %s5674_s18 = scalar_lea.hbm %s7908_s5, 2048 }
  0x5b   : > { %p5675_p6 = scmp.ne.s32.totalorder %s7908_s5, %s5674_s18  ;;  %p5681_p4 = scmp.lt.u32.totalorder %s5674_s18, %s7908_s5 }
  0x5d   : > { %p5677_p10 = pnand %p5675_p6, %p5928_p13 }
  0x5f   : > { %p5678_p3 = pneg %p5677_p10 }
  0x61   : > { %p5683_p8 = pnand %p5681_p4, %p5678_p3 }
  0x63   : > { %5686 = shalt.err (!%p5683_p8)
}
  0x64   : > { %s5687_s17 = scalar_lea.vmem %s5972_s19, 2048  ;;  %p5695_p12 = scmp.lt.s32.totalorder %s5972_s19, %s5972_s19 }
  0x65   : > { %p5688_p5 = scmp.ne.s32.totalorder %s5972_s19, %s5687_s17  ;;  %p5696_p0 = scmp.lt.s32.totalorder %s5687_s17, %s5687_s17 }
  0x67   : > { %p5690_p7 = pnand %p5688_p5, %p5928_p13  ;;  %p5697_p2 = por %p5696_p0, %p5695_p12 }
  0x69   : > { %p5691_p9 = pneg %p5690_p7 }
  0x6b   : > { %p5698_p1 = pnand %p5697_p2, %p5691_p9 }
  0x6d   : > { %5701 = shalt.err (!%p5698_p1)
}
  0x6e   : > { %s5816_s13 = smov 64   ;;  %s5817_s20 = smov 4  }
  0x6f   : > { %4998 = dma.hbm_to_vmem [thread:$0]  (!%p5914_p11), %s7908_s5, 2048, %s5972_s19, [#allocation9], %s5816_s13, %s5816_s13, %s5817_s20  }
  0x70   : > { %s6019_s1 = sadd.s32 1, %s5806_s27   ;;  %s32_s15 = sadd.s32 1, %s5802_s26 }
  0x71   : > { %s29_s10 = ssub.s32 %s5806_s27, %s6019_s1  ;;  %p39_p6 = scmp.ne.s32.totalorder %s5802_s26, %s5798_s25 }
  0x72   : > { %p30_p13 = scmp.eq.s32.totalorder %s29_s10, 0  ;;  %p40_p10 = scmp.eq.s32.totalorder %s5806_s27, 0 }
  0x73   : > { %p8026_p4 = scmp.eq.s32.totalorder %s5884_s28, 1  ;;  %p5011_p5 = scmp.lt.s32.totalorder %s5806_s27, 2 }
  0x74   : > { %s6028_s16 = scalar_select %p30_p13, %s5802_s26, %s32_s15  }
  0x75   : > { %p41_p3 = por %p40_p10, %p39_p6  ;;  %p6032_p8 = por %p8026_p4, %p39_p6 }
  0x76   : > { %s277_s18 = sand.u32 1, %s5802_s26   ;;  %s4692_s19 = sshll.u32 %s5806_s27, 10 }
  0x77   : > { %s4348_s21 = sshll.u32 %s277_s18, 6  ;;  %s6042_s11 = scalar_lea.hbm %s7903_s0, %s4692_s19 }
  0x78   : > { %s281_s17 = scalar_lea.vmem [#allocation2], %s4348_s21  ;;  %p6046_p11 = pnand %p5011_p5, %p41_p3 }
  0x79   : > { %s288_s14 = sshll.u32 %s281_s17, 4  ;;  %s6050_s10 = scalar_lea.sflag [#allocation3], %s277_s18  ;;  %s6044_s14 = int_to_ptr.vmem [resolvable:$true] %s288_s14 }
  0x7a   : > { %s5702_s15 = scalar_lea.hbm %s6042_s11, 1024  ;;  %p5704_p9 = pneg %p6046_p11 }
  0x7b   : > { %p5703_p7 = scmp.ne.s32.totalorder %s6042_s11, %s5702_s15  ;;  %s5707_s22 = scalar_lea.hbm %s7903_s0, 2048 }
  0x7c   : > { %p5708_p2 = scmp.lt.u32.totalorder %s6042_s11, %s7903_s0  ;;  %p5709_p1 = scmp.lt.u32.totalorder %s5707_s22, %s5702_s15 }
  0x7d   : > { %p5705_p12 = pnand %p5704_p9, %p5703_p7  ;;  %p5711_p6 = scmp.lt.u32.totalorder %s5702_s15, %s6042_s11 }
  0x7e   : > { %p5710_p13 = por %p5709_p1, %p5708_p2 }
  0x7f   : > { %p5706_p0 = pneg %p5705_p12 }
  0x80   : > { %p5712_p10 = por %p5711_p6, %p5710_p13 }
  0x82   : > { %p5713_p3 = pnand %p5712_p10, %p5706_p0 }
  0x84   : > { %5716 = shalt.err (!%p5713_p3)
}
  0x85   : > { %s5717_s18 = scalar_lea.vmem %s6044_s14, 1024  ;;  %s5818_s21 = smov [#allocation2]  }
  0x86   : > { %p5718_p4 = scmp.ne.s32.totalorder %s6044_s14, %s5717_s18  ;;  %s5722_s19 = sshll.u32 %s5818_s21, 4  ;;  %s5723_s19 = int_to_ptr.vmem [resolvable:$false] %s5722_s19 }
  0x87   : > { %s5724_s23 = scalar_lea.vmem %s5723_s19, 2048  ;;  %p5725_p12 = scmp.lt.s32.totalorder %s6044_s14, %s5723_s19 }
  0x88   : > { %p5720_p5 = pnand %p5718_p4, %p5704_p9  ;;  %p5726_p2 = scmp.lt.s32.totalorder %s5724_s23, %s5717_s18 }
  0x8a   : > { %p5721_p7 = pneg %p5720_p5  ;;  %p5727_p1 = por %p5726_p2, %p5725_p12 }
  0x8c   : > { %p5728_p13 = pnand %p5727_p1, %p5721_p7 }
  0x8e   : > { %5731 = shalt.err (!%p5728_p13)
}
  0x8f   : > { %5002 = dma.hbm_to_vmem [thread:$0]  (!%p6046_p11), %s6042_s11, 1024, %s6044_s14, %s6050_s10, %s5816_s13, %s5816_s13, %s5817_s20  }
  0x90   : > { %p8029_p9 = scmp.ne.s32.totalorder %s8022_s9, 0 }
  0x92   : > { %300 = sbr.rel (%p8029_p9) target bundleno = 1394 (0x572), region = 48 }
  0x99   : > { %s6084_s15 = sand.u32 1, %s5798_s25   ;;  %p8030_p0 = scmp.ne.s32.totalorder %s8020_s30, 0 }
  0x9a   : > { %s4352_s22 = sshll.u32 %s6084_s15, 6  ;;  %s303_s17 = scalar_lea.sflag [#allocation3], %s6084_s15 }
  0x9b   : > { %s6088_s18 = scalar_lea.vmem [#allocation2], %s4352_s22 }
  0x9c   : > { %5777 = dma.done.wait (%p8030_p0), %s303_s17, 1024  }
  0x9d   : > { %5779 = vsyncadd (%p8030_p0), %s303_s17, 4294966272  ;;  %p8031_p11 = scmp.eq.s32.totalorder %s5884_s28, 0 }
  0x9f   : > { %5781 = dma.done.wait (%p8031_p11), [#allocation6], 12480   ;;  %p8032_p6 = pmov %p8031_p11 }
  0xa1   : > { %5783 = vsyncadd (%p8032_p6), [#allocation6], 4294954816  ;;  %p8033_p10 = pmov %p8032_p6 }
  0xa2   : > { %p8034_p3 = pmov %p8032_p6 }
  0xa3   : > { %5785 = dma.done.wait (%p8033_p10), [#allocation9], 26624  }
  0xa4   : > { %5787 = vsyncadd (%p8034_p3), [#allocation9], 4294940672  ;;  %v5819_v0 = vmov 0   ;;  %v5062_v1 = vld [vmem:[#allocation5 + $0x4] ss:$48 sps:$4 sm:$0xff]   ;;  %v6115_v29 = vld [vmem:[%s6088_s18 + $0x8] sm:$0xff]  }
  0xa5   : > { %1092 = vmatprep.mubr.bf16.mxu0 %v5819_v0  ;;  %1132 = vmatprep.mubr.bf16.mxu1 %v5819_v0  ;;  %v5064_v2 = vld [vmem:[#allocation5] ss:$48 sps:$4 sm:$0xff]   ;;  %v5065_v3 = vld [vmem:[#allocation5 + $0x64] ss:$48 sps:$4 sm:$0xff]   ;;  %v5090_v17 = vld [vmem:[#allocation5 + $0xc] ss:$48 sps:$4 sm:$0xff]  }
  0xa6   : > { %1060 = vmatprep.subr.bf16.mxu0 %v5062_v1  ;;  %4758 = vmatprep.subr.bf16.mxu1 %v5062_v1  ;;  %v5067_v4 = vld [vmem:[#allocation5 + $0x60] ss:$48 sps:$4 sm:$0xff]   ;;  %v5068_v5 = vld [vmem:[#allocation5 + $0xc4] ss:$48 sps:$4 sm:$0xff]   ;;  %v5088_v21 = vld [vmem:[#allocation5 + $0x8] ss:$48 sps:$4 sm:$0xff]  }
  0xa7   : > { %1061 = vmatpush1.bf16.msra.mxu0 %v5064_v2  ;;  %4766 = vmatpush1.bf16.msra.mxu1 %v5064_v2  ;;  %v5070_v6 = vld [vmem:[#allocation5 + $0xc0] ss:$48 sps:$4 sm:$0xff]   ;;  %v5071_v7 = vld [vmem:[#allocation5 + $0x124] ss:$48 sps:$4 sm:$0xff]   ;;  %v5096_v23 = vld [vmem:[#allocation5 + $0x6c] ss:$48 sps:$4 sm:$0xff]  }
  0xa8   : > { %1062 = vmatprep.subr.bf16.mxu0 %v5065_v3  ;;  %4759 = vmatprep.subr.bf16.mxu1 %v5065_v3  ;;  %v5073_v8 = vld [vmem:[#allocation5 + $0x120] ss:$48 sps:$4 sm:$0xff]   ;;  %v5074_v9 = vld [vmem:[#allocation5 + $0x184] ss:$48 sps:$4 sm:$0xff]   ;;  %v5094_v25 = vld [vmem:[#allocation5 + $0x68] ss:$48 sps:$4 sm:$0xff]  }
  0xa9   : > { %v5076_v10 = vld [vmem:[#allocation5 + $0x180] ss:$48 sps:$4 sm:$0xff]   ;;  %v5077_v11 = vld [vmem:[#allocation5 + $0x1e4] ss:$48 sps:$4 sm:$0xff]   ;;  %v5104_v27 = vld [vmem:[#allocation5 + $0xcc] ss:$48 sps:$4 sm:$0xff]  }
  0xaa   : > { %v5079_v12 = vld [vmem:[#allocation5 + $0x1e0] ss:$48 sps:$4 sm:$0xff]   ;;  %v5080_v13 = vld [vmem:[#allocation5 + $0x244] ss:$48 sps:$4 sm:$0xff]   ;;  %v6118_v30 = vld [vmem:[%s6088_s18 + $0x28] sm:$0xff]   ;;  %s4357_s11 = sshll.u32 %s6084_s15, 7 }
  0xab   : > { %1063 = vmatpush1.bf16.msra.mxu0 %v5067_v4  ;;  %4767 = vmatpush1.bf16.msra.mxu1 %v5067_v4  ;;  %v5082_v14 = vld [vmem:[#allocation5 + $0x240] ss:$48 sps:$4 sm:$0xff]   ;;  %v5083_v15 = vld [vmem:[#allocation5 + $0x2a4] ss:$48 sps:$4 sm:$0xff]   ;;  %v5102_v31 = vld [vmem:[#allocation5 + $0xc8] ss:$48 sps:$4 sm:$0xff]  }
  0xac   : > { %1064 = vmatprep.subr.bf16.mxu0 %v5068_v5  ;;  %4760 = vmatprep.subr.bf16.mxu1 %v5068_v5  ;;  %v5085_v16 = vld [vmem:[#allocation5 + $0x2a0] ss:$48 sps:$4 sm:$0xff]   ;;  %v5093_v18 = vld [vmem:[#allocation5 + $0x14] ss:$48 sps:$4 sm:$0xff]   ;;  %v5110_v33 = vld [vmem:[#allocation5 + $0x12c] ss:$48 sps:$4 sm:$0xff]  }
  0xad   : > { %v6105_v19 = vld [vmem:[%s6088_s18] sm:$0xff]   ;;  %v5108_v35 = vld [vmem:[#allocation5 + $0x128] ss:$48 sps:$4 sm:$0xff]   ;;  %v5118_v37 = vld [vmem:[#allocation5 + $0x18c] ss:$48 sps:$4 sm:$0xff]   ;;  %s7834_s14 = scalar_lea.vmem [#allocation11], %s4357_s11 }
  0xae   : > { %v6108_v20 = vld [vmem:[%s6088_s18 + $0x20] sm:$0xff]   ;;  %v6125_v39 = vld [vmem:[%s6088_s18 + $0x10] sm:$0xff]   ;;  %v5116_v41 = vld [vmem:[#allocation5 + $0x188] ss:$48 sps:$4 sm:$0xff]   ;;  %s4693_s29 = sshll.u32 %s5884_s28, 11  ;;  %s4230_s10 = sshll.u32 %s7834_s14, 4  ;;  %s7857_s10 = int_to_ptr.vmem [resolvable:$true] %s4230_s10 }
  0xaf   : > { %1065 = vmatpush1.bf16.msra.mxu0 %v5070_v6  ;;  %4768 = vmatpush1.bf16.msra.mxu1 %v5070_v6  ;;  %v5091_v22 = vld [vmem:[#allocation5 + $0x10] ss:$48 sps:$4 sm:$0xff]   ;;  %v5099_v24 = vld [vmem:[#allocation5 + $0x74] ss:$48 sps:$4 sm:$0xff]   ;;  %v5124_v43 = vld [vmem:[#allocation5 + $0x1ec] ss:$48 sps:$4 sm:$0xff]   ;;  %s7855_s23 = scalar_lea.hbm %s7910_s7, %s4693_s29 }
  0xb0   : > { %1066 = vmatprep.subr.bf16.mxu0 %v5071_v7  ;;  %4761 = vmatprep.subr.bf16.mxu1 %v5071_v7  ;;  %v5097_v26 = vld [vmem:[#allocation5 + $0x70] ss:$48 sps:$4 sm:$0xff]   ;;  %v5107_v28 = vld [vmem:[#allocation5 + $0xd4] ss:$48 sps:$4 sm:$0xff]   ;;  %v5122_v45 = vld [vmem:[#allocation5 + $0x1e8] ss:$48 sps:$4 sm:$0xff]  }
  0xb1   : > { %v5105_v32 = vld [vmem:[#allocation5 + $0xd0] ss:$48 sps:$4 sm:$0xff]   ;;  %v5113_v34 = vld [vmem:[#allocation5 + $0x134] ss:$48 sps:$4 sm:$0xff]   ;;  %v5132_v47 = vld [vmem:[#allocation5 + $0x24c] ss:$48 sps:$4 sm:$0xff]  }
  0xb2   : > { %v5111_v36 = vld [vmem:[#allocation5 + $0x130] ss:$48 sps:$4 sm:$0xff]   ;;  %v5121_v38 = vld [vmem:[#allocation5 + $0x194] ss:$48 sps:$4 sm:$0xff]   ;;  %v6135_v49 = vld [vmem:[%s6088_s18 + $0x18] sm:$0xff]   ;;  %s4217_s22 = scalar_lea.sflag [#allocation4], %s6084_s15 }
  0xb3   : > { %1067 = vmatpush1.bf16.msra.mxu0 %v5073_v8  ;;  %4769 = vmatpush1.bf16.msra.mxu1 %v5073_v8  ;;  %v6128_v40 = vld [vmem:[%s6088_s18 + $0x30] sm:$0xff]   ;;  %v6138_v50 = vld [vmem:[%s6088_s18 + $0x38] sm:$0xff]   ;;  %s5732_s17 = scalar_lea.vmem %s7857_s10, 2048  ;;  %s5820_s28 = smov [#allocation11]  }
  0xb4   : > { %1068 = vmatprep.subr.bf16.mxu0 %v5074_v9  ;;  %4762 = vmatprep.subr.bf16.mxu1 %v5074_v9  ;;  %v5119_v42 = vld [vmem:[#allocation5 + $0x190] ss:$48 sps:$4 sm:$0xff]   ;;  %v5127_v44 = vld [vmem:[#allocation5 + $0x1f4] ss:$48 sps:$4 sm:$0xff]   ;;  %v5130_v51 = vld [vmem:[#allocation5 + $0x248] ss:$48 sps:$4 sm:$0xff]   ;;  %p5733_p4 = scmp.ne.s32.totalorder %s7857_s10, %s5732_s17 }
  0xb5   : > { %v5125_v46 = vld [vmem:[#allocation5 + $0x1f0] ss:$48 sps:$4 sm:$0xff]   ;;  %v5135_v48 = vld [vmem:[#allocation5 + $0x254] ss:$48 sps:$4 sm:$0xff]   ;;  %v5138_v53 = vld [vmem:[#allocation5 + $0x2ac] ss:$48 sps:$4 sm:$0xff]  }
  0xb6   : > { %v5133_v52 = vld [vmem:[#allocation5 + $0x250] ss:$48 sps:$4 sm:$0xff]   ;;  %v5141_v54 = vld [vmem:[#allocation5 + $0x2b4] ss:$48 sps:$4 sm:$0xff]   ;;  %v5136_v55 = vld [vmem:[#allocation5 + $0x2a8] ss:$48 sps:$4 sm:$0xff]   ;;  %p5734_p5 = pnand %p5733_p4, %p6032_p8 }
  0xb7   : > { %1069 = vmatpush1.bf16.msra.mxu0 %v5076_v10  ;;  %4770 = vmatpush1.bf16.msra.mxu1 %v5076_v10  ;;  %v5139_v56 = vld [vmem:[#allocation5 + $0x2b0] ss:$48 sps:$4 sm:$0xff]   ;;  %v5144_v57 = vld [vmem:[#allocation5 + $0x1c] ss:$48 sps:$4 sm:$0xff]   ;;  %v5147_v58 = vld [vmem:[#allocation5 + $0x24] ss:$48 sps:$4 sm:$0xff]  }
  0xb8   : > { %1070 = vmatprep.subr.bf16.mxu0 %v5077_v11  ;;  %4763 = vmatprep.subr.bf16.mxu1 %v5077_v11  ;;  %v5142_v59 = vld [vmem:[#allocation5 + $0x18] ss:$48 sps:$4 sm:$0xff]   ;;  %v5145_v60 = vld [vmem:[#allocation5 + $0x20] ss:$48 sps:$4 sm:$0xff]   ;;  %v5150_v61 = vld [vmem:[#allocation5 + $0x7c] ss:$48 sps:$4 sm:$0xff]   ;;  %p5735_p7 = pneg %p5734_p5 }
  0xb9   : > { %v5153_v62 = vld [vmem:[#allocation5 + $0x84] ss:$48 sps:$4 sm:$0xff]   ;;  %v5148_v63 = vld [vmem:[#allocation5 + $0x78] ss:$48 sps:$4 sm:$0xff]   ;;  %v5151_v1 = vld [vmem:[#allocation5 + $0x80] ss:$48 sps:$4 sm:$0xff]  }
  0xba   : > { %v5156_v2 = vld [vmem:[#allocation5 + $0xdc] ss:$48 sps:$4 sm:$0xff]   ;;  %v5159_v3 = vld [vmem:[#allocation5 + $0xe4] ss:$48 sps:$4 sm:$0xff]   ;;  %v5154_v4 = vld [vmem:[#allocation5 + $0xd8] ss:$48 sps:$4 sm:$0xff]  }
  0xbb   : > { %1071 = vmatpush1.bf16.msra.mxu0 %v5079_v12  ;;  %4771 = vmatpush1.bf16.msra.mxu1 %v5079_v12  ;;  %v5157_v5 = vld [vmem:[#allocation5 + $0xe0] ss:$48 sps:$4 sm:$0xff]   ;;  %v5162_v6 = vld [vmem:[#allocation5 + $0x13c] ss:$48 sps:$4 sm:$0xff]   ;;  %v5165_v7 = vld [vmem:[#allocation5 + $0x144] ss:$48 sps:$4 sm:$0xff]  }
  0xbc   : > { %1072 = vmatprep.subr.bf16.mxu0 %v5080_v13  ;;  %4764 = vmatprep.subr.bf16.mxu1 %v5080_v13  ;;  %v5160_v8 = vld [vmem:[#allocation5 + $0x138] ss:$48 sps:$4 sm:$0xff]   ;;  %v5163_v9 = vld [vmem:[#allocation5 + $0x140] ss:$48 sps:$4 sm:$0xff]   ;;  %v5168_v10 = vld [vmem:[#allocation5 + $0x19c] ss:$48 sps:$4 sm:$0xff]  }
  0xbd   : > { %v5171_v11 = vld [vmem:[#allocation5 + $0x1a4] ss:$48 sps:$4 sm:$0xff]   ;;  %v5166_v12 = vld [vmem:[#allocation5 + $0x198] ss:$48 sps:$4 sm:$0xff]   ;;  %v5169_v13 = vld [vmem:[#allocation5 + $0x1a0] ss:$48 sps:$4 sm:$0xff]  }
  0xbf   : > { %1073 = vmatpush1.bf16.msra.mxu0 %v5082_v14  ;;  %4772 = vmatpush1.bf16.msra.mxu1 %v5082_v14  ;;  %v5174_v14 = vld [vmem:[#allocation5 + $0x1fc] ss:$48 sps:$4 sm:$0xff]  }
  0xc0   : > { %1074 = vmatprep.subr.bf16.mxu0 %v5083_v15  ;;  %4765 = vmatprep.subr.bf16.mxu1 %v5083_v15  ;;  %v5177_v15 = vld [vmem:[#allocation5 + $0x204] ss:$48 sps:$4 sm:$0xff]  }
  0xc3   : > { %1075 = vmatpush1.bf16.msra.mxu0 %v5085_v16  ;;  %4773 = vmatpush1.bf16.msra.mxu1 %v5085_v16  ;;  %v5172_v16 = vld [vmem:[#allocation5 + $0x1f8] ss:$48 sps:$4 sm:$0xff]  }
  0xc4   : > { %1173 = vmatprep.subr.bf16.mxu1 %v5090_v17  ;;  %1286 = vmatprep.subr.bf16.mxu0 %v5093_v18  ;;  %v5175_v17 = vld [vmem:[#allocation5 + $0x200] ss:$48 sps:$4 sm:$0xff]   ;;  %v5180_v18 = vld [vmem:[#allocation5 + $0x25c] ss:$48 sps:$4 sm:$0xff]  }
  0xc6   : > { %1093 = vmatmul.mubr.bf16.vlgmr.msra.gmra.mrb[0].mxu0 %v6105_v19  ;;  %1133 = vmatmul.mubr.bf16.vlgmr.msra.gmra.mrb[0].mxu1 %v6108_v20 }
  0xc7   : > { %1174 = vmatpush1.bf16.msra.mxu1 %v5088_v21  ;;  %1287 = vmatpush1.bf16.msra.mxu0 %v5091_v22  ;;  %v5183_v21 = vld [vmem:[#allocation5 + $0x264] ss:$48 sps:$4 sm:$0xff]   ;;  %v5178_v22 = vld [vmem:[#allocation5 + $0x258] ss:$48 sps:$4 sm:$0xff]  }
  0xc8   : > { %1175 = vmatprep.subr.bf16.mxu1 %v5096_v23  ;;  %1288 = vmatprep.subr.bf16.mxu0 %v5099_v24  ;;  %v5181_v23 = vld [vmem:[#allocation5 + $0x260] ss:$48 sps:$4 sm:$0xff]   ;;  %v5186_v24 = vld [vmem:[#allocation5 + $0x2bc] ss:$48 sps:$4 sm:$0xff]  }
  0xc9   : > { %1102 = vmatprep.mubr.bf16.mxu0 %v5819_v0  ;;  %1142 = vmatprep.mubr.bf16.mxu1 %v5819_v0 }
  0xcb   : > { %1176 = vmatpush1.bf16.msra.mxu1 %v5094_v25  ;;  %1289 = vmatpush1.bf16.msra.mxu0 %v5097_v26  ;;  %v5189_v25 = vld [vmem:[#allocation5 + $0x2c4] ss:$48 sps:$4 sm:$0xff]   ;;  %v5184_v26 = vld [vmem:[#allocation5 + $0x2b8] ss:$48 sps:$4 sm:$0xff]  }
  0xcc   : > { %1177 = vmatprep.subr.bf16.mxu1 %v5104_v27  ;;  %1290 = vmatprep.subr.bf16.mxu0 %v5107_v28  ;;  %v5187_v27 = vld [vmem:[#allocation5 + $0x2c0] ss:$48 sps:$4 sm:$0xff]   ;;  %v5192_v28 = vld [vmem:[#allocation5 + $0x2c] ss:$48 sps:$4 sm:$0xff]  }
  0xce   : > { %1103 = vmatmul.mubr.bf16.gmra.mrb[4].mxu0 %v6115_v29  ;;  %1143 = vmatmul.mubr.bf16.gmra.mrb[4].mxu1 %v6118_v30 }
  0xcf   : > { %1178 = vmatpush1.bf16.msra.mxu1 %v5102_v31  ;;  %1291 = vmatpush1.bf16.msra.mxu0 %v5105_v32  ;;  %v5195_v31 = vld [vmem:[#allocation5 + $0x8c] ss:$48 sps:$4 sm:$0xff]   ;;  %v5193_v32 = vld [vmem:[#allocation5 + $0x88] ss:$48 sps:$4 sm:$0xff]  }
  0xd0   : > { %1179 = vmatprep.subr.bf16.mxu1 %v5110_v33  ;;  %1292 = vmatprep.subr.bf16.mxu0 %v5113_v34  ;;  %v5198_v33 = vld [vmem:[#allocation5 + $0xec] ss:$48 sps:$4 sm:$0xff]   ;;  %v5196_v34 = vld [vmem:[#allocation5 + $0xe8] ss:$48 sps:$4 sm:$0xff]  }
  0xd1   : > { %1112 = vmatprep.mubr.bf16.mxu0 %v5819_v0  ;;  %1152 = vmatprep.mubr.bf16.mxu1 %v5819_v0 }
  0xd3   : > { %1180 = vmatpush1.bf16.msra.mxu1 %v5108_v35  ;;  %1293 = vmatpush1.bf16.msra.mxu0 %v5111_v36  ;;  %v5201_v35 = vld [vmem:[#allocation5 + $0x14c] ss:$48 sps:$4 sm:$0xff]   ;;  %v5199_v36 = vld [vmem:[#allocation5 + $0x148] ss:$48 sps:$4 sm:$0xff]  }
  0xd4   : > { %1181 = vmatprep.subr.bf16.mxu1 %v5118_v37  ;;  %1294 = vmatprep.subr.bf16.mxu0 %v5121_v38  ;;  %v5202_v37 = vld [vmem:[#allocation5 + $0x1a8] ss:$48 sps:$4 sm:$0xff]   ;;  %v5207_v38 = vld [vmem:[#allocation5 + $0x20c] ss:$48 sps:$4 sm:$0xff]  }
  0xd6   : > { %1113 = vmatmul.mubr.bf16.gmra.mrb[8].mxu0 %v6125_v39  ;;  %1153 = vmatmul.mubr.bf16.gmra.mrb[8].mxu1 %v6128_v40 }
  0xd7   : > { %1182 = vmatpush1.bf16.msra.mxu1 %v5116_v41  ;;  %1295 = vmatpush1.bf16.msra.mxu0 %v5119_v42  ;;  %v5210_v41 = vld [vmem:[#allocation5 + $0x26c] ss:$48 sps:$4 sm:$0xff]   ;;  %v5208_v42 = vld [vmem:[#allocation5 + $0x268] ss:$48 sps:$4 sm:$0xff]  }
  0xd8   : > { %1183 = vmatprep.subr.bf16.mxu1 %v5124_v43  ;;  %1296 = vmatprep.subr.bf16.mxu0 %v5127_v44  ;;  %v5213_v43 = vld [vmem:[#allocation5 + $0x2cc] ss:$48 sps:$4 sm:$0xff]   ;;  %v5216_v44 = vld [vmem:[#allocation8 + $0x4] ss:$24 sps:$4 sm:$0xff]  }
  0xd9   : > { %1122 = vmatprep.mubr.bf16.mxu0 %v5819_v0  ;;  %1162 = vmatprep.mubr.bf16.mxu1 %v5819_v0 }
  0xdb   : > { %1184 = vmatpush1.bf16.msra.mxu1 %v5122_v45  ;;  %1297 = vmatpush1.bf16.msra.mxu0 %v5125_v46  ;;  %v5219_v45 = vld [vmem:[#allocation8 + $0xc] ss:$24 sps:$4 sm:$0xff]   ;;  %v5214_v46 = vld [vmem:[#allocation8] ss:$24 sps:$4 sm:$0xff]  }
  0xdc   : > { %1185 = vmatprep.subr.bf16.mxu1 %v5132_v47  ;;  %1298 = vmatprep.subr.bf16.mxu0 %v5135_v48  ;;  %v6193_v47 = vld [vmem:[%s6088_s18 + $0x20] sm:$0xff]  }
  0xdd   : > { %v5222_v48 = vld [vmem:[#allocation8 + $0x34] ss:$24 sps:$4 sm:$0xff]  }
  0xde   : > { %1123 = vmatmul.mubr.bf16.gmra.mrb[12].mxu0 %v6135_v49  ;;  %1163 = vmatmul.mubr.bf16.gmra.mrb[12].mxu1 %v6138_v50 }
  0xdf   : > { %1186 = vmatpush1.bf16.msra.mxu1 %v5130_v51  ;;  %1299 = vmatpush1.bf16.msra.mxu0 %v5133_v52  ;;  %v5228_v51 = vld [vmem:[#allocation8 + $0x64] ss:$24 sps:$4 sm:$0xff]   ;;  %v5226_v52 = vld [vmem:[#allocation8 + $0x60] ss:$24 sps:$4 sm:$0xff]  }
  0xe0   : > { %1187 = vmatprep.subr.bf16.mxu1 %v5138_v53  ;;  %1300 = vmatprep.subr.bf16.mxu0 %v5141_v54  ;;  %v5234_v53 = vld [vmem:[#allocation8 + $0x94] ss:$24 sps:$4 sm:$0xff]   ;;  %v5232_v54 = vld [vmem:[#allocation8 + $0x90] ss:$24 sps:$4 sm:$0xff]  }
  0xe1   : > { %1205 = vmatprep.mubr.bf16.mxu1 %v5819_v0  ;;  %1318 = vmatprep.mubr.bf16.mxu0 %v5819_v0 }
  0xe3   : > { %1188 = vmatpush1.bf16.msra.mxu1 %v5136_v55  ;;  %1301 = vmatpush1.bf16.msra.mxu0 %v5139_v56  ;;  %v5240_v55 = vld [vmem:[#allocation8 + $0xc4] ss:$24 sps:$4 sm:$0xff]   ;;  %v5238_v56 = vld [vmem:[#allocation8 + $0xc0] ss:$24 sps:$4 sm:$0xff]  }
  0xe4   : > { %1399 = vmatprep.subr.bf16.mxu1 %v5144_v57  ;;  %1512 = vmatprep.subr.bf16.mxu0 %v5147_v58  ;;  %v5246_v57 = vld [vmem:[#allocation8 + $0xf4] ss:$24 sps:$4 sm:$0xff]   ;;  %v5252_v58 = vld [vmem:[#allocation8 + $0x124] ss:$24 sps:$4 sm:$0xff]  }
  0xe6   : > { %1206 = vmatmul.mubr.bf16.vlgmr.msra.gmra.mrb[16].mxu1 %v6105_v19  ;;  %1319 = vmatmul.mubr.bf16.vlgmr.msra.gmra.mrb[16].mxu0 %v6105_v19 }
  0xe7   : > { %1400 = vmatpush1.bf16.msra.mxu1 %v5142_v59  ;;  %1513 = vmatpush1.bf16.msra.mxu0 %v5145_v60  ;;  %v5250_v59 = vld [vmem:[#allocation8 + $0x120] ss:$24 sps:$4 sm:$0xff]   ;;  %v5258_v60 = vld [vmem:[#allocation8 + $0x154] ss:$24 sps:$4 sm:$0xff]  }
  0xe8   : > { %1215 = vmatprep.mubr.bf16.mxu1 %v5819_v0  ;;  %1328 = vmatprep.mubr.bf16.mxu0 %v5819_v0 }
  0xe9   : > { %1401 = vmatprep.subr.bf16.mxu1 %v5150_v61  ;;  %1514 = vmatprep.subr.bf16.mxu0 %v5153_v62  ;;  %v5264_v61 = vld [vmem:[#allocation8 + $0x184] ss:$24 sps:$4 sm:$0xff]   ;;  %v5217_v62 = vld [vmem:[#allocation8 + $0x8] ss:$24 sps:$4 sm:$0xff]  }
  0xeb   : > { %1402 = vmatpush1.bf16.msra.mxu1 %v5148_v63  ;;  %1515 = vmatpush1.bf16.msra.mxu0 %v5151_v1  ;;  %v5262_v63 = vld [vmem:[#allocation8 + $0x180] ss:$24 sps:$4 sm:$0xff]   ;;  %v5225_v1 = vld [vmem:[#allocation8 + $0x3c] ss:$24 sps:$4 sm:$0xff]  }
  0xec   : > { %1403 = vmatprep.subr.bf16.mxu1 %v5156_v2  ;;  %1516 = vmatprep.subr.bf16.mxu0 %v5159_v3  ;;  %v5583_v2 = vld [vmem:[%s6088_s18] sm:$0xff]  }
  0xed   : > { %v5270_v3 = vld [vmem:[#allocation8 + $0x1b4] ss:$24 sps:$4 sm:$0xff]  }
  0xee   : > { %1216 = vmatmul.mubr.bf16.gmra.mrb[20].mxu1 %v6115_v29  ;;  %1329 = vmatmul.mubr.bf16.gmra.mrb[20].mxu0 %v6115_v29 }
  0xef   : > { %1225 = vmatprep.mubr.bf16.mxu1 %v5819_v0  ;;  %1338 = vmatprep.mubr.bf16.mxu0 %v5819_v0 }
  0xf0   : > { %1404 = vmatpush1.bf16.msra.mxu1 %v5154_v4  ;;  %1517 = vmatpush1.bf16.msra.mxu0 %v5157_v5  ;;  %v5268_v4 = vld [vmem:[#allocation8 + $0x1b0] ss:$24 sps:$4 sm:$0xff]   ;;  %v5231_v5 = vld [vmem:[#allocation8 + $0x6c] ss:$24 sps:$4 sm:$0xff]  }
  0xf1   : > { %1405 = vmatprep.subr.bf16.mxu1 %v5162_v6  ;;  %1518 = vmatprep.subr.bf16.mxu0 %v5165_v7  ;;  %v5276_v6 = vld [vmem:[#allocation8 + $0x1e4] ss:$24 sps:$4 sm:$0xff]   ;;  %v5229_v7 = vld [vmem:[#allocation8 + $0x68] ss:$24 sps:$4 sm:$0xff]  }
  0xf4   : > { %1406 = vmatpush1.bf16.msra.mxu1 %v5160_v8  ;;  %1519 = vmatpush1.bf16.msra.mxu0 %v5163_v9  ;;  %v5274_v8 = vld [vmem:[#allocation8 + $0x1e0] ss:$24 sps:$4 sm:$0xff]   ;;  %v5237_v9 = vld [vmem:[#allocation8 + $0x9c] ss:$24 sps:$4 sm:$0xff]  }
  0xf5   : > { %1407 = vmatprep.subr.bf16.mxu1 %v5168_v10  ;;  %1520 = vmatprep.subr.bf16.mxu0 %v5171_v11  ;;  %v5584_v10 = vld [vmem:[%s6088_s18 + $0x8] sm:$0xff]   ;;  %v5282_v11 = vld [vmem:[#allocation8 + $0x214] ss:$24 sps:$4 sm:$0xff]  }
  0xf6   : > { %1226 = vmatmul.mubr.bf16.gmra.mrb[24].mxu1 %v6125_v39  ;;  %1339 = vmatmul.mubr.bf16.gmra.mrb[24].mxu0 %v6125_v39 }
  0xf7   : > { %1235 = vmatprep.mubr.bf16.mxu1 %v5819_v0  ;;  %1348 = vmatprep.mubr.bf16.mxu0 %v5819_v0 }
  0xf8   : > { %1408 = vmatpush1.bf16.msra.mxu1 %v5166_v12  ;;  %1521 = vmatpush1.bf16.msra.mxu0 %v5169_v13  ;;  %v5235_v12 = vld [vmem:[#allocation8 + $0x98] ss:$24 sps:$4 sm:$0xff]  }
  0xf9   : > { %1409 = vmatprep.subr.bf16.mxu1 %v5174_v14  ;;  %1522 = vmatprep.subr.bf16.mxu0 %v5177_v15  ;;  %v5280_v13 = vld [vmem:[#allocation8 + $0x210] ss:$24 sps:$4 sm:$0xff]   ;;  %v5243_v14 = vld [vmem:[#allocation8 + $0xcc] ss:$24 sps:$4 sm:$0xff]  }
  0xfa   : > { %v5288_v15 = vld [vmem:[#allocation8 + $0x244] ss:$24 sps:$4 sm:$0xff]  }
  0xfc   : > { %1410 = vmatpush1.bf16.msra.mxu1 %v5172_v16  ;;  %1523 = vmatpush1.bf16.msra.mxu0 %v5175_v17  ;;  %v5241_v16 = vld [vmem:[#allocation8 + $0xc8] ss:$24 sps:$4 sm:$0xff]  }
  0xfd   : > { %1411 = vmatprep.subr.bf16.mxu1 %v5180_v18  ;;  %1524 = vmatprep.subr.bf16.mxu0 %v5183_v21  ;;  %v5286_v17 = vld [vmem:[#allocation8 + $0x240] ss:$24 sps:$4 sm:$0xff]   ;;  %v5249_v18 = vld [vmem:[#allocation8 + $0xfc] ss:$24 sps:$4 sm:$0xff]   ;;  %v5585_v21 = vld [vmem:[%s6088_s18 + $0x10] sm:$0xff]  }
  0xfe   : > { %1236 = vmatmul.mubr.bf16.gmra.mrb[28].mxu1 %v6135_v49  ;;  %1349 = vmatmul.mubr.bf16.gmra.mrb[28].mxu0 %v6135_v49 }
  0xff   : > { %1245 = vmatprep.mubr.bf16.mxu1 %v5819_v0  ;;  %1358 = vmatprep.mubr.bf16.mxu0 %v5819_v0 }
 0x100   : > { %1412 = vmatpush1.bf16.msra.mxu1 %v5178_v22  ;;  %1525 = vmatpush1.bf16.msra.mxu0 %v5181_v23  ;;  %v5294_v22 = vld [vmem:[#allocation8 + $0x274] ss:$24 sps:$4 sm:$0xff]   ;;  %v5247_v23 = vld [vmem:[#allocation8 + $0xf8] ss:$24 sps:$4 sm:$0xff]  }
 0x101   : > { %1413 = vmatprep.subr.bf16.mxu1 %v5186_v24  ;;  %1526 = vmatprep.subr.bf16.mxu0 %v5189_v25  ;;  %v5292_v24 = vld [vmem:[#allocation8 + $0x270] ss:$24 sps:$4 sm:$0xff]   ;;  %v5255_v25 = vld [vmem:[#allocation8 + $0x12c] ss:$24 sps:$4 sm:$0xff]  }
 0x104   : > { %1414 = vmatpush1.bf16.msra.mxu1 %v5184_v26  ;;  %1527 = vmatpush1.bf16.msra.mxu0 %v5187_v27  ;;  %v5300_v26 = vld [vmem:[#allocation8 + $0x2a4] ss:$24 sps:$4 sm:$0xff]   ;;  %v5253_v27 = vld [vmem:[#allocation8 + $0x128] ss:$24 sps:$4 sm:$0xff]  }
 0x105   : > { %1625 = vmatprep.subr.bf16.mxu1 %v5192_v28  ;;  %3082 = vmatprep.subr.bf16.mxu0 %v5216_v44  ;;  %v5298_v28 = vld [vmem:[#allocation8 + $0x2a0] ss:$24 sps:$4 sm:$0xff]   ;;  %v5291_v44 = vld [vmem:[#allocation8 + $0x24c] ss:$24 sps:$4 sm:$0xff]  }
 0x106   : > { %1246 = vmatmul.mubr.bf16.gmra.mrb[32].mxu1 %v6108_v20  ;;  %1359 = vmatmul.mubr.bf16.gmra.mrb[32].mxu0 %v6108_v20  ;;  %v5190_v20 = vld [vmem:[#allocation5 + $0x28] ss:$48 sps:$4 sm:$0xff]  }
 0x107   : > { %1255 = vmatprep.mubr.bf16.mxu1 %v5819_v0  ;;  %1368 = vmatprep.mubr.bf16.mxu0 %v5819_v0 }
 0x10e   : > { %1256 = vmatmul.mubr.bf16.gmra.mrb[36].mxu1 %v6118_v30  ;;  %1369 = vmatmul.mubr.bf16.gmra.mrb[36].mxu0 %v6118_v30 }
 0x10f   : > { %1265 = vmatprep.mubr.bf16.mxu1 %v5819_v0  ;;  %1378 = vmatprep.mubr.bf16.mxu0 %v5819_v0 }
 0x116   : > { %1266 = vmatmul.mubr.bf16.gmra.mrb[40].mxu1 %v6128_v40  ;;  %1379 = vmatmul.mubr.bf16.gmra.mrb[40].mxu0 %v6128_v40 }
 0x117   : > { %1275 = vmatprep.mubr.bf16.mxu1 %v5819_v0  ;;  %1388 = vmatprep.mubr.bf16.mxu0 %v5819_v0 }
 0x11e   : > { %1276 = vmatmul.mubr.bf16.gmra.mrb[44].mxu1 %v6138_v50  ;;  %1389 = vmatmul.mubr.bf16.gmra.mrb[44].mxu0 %v6138_v50 }
 0x11f   : > { %1431 = vmatprep.mubr.bf16.mxu1 %v5819_v0  ;;  %1544 = vmatprep.mubr.bf16.mxu0 %v5819_v0 }
 0x126   : > { %1432 = vmatmul.mubr.bf16.vlgmr.msra.gmra.mrb[48].mxu1 %v6105_v19  ;;  %1545 = vmatmul.mubr.bf16.vlgmr.msra.gmra.mrb[48].mxu0 %v6105_v19  ;;  %v5204_v19 = vld [vmem:[#allocation5 + $0x1ac] ss:$48 sps:$4 sm:$0xff]  }
 0x127   : > { %1626 = vmatpush1.bf16.msra.mxu1 %v5190_v20  ;;  %1441 = vmatprep.mubr.bf16.mxu1 %v5819_v0  ;;  %v5261_v20 = vld [vmem:[#allocation8 + $0x15c] ss:$24 sps:$4 sm:$0xff]  }
 0x128   : > { %1554 = vmatprep.mubr.bf16.mxu0 %v5819_v0  ;;  %1627 = vmatprep.subr.bf16.mxu1 %v5195_v31  ;;  %v5586_v31 = vld [vmem:[%s6088_s18 + $0x18] sm:$0xff]  }
 0x129   : > { %3083 = vmatpush1.bf16.msra.mxu0 %v5214_v46  ;;  %v5297_v46 = vld [vmem:[#allocation8 + $0x27c] ss:$24 sps:$4 sm:$0xff]  }
 0x12a   : > { %3084 = vmatprep.subr.bf16.mxu0 %v5222_v48  ;;  %v5295_v48 = vld [vmem:[#allocation8 + $0x278] ss:$24 sps:$4 sm:$0xff]  }
 0x12b   : > { %1628 = vmatpush1.bf16.msra.mxu1 %v5193_v32  ;;  %v5306_v32 = vld [vmem:[#allocation8 + $0x2d4] ss:$24 sps:$4 sm:$0xff]  }
 0x12c   : > { %1629 = vmatprep.subr.bf16.mxu1 %v5198_v33  ;;  %v5259_v33 = vld [vmem:[#allocation8 + $0x158] ss:$24 sps:$4 sm:$0xff]  }
 0x12e   : > { %1442 = vmatmul.mubr.bf16.gmra.mrb[52].mxu1 %v6115_v29  ;;  %1555 = vmatmul.mubr.bf16.gmra.mrb[52].mxu0 %v6115_v29  ;;  %v5205_v29 = vld [vmem:[#allocation5 + $0x208] ss:$48 sps:$4 sm:$0xff]  }
 0x12f   : > { %1451 = vmatprep.mubr.bf16.mxu1 %v5819_v0  ;;  %1564 = vmatprep.mubr.bf16.mxu0 %v5819_v0 }
 0x130   : > { %1630 = vmatpush1.bf16.msra.mxu1 %v5196_v34  ;;  %v5304_v34 = vld [vmem:[#allocation8 + $0x2d0] ss:$24 sps:$4 sm:$0xff]  }
 0x131   : > { %1631 = vmatprep.subr.bf16.mxu1 %v5201_v35  ;;  %v5267_v35 = vld [vmem:[#allocation8 + $0x18c] ss:$24 sps:$4 sm:$0xff]  }
 0x134   : > { %1632 = vmatpush1.bf16.msra.mxu1 %v5199_v36  ;;  %v5312_v36 = vld [vmem:[#allocation8 + $0x304] ss:$24 sps:$4 sm:$0xff]  }
 0x135   : > { %1633 = vmatprep.subr.bf16.mxu1 %v5204_v19  ;;  %v5265_v19 = vld [vmem:[#allocation8 + $0x188] ss:$24 sps:$4 sm:$0xff]  }
 0x136   : > { %1452 = vmatmul.mubr.bf16.gmra.mrb[56].mxu1 %v6125_v39  ;;  %1565 = vmatmul.mubr.bf16.gmra.mrb[56].mxu0 %v6125_v39  ;;  %v5211_v39 = vld [vmem:[#allocation5 + $0x2c8] ss:$48 sps:$4 sm:$0xff]  }
 0x137   : > { %1461 = vmatprep.mubr.bf16.mxu1 %v5819_v0  ;;  %1574 = vmatprep.mubr.bf16.mxu0 %v5819_v0 }
 0x138   : > { %1634 = vmatpush1.bf16.msra.mxu1 %v5202_v37  ;;  %v5273_v37 = vld [vmem:[#allocation8 + $0x1bc] ss:$24 sps:$4 sm:$0xff]  }
 0x139   : > { %1635 = vmatprep.subr.bf16.mxu1 %v5207_v38  ;;  %v5271_v38 = vld [vmem:[#allocation8 + $0x1b8] ss:$24 sps:$4 sm:$0xff]  }
 0x13c   : > { %1636 = vmatpush1.bf16.msra.mxu1 %v5205_v29  ;;  %v5279_v29 = vld [vmem:[#allocation8 + $0x1ec] ss:$24 sps:$4 sm:$0xff]  }
 0x13d   : > { %1637 = vmatprep.subr.bf16.mxu1 %v5210_v41  ;;  %v5277_v41 = vld [vmem:[#allocation8 + $0x1e8] ss:$24 sps:$4 sm:$0xff]  }
 0x13e   : > { %1462 = vmatmul.mubr.bf16.gmra.mrb[60].mxu1 %v6135_v49  ;;  %1575 = vmatmul.mubr.bf16.gmra.mrb[60].mxu0 %v6135_v49  ;;  %v5220_v49 = vld [vmem:[#allocation8 + $0x30] ss:$24 sps:$4 sm:$0xff]  }
 0x13f   : > { %1471 = vmatprep.mubr.bf16.mxu1 %v5819_v0  ;;  %1584 = vmatprep.mubr.bf16.mxu0 %v5819_v0 }
 0x140   : > { %1638 = vmatpush1.bf16.msra.mxu1 %v5208_v42  ;;  %3085 = vmatpush1.bf16.msra.mxu0 %v5220_v49  ;;  %v5285_v42 = vld [vmem:[#allocation8 + $0x21c] ss:$24 sps:$4 sm:$0xff]   ;;  %v5303_v49 = vld [vmem:[#allocation8 + $0x2ac] ss:$24 sps:$4 sm:$0xff]  }
 0x141   : > { %1639 = vmatprep.subr.bf16.mxu1 %v5213_v43  ;;  %3086 = vmatprep.subr.bf16.mxu0 %v5228_v51  ;;  %v5587_v43 = vld [vmem:[%s6088_s18 + $0x28] sm:$0xff]  }
 0x144   : > { %1640 = vmatpush1.bf16.msra.mxu1 %v5211_v39  ;;  %3087 = vmatpush1.bf16.msra.mxu0 %v5226_v52  ;;  %v5283_v39 = vld [vmem:[#allocation8 + $0x218] ss:$24 sps:$4 sm:$0xff]  }
 0x145   : > { %3308 = vmatprep.subr.bf16.mxu1 %v5219_v45  ;;  %3088 = vmatprep.subr.bf16.mxu0 %v5234_v53  ;;  %v5289_v45 = vld [vmem:[#allocation8 + $0x248] ss:$24 sps:$4 sm:$0xff]  }
 0x146   : > { %1472 = vmatmul.mubr.bf16.gmra.mrb[64].mxu1 %v6193_v47  ;;  %1585 = vmatmul.mubr.bf16.gmra.mrb[64].mxu0 %v6193_v47 }
 0x147   : > { %1481 = vmatprep.mubr.bf16.mxu1 %v5819_v0  ;;  %1594 = vmatprep.mubr.bf16.mxu0 %v5819_v0 }
 0x148   : > { %3089 = vmatpush1.bf16.msra.mxu0 %v5232_v54 }
 0x149   : > { %3090 = vmatprep.subr.bf16.mxu0 %v5240_v55 }
 0x14c   : > { %3091 = vmatpush1.bf16.msra.mxu0 %v5238_v56 }
 0x14d   : > { %3092 = vmatprep.subr.bf16.mxu0 %v5246_v57  ;;  %v5301_v57 = vld [vmem:[#allocation8 + $0x2a8] ss:$24 sps:$4 sm:$0xff]  }
 0x14e   : > { %1482 = vmatmul.mubr.bf16.gmra.mrb[68].mxu1 %v6118_v30  ;;  %1595 = vmatmul.mubr.bf16.gmra.mrb[68].mxu0 %v6118_v30  ;;  %v5244_v30 = vld [vmem:[#allocation8 + $0xf0] ss:$24 sps:$4 sm:$0xff]  }
 0x14f   : > { %1491 = vmatprep.mubr.bf16.mxu1 %v5819_v0  ;;  %1604 = vmatprep.mubr.bf16.mxu0 %v5819_v0 }
 0x150   : > { %3093 = vmatpush1.bf16.msra.mxu0 %v5244_v30 }
 0x151   : > { %3094 = vmatprep.subr.bf16.mxu0 %v5252_v58 }
 0x154   : > { %3095 = vmatpush1.bf16.msra.mxu0 %v5250_v59  ;;  %v5589_v59 = vld [vmem:[%s6088_s18 + $0x38] sm:$0xff]  }
 0x155   : > { %3096 = vmatprep.subr.bf16.mxu0 %v5258_v60  ;;  %v5307_v60 = vld [vmem:[#allocation8 + $0x2d8] ss:$24 sps:$4 sm:$0xff]  }
 0x156   : > { %1492 = vmatmul.mubr.bf16.gmra.mrb[72].mxu1 %v6128_v40  ;;  %1605 = vmatmul.mubr.bf16.gmra.mrb[72].mxu0 %v6128_v40  ;;  %v5256_v40 = vld [vmem:[#allocation8 + $0x150] ss:$24 sps:$4 sm:$0xff]  }
 0x157   : > { %1501 = vmatprep.mubr.bf16.mxu1 %v5819_v0  ;;  %1614 = vmatprep.mubr.bf16.mxu0 %v5819_v0 }
 0x158   : > { %3097 = vmatpush1.bf16.msra.mxu0 %v5256_v40  ;;  %v5315_v40 = vld [vmem:[#allocation8 + $0x30c] ss:$24 sps:$4 sm:$0xff]  }
 0x159   : > { %3098 = vmatprep.subr.bf16.mxu0 %v5264_v61 }
 0x15c   : > { %3099 = vmatpush1.bf16.msra.mxu0 %v5262_v63 }
 0x15d   : > { %3100 = vmatprep.subr.bf16.mxu0 %v5270_v3 }
 0x15e   : > { %1502 = vmatmul.mubr.bf16.gmra.mrb[76].mxu1 %v6138_v50  ;;  %1615 = vmatmul.mubr.bf16.gmra.mrb[76].mxu0 %v6138_v50  ;;  %v5223_v50 = vld [vmem:[#allocation8 + $0x38] ss:$24 sps:$4 sm:$0xff]  }
 0x15f   : > { %1657 = vmatprep.mubr.bf16.mxu1 %v5819_v0 }
 0x160   : > { %3101 = vmatpush1.bf16.msra.mxu0 %v5268_v4 }
 0x161   : > { %3102 = vmatprep.subr.bf16.mxu0 %v5276_v6 }
 0x164   : > { %3103 = vmatpush1.bf16.msra.mxu0 %v5274_v8 }
 0x165   : > { %3104 = vmatprep.subr.bf16.mxu0 %v5282_v11 }
 0x166   : > { %1658 = vmatmul.mubr.bf16.vlgmr.msra.gmra.mrb[80].mxu1 %v5583_v2 }
 0x167   : > { %1667 = vmatprep.mubr.bf16.mxu1 %v5819_v0  ;;  %3309 = vmatpush1.bf16.msra.mxu1 %v5217_v62 }
 0x168   : > { %3310 = vmatprep.subr.bf16.mxu1 %v5225_v1  ;;  %3105 = vmatpush1.bf16.msra.mxu0 %v5280_v13 }
 0x169   : > { %3106 = vmatprep.subr.bf16.mxu0 %v5288_v15 }
 0x16b   : > { %3311 = vmatpush1.bf16.msra.mxu1 %v5223_v50 }
 0x16c   : > { %3312 = vmatprep.subr.bf16.mxu1 %v5231_v5  ;;  %3107 = vmatpush1.bf16.msra.mxu0 %v5286_v17 }
 0x16d   : > { %3108 = vmatprep.subr.bf16.mxu0 %v5294_v22 }
 0x16e   : > { %1668 = vmatmul.mubr.bf16.gmra.mrb[84].mxu1 %v5584_v10 }
 0x16f   : > { %1677 = vmatprep.mubr.bf16.mxu1 %v5819_v0  ;;  %3313 = vmatpush1.bf16.msra.mxu1 %v5229_v7  ;;  %v472_v7 = vlaneseq }
 0x170   : > { %3314 = vmatprep.subr.bf16.mxu1 %v5237_v9  ;;  %3109 = vmatpush1.bf16.msra.mxu0 %v5292_v24 }
 0x171   : > { %3110 = vmatprep.subr.bf16.mxu0 %v5300_v26 }
 0x173   : > { %3315 = vmatpush1.bf16.msra.mxu1 %v5235_v12 }
 0x174   : > { %3316 = vmatprep.subr.bf16.mxu1 %v5243_v14  ;;  %3111 = vmatpush1.bf16.msra.mxu0 %v5298_v28  ;;  %v6261_v14 = vshrl.u32 %v472_v7, 7 }
 0x175   : > { %3112 = vmatprep.subr.bf16.mxu0 %v5306_v32 }
 0x176   : > { %1678 = vmatmul.mubr.bf16.gmra.mrb[88].mxu1 %v5585_v21  ;;  %8035 = vst [vmem:[#allocation16_spill] sm:$0xff] %v6261_v14  ;;  %v6268_v17 = vsub.s32 0, %v6261_v14  ;;  %v7915_v22 = vsub.s32 4, %v6261_v14  ;;  %v6278_v24 = vsub.s32 1, %v6261_v14 }
 0x177   : > { %1687 = vmatprep.mubr.bf16.mxu1 %v5819_v0  ;;  %3317 = vmatpush1.bf16.msra.mxu1 %v5241_v16 }
 0x178   : > { %3318 = vmatprep.subr.bf16.mxu1 %v5249_v18  ;;  %3113 = vmatpush1.bf16.msra.mxu0 %v5304_v34  ;;  %8036 = vst [vmem:[#allocation17_spill] sm:$0xff] %v6268_v17  ;;  %8037 = vst [vmem:[#allocation18_spill] sm:$0xff] %v6278_v24 }
 0x179   : > { %3195 = vmatprep.subr.bf16.mxu0 %v5312_v36 }
 0x17b   : > { %3319 = vmatpush1.bf16.msra.mxu1 %v5247_v23  ;;  %v6275_v23 = vld [vmem:[#allocation7] sm:$0xff] }
 0x17c   : > { %3320 = vmatprep.subr.bf16.mxu1 %v5255_v25  ;;  %v6296_v32 = vrot.slane %v6275_v23, %v7915_v22 }
 0x17e   : > { %1688 = vmatmul.mubr.bf16.gmra.mrb[92].mxu1 %v5586_v31  ;;  %v6291_v31 = vrot.slane %v6275_v23, %v6268_v17 }
 0x17f   : > { %1697 = vmatprep.mubr.bf16.mxu1 %v5819_v0  ;;  %3321 = vmatpush1.bf16.msra.mxu1 %v5253_v27  ;;  %v7914_v27 = vsub.s32 5, %v6261_v14 }
 0x180   : > { %3322 = vmatprep.subr.bf16.mxu1 %v5261_v20 }
 0x181   : > { %v6305_v34 = vrot.slane %v6275_v23, %v7914_v27 }
 0x183   : > { %3323 = vmatpush1.bf16.msra.mxu1 %v5259_v33  ;;  %v6300_v33 = vrot.slane %v6275_v23, %v6278_v24 }
 0x184   : > { %3324 = vmatprep.subr.bf16.mxu1 %v5267_v35 }
 0x186   : > { %1698 = vmatmul.mubr.bf16.gmra.mrb[96].mxu1 %v6193_v47  ;;  %v5588_v47 = vld [vmem:[%s6088_s18 + $0x30] sm:$0xff]   ;;  %s5736_s18 = sshll.u32 %s5820_s28, 4  ;;  %s5737_s18 = int_to_ptr.vmem [resolvable:$false] %s5736_s18 }
 0x187   : > { %1707 = vmatprep.mubr.bf16.mxu1 %v5819_v0  ;;  %3325 = vmatpush1.bf16.msra.mxu1 %v5265_v19  ;;  %s5738_s30 = scalar_lea.vmem %s5737_s18, 4096  ;;  %p5739_p12 = scmp.lt.s32.totalorder %s7857_s10, %s5737_s18 }
 0x188   : > { %3326 = vmatprep.subr.bf16.mxu1 %v5273_v37  ;;  %p5740_p2 = scmp.lt.s32.totalorder %s5738_s30, %s5732_s17 }
 0x18a   : > { %p5741_p1 = por %p5740_p2, %p5739_p12 }
 0x18b   : > { %3327 = vmatpush1.bf16.msra.mxu1 %v5271_v38 }
 0x18c   : > { %3328 = vmatprep.subr.bf16.mxu1 %v5279_v29  ;;  %p5742_p13 = pnand %p5741_p1, %p5735_p7 }
 0x18e   : > { %1708 = vmatmul.mubr.bf16.gmra.mrb[100].mxu1 %v5587_v43 }
 0x18f   : > { %1717 = vmatprep.mubr.bf16.mxu1 %v5819_v0  ;;  %3329 = vmatpush1.bf16.msra.mxu1 %v5277_v41 }
 0x190   : > { %3330 = vmatprep.subr.bf16.mxu1 %v5285_v42 }
 0x193   : > { %3331 = vmatpush1.bf16.msra.mxu1 %v5283_v39 }
 0x194   : > { %3332 = vmatprep.subr.bf16.mxu1 %v5291_v44 }
 0x196   : > { %1718 = vmatmul.mubr.bf16.gmra.mrb[104].mxu1 %v5588_v47 }
 0x197   : > { %1727 = vmatprep.mubr.bf16.mxu1 %v5819_v0  ;;  %3333 = vmatpush1.bf16.msra.mxu1 %v5289_v45  ;;  %v5309_v0 = vld [vmem:[#allocation8 + $0x2dc] ss:$24 sps:$4 sm:$0xff]  }
 0x198   : > { %3334 = vmatprep.subr.bf16.mxu1 %v5297_v46 }
 0x199   : > { %v1094_v51 = vpop.f32.mrb[0].mxu0  ;;  %v6224_v52 = vpop.f32.mrb[0].mxu1 }
 0x19a   : > { %v1096_v53 = vpop.f32.mrb[1].mxu0  ;;  %v6226_v54 = vpop.f32.mrb[1].mxu1  ;;  %v6310_v19 = vadd.f32 %v1094_v51, %v6291_v31 }
 0x19b   : > { %v1098_v55 = vpop.f32.mrb[2].mxu0  ;;  %v6228_v56 = vpop.f32.mrb[2].mxu1  ;;  %3335 = vmatpush1.bf16.msra.mxu1 %v5295_v48  ;;  %v6318_v41 = vadd.f32 %v1096_v53, %v6300_v33 }
 0x19c   : > { %v1100_v30 = vpop.f32.mrb[3].mxu0  ;;  %v6230_v58 = vpop.f32.mrb[3].mxu1  ;;  %3336 = vmatprep.subr.bf16.mxu1 %v5303_v49  ;;  %v6326_v44 = vadd.f32 %v1098_v55, %v6291_v31 }
 0x19d   : > { %v6336_v49 = vadd.f32 %v1100_v30, %v6300_v33 }
 0x19e   : > { %1728 = vmatmul.mubr.bf16.gmra.mrb[108].mxu1 %v5589_v59 }
 0x19f   : > { %3337 = vmatpush1.bf16.msra.mxu1 %v5301_v57 }
 0x1a0   : > { %3338 = vmatprep.subr.bf16.mxu1 %v5309_v0 }
 0x1a1   : > { %v1104_v61 = vpop.f32.mrb[4].mxu0  ;;  %v6233_v62 = vpop.f32.mrb[4].mxu1 }
 0x1a2   : > { %v1106_v63 = vpop.f32.mrb[5].mxu0  ;;  %v6235_v1 = vpop.f32.mrb[5].mxu1 }
 0x1a3   : > { %v6237_v2 = vpop.f32.mrb[6].mxu0  ;;  %v6239_v3 = vpop.f32.mrb[6].mxu1  ;;  %3339 = vmatpush1.bf16.msra.mxu1 %v5307_v60  ;;  %v6350_v60 = vadd.f32 %v1104_v61, %v6291_v31 }
 0x1a4   : > { %v6241_v50 = vpop.f32.mrb[7].mxu0  ;;  %v6243_v4 = vpop.f32.mrb[7].mxu1  ;;  %3421 = vmatprep.subr.bf16.mxu1 %v5315_v40  ;;  %v6367_v27 = vadd.f32 %v6237_v2, %v6291_v31 }
 0x1a9   : > { %v6245_v5 = vpop.f32.mrb[8].mxu0  ;;  %v6247_v6 = vpop.f32.mrb[8].mxu1 }
 0x1aa   : > { %v6249_v8 = vpop.f32.mrb[9].mxu0  ;;  %v6251_v9 = vpop.f32.mrb[9].mxu1  ;;  %v6393_v45 = vadd.f32 %v6245_v5, %v6291_v31 }
 0x1ab   : > { %v6253_v10 = vpop.f32.mrb[10].mxu0  ;;  %v6255_v11 = vpop.f32.mrb[10].mxu1 }
 0x1ac   : > { %v6257_v12 = vpop.f32.mrb[11].mxu0  ;;  %v6259_v13 = vpop.f32.mrb[11].mxu1  ;;  %8042 = vst [vmem:[#allocation23_spill] sm:$0xff] %v6393_v45  ;;  %v6411_v5 = vadd.f32 %v6253_v10, %v6291_v31 }
 0x1b1   : > { %v6263_v15 = vpop.f32.mrb[12].mxu0  ;;  %v6265_v16 = vpop.f32.mrb[12].mxu1 }
 0x1b2   : > { %v6270_v18 = vpop.f32.mrb[13].mxu0  ;;  %v6272_v21 = vpop.f32.mrb[13].mxu1  ;;  %v6437_v45 = vadd.f32 %v6263_v15, %v6291_v31 }
 0x1b3   : > { %v6280_v25 = vpop.f32.mrb[14].mxu0  ;;  %v6282_v26 = vpop.f32.mrb[14].mxu1 }
 0x1b4   : > { %v6285_v28 = vpop.f32.mrb[15].mxu0  ;;  %v6287_v20 = vpop.f32.mrb[15].mxu1  ;;  %8050 = vst [vmem:[#allocation31_spill] sm:$0xff] %v6437_v45  ;;  %v6455_v15 = vadd.f32 %v6280_v25, %v6291_v31  ;;  %v6481_v45 = vadd.f32 %v6224_v52, %v6291_v31  ;;  %v6499_v52 = vadd.f32 %v6228_v56, %v6291_v31 }
 0x1b6   : > { %8058 = vst [vmem:[#allocation39_spill] sm:$0xff] %v6481_v45  ;;  %v6525_v45 = vadd.f32 %v6233_v62, %v6291_v31  ;;  %v6543_v62 = vadd.f32 %v6239_v3, %v6291_v31 }
 0x1b8   : > { %8066 = vst [vmem:[#allocation47_spill] sm:$0xff] %v6525_v45  ;;  %v6569_v45 = vadd.f32 %v6247_v6, %v6291_v31  ;;  %v6587_v6 = vadd.f32 %v6255_v11, %v6291_v31 }
 0x1b9   : > { %v6307_v35 = vpop.f32.mrb[16].mxu1  ;;  %v1320_v36 = vpop.f32.mrb[16].mxu0 }
 0x1ba   : > { %v6313_v37 = vadd.f32 %v1320_v36, %v6296_v32  ;;  %v6315_v38 = vpop.f32.mrb[17].mxu1  ;;  %v1322_v29 = vpop.f32.mrb[17].mxu0  ;;  %v6358_v36 = vadd.f32 %v1106_v63, %v6300_v33  ;;  %8074 = vst [vmem:[#allocation55_spill] sm:$0xff] %v6569_v45  ;;  %8080 = vst [vmem:[#allocation61_spill] sm:$0xff] %v6587_v6  ;;  %v6636_v6 = vld [vmem:[#allocation7 + $0x8] sm:$0xf] }
 0x1bb   : > { %v6321_v42 = vadd.f32 %v1322_v29, %v6305_v34  ;;  %v6323_v43 = vpop.f32.mrb[18].mxu1  ;;  %v1324_v39 = vpop.f32.mrb[18].mxu0 }
 0x1bc   : > { %v6331_v46 = vadd.f32 %v1324_v39, %v6296_v32  ;;  %v6333_v47 = vpop.f32.mrb[19].mxu1  ;;  %v1326_v48 = vpop.f32.mrb[19].mxu0 }
 0x1bd   : > { %v6341_v53 = vadd.f32 %v1326_v48, %v6305_v34 }
 0x1c1   : > { %v6347_v0 = vpop.f32.mrb[20].mxu1  ;;  %v1330_v59 = vpop.f32.mrb[20].mxu0 }
 0x1c2   : > { %v6353_v30 = vadd.f32 %v1330_v59, %v6296_v32  ;;  %v6355_v40 = vpop.f32.mrb[21].mxu1  ;;  %v1332_v7 = vpop.f32.mrb[21].mxu0 }
 0x1c3   : > { %v6361_v29 = vadd.f32 %v1332_v7, %v6305_v34  ;;  %v6363_v39 = vpop.f32.mrb[22].mxu1  ;;  %v1334_v48 = vpop.f32.mrb[22].mxu0  ;;  %v6378_v7 = vadd.f32 %v6241_v50, %v6300_v33 }
 0x1c4   : > { %v6372_v59 = vadd.f32 %v1334_v48, %v6296_v32  ;;  %v6374_v22 = vpop.f32.mrb[23].mxu1  ;;  %v1336_v63 = vpop.f32.mrb[23].mxu0 }
 0x1c5   : > { %8038 = vst [vmem:[#allocation19_spill] sm:$0xff] %v6361_v29  ;;  %8039 = vst [vmem:[#allocation20_spill] sm:$0xff] %v6378_v7  ;;  %v6383_v55 = vadd.f32 %v1336_v63, %v6305_v34  ;;  %v6402_v29 = vadd.f32 %v6249_v8, %v6300_v33 }
 0x1c7   : > { %8040 = vst [vmem:[#allocation21_spill] sm:$0xff] %v6383_v55 }
 0x1c9   : > { %v6389_v61 = vpop.f32.mrb[24].mxu1  ;;  %v1340_v51 = vpop.f32.mrb[24].mxu0 }
 0x1ca   : > { %8041 = vst [vmem:[#allocation22_spill] sm:$0xff] %v6389_v61  ;;  %v6396_v50 = vadd.f32 %v1340_v51, %v6296_v32  ;;  %v6398_v57 = vpop.f32.mrb[25].mxu1  ;;  %v1342_v63 = vpop.f32.mrb[25].mxu0 }
 0x1cb   : > { %8044 = vst [vmem:[#allocation25_spill] sm:$0xff] %v6398_v57  ;;  %v6405_v2 = vadd.f32 %v1342_v63, %v6305_v34  ;;  %v6407_v48 = vpop.f32.mrb[26].mxu1  ;;  %v1344_v61 = vpop.f32.mrb[26].mxu0  ;;  %v6422_v63 = vadd.f32 %v6257_v12, %v6300_v33 }
 0x1cc   : > { %8043 = vst [vmem:[#allocation24_spill] sm:$0xff] %v6396_v50  ;;  %8046 = vst [vmem:[#allocation27_spill] sm:$0xff] %v6407_v48  ;;  %v6416_v57 = vadd.f32 %v1344_v61, %v6296_v32  ;;  %v6418_v55 = vpop.f32.mrb[27].mxu1  ;;  %v1346_v8 = vpop.f32.mrb[27].mxu0 }
 0x1cd   : > { %8045 = vst [vmem:[#allocation26_spill] sm:$0xff] %v6405_v2  ;;  %8047 = vst [vmem:[#allocation28_spill] sm:$0xff] %v6422_v63  ;;  %v6427_v7 = vadd.f32 %v1346_v8, %v6305_v34  ;;  %v6446_v2 = vadd.f32 %v6270_v18, %v6300_v33 }
 0x1cf   : > { %8048 = vst [vmem:[#allocation29_spill] sm:$0xff] %v6427_v7 }
 0x1d1   : > { %v6433_v51 = vpop.f32.mrb[28].mxu1  ;;  %v1350_v50 = vpop.f32.mrb[28].mxu0 }
 0x1d2   : > { %8049 = vst [vmem:[#allocation30_spill] sm:$0xff] %v6433_v51  ;;  %v6440_v12 = vadd.f32 %v1350_v50, %v6296_v32  ;;  %v6442_v48 = vpop.f32.mrb[29].mxu1  ;;  %v1352_v8 = vpop.f32.mrb[29].mxu0 }
 0x1d3   : > { %8052 = vst [vmem:[#allocation33_spill] sm:$0xff] %v6442_v48  ;;  %v6449_v10 = vadd.f32 %v1352_v8, %v6305_v34  ;;  %v6451_v61 = vpop.f32.mrb[30].mxu1  ;;  %v1354_v51 = vpop.f32.mrb[30].mxu0  ;;  %v6466_v8 = vadd.f32 %v6285_v28, %v6300_v33 }
 0x1d4   : > { %8051 = vst [vmem:[#allocation32_spill] sm:$0xff] %v6440_v12  ;;  %8054 = vst [vmem:[#allocation35_spill] sm:$0xff] %v6451_v61  ;;  %v6460_v48 = vadd.f32 %v1354_v51, %v6296_v32  ;;  %v6462_v7 = vpop.f32.mrb[31].mxu1  ;;  %v1356_v18 = vpop.f32.mrb[31].mxu0 }
 0x1d5   : > { %8053 = vst [vmem:[#allocation34_spill] sm:$0xff] %v6449_v10  ;;  %8055 = vst [vmem:[#allocation36_spill] sm:$0xff] %v6466_v8  ;;  %v6471_v63 = vadd.f32 %v1356_v18, %v6305_v34  ;;  %v6490_v10 = vadd.f32 %v6226_v54, %v6300_v33 }
 0x1d7   : > { %8056 = vst [vmem:[#allocation37_spill] sm:$0xff] %v6471_v63 }
 0x1d9   : > { %v6477_v50 = vpop.f32.mrb[32].mxu1  ;;  %v1360_v12 = vpop.f32.mrb[32].mxu0 }
 0x1da   : > { %8057 = vst [vmem:[#allocation38_spill] sm:$0xff] %v6477_v50  ;;  %v6484_v28 = vadd.f32 %v1360_v12, %v6296_v32  ;;  %v6486_v61 = vpop.f32.mrb[33].mxu1  ;;  %v1362_v18 = vpop.f32.mrb[33].mxu0 }
 0x1db   : > { %8060 = vst [vmem:[#allocation41_spill] sm:$0xff] %v6486_v61  ;;  %v6493_v25 = vadd.f32 %v1362_v18, %v6305_v34  ;;  %v6495_v51 = vpop.f32.mrb[34].mxu1  ;;  %v1364_v50 = vpop.f32.mrb[34].mxu0  ;;  %v6510_v18 = vadd.f32 %v6230_v58, %v6300_v33 }
 0x1dc   : > { %8059 = vst [vmem:[#allocation40_spill] sm:$0xff] %v6484_v28  ;;  %8062 = vst [vmem:[#allocation43_spill] sm:$0xff] %v6495_v51  ;;  %v6504_v61 = vadd.f32 %v1364_v50, %v6296_v32  ;;  %v6506_v63 = vpop.f32.mrb[35].mxu1  ;;  %v1366_v54 = vpop.f32.mrb[35].mxu0 }
 0x1dd   : > { %8061 = vst [vmem:[#allocation42_spill] sm:$0xff] %v6493_v25  ;;  %8063 = vst [vmem:[#allocation44_spill] sm:$0xff] %v6510_v18  ;;  %v6515_v8 = vadd.f32 %v1366_v54, %v6305_v34  ;;  %v6534_v25 = vadd.f32 %v6235_v1, %v6300_v33 }
 0x1df   : > { %8064 = vst [vmem:[#allocation45_spill] sm:$0xff] %v6515_v8 }
 0x1e1   : > { %v6521_v12 = vpop.f32.mrb[36].mxu1  ;;  %v1370_v28 = vpop.f32.mrb[36].mxu0 }
 0x1e2   : > { %8065 = vst [vmem:[#allocation46_spill] sm:$0xff] %v6521_v12  ;;  %v6528_v58 = vadd.f32 %v1370_v28, %v6296_v32  ;;  %v6530_v51 = vpop.f32.mrb[37].mxu1  ;;  %v1372_v54 = vpop.f32.mrb[37].mxu0 }
 0x1e3   : > { %8068 = vst [vmem:[#allocation49_spill] sm:$0xff] %v6530_v51  ;;  %v6537_v56 = vadd.f32 %v1372_v54, %v6305_v34  ;;  %v6539_v50 = vpop.f32.mrb[38].mxu1  ;;  %v1374_v12 = vpop.f32.mrb[38].mxu0  ;;  %v6554_v54 = vadd.f32 %v6243_v4, %v6300_v33 }
 0x1e4   : > { %8067 = vst [vmem:[#allocation48_spill] sm:$0xff] %v6528_v58  ;;  %8070 = vst [vmem:[#allocation51_spill] sm:$0xff] %v6539_v50  ;;  %v6548_v51 = vadd.f32 %v1374_v12, %v6296_v32  ;;  %v6550_v8 = vpop.f32.mrb[39].mxu1  ;;  %v1376_v1 = vpop.f32.mrb[39].mxu0 }
 0x1e5   : > { %8069 = vst [vmem:[#allocation50_spill] sm:$0xff] %v6537_v56  ;;  %8071 = vst [vmem:[#allocation52_spill] sm:$0xff] %v6554_v54  ;;  %v6559_v18 = vadd.f32 %v1376_v1, %v6305_v34  ;;  %v6578_v56 = vadd.f32 %v6251_v9, %v6300_v33 }
 0x1e7   : > { %8072 = vst [vmem:[#allocation53_spill] sm:$0xff] %v6559_v18  ;;  %8077 = vst [vmem:[#allocation58_spill] sm:$0xff] %v6578_v56 }
 0x1e9   : > { %v6565_v28 = vpop.f32.mrb[40].mxu1  ;;  %v1380_v58 = vpop.f32.mrb[40].mxu0 }
 0x1ea   : > { %8073 = vst [vmem:[#allocation54_spill] sm:$0xff] %v6565_v28  ;;  %v6572_v4 = vadd.f32 %v1380_v58, %v6296_v32  ;;  %v6574_v50 = vpop.f32.mrb[41].mxu1  ;;  %v1382_v1 = vpop.f32.mrb[41].mxu0  ;;  %v6610_v58 = vsub.s32 2, %v6261_v14 }
 0x1eb   : > { %8076 = vst [vmem:[#allocation57_spill] sm:$0xff] %v6574_v50  ;;  %v6581_v3 = vadd.f32 %v1382_v1, %v6305_v34  ;;  %v6583_v12 = vpop.f32.mrb[42].mxu1  ;;  %v1384_v28 = vpop.f32.mrb[42].mxu0  ;;  %v6598_v1 = vadd.f32 %v6259_v13, %v6300_v33  ;;  %v6616_v13 = vadd.f32 %v6265_v16, %v6291_v31 }
 0x1ec   : > { %8075 = vst [vmem:[#allocation56_spill] sm:$0xff] %v6572_v4  ;;  %8079 = vst [vmem:[#allocation60_spill] sm:$0xff] %v6583_v12  ;;  %v6592_v50 = vadd.f32 %v1384_v28, %v6296_v32  ;;  %v6594_v18 = vpop.f32.mrb[43].mxu1  ;;  %v1386_v9 = vpop.f32.mrb[43].mxu0  ;;  %v6619_v12 = vsub.s32 3, %v6261_v14  ;;  %v498_v28 = vsub.s32 6, %v6261_v14 }
 0x1ed   : > { %8078 = vst [vmem:[#allocation59_spill] sm:$0xff] %v6581_v3  ;;  %8082 = vst [vmem:[#allocation63_spill] sm:$0xff] %v6598_v1  ;;  %v6603_v54 = vadd.f32 %v1386_v9, %v6305_v34 }
 0x1ee   : > { %8081 = vst [vmem:[#allocation62_spill] sm:$0xff] %v6592_v50  ;;  %8084 = vst [vmem:[#allocation65_spill] sm:$0xff] %v6610_v58 }
 0x1ef   : > { %8083 = vst [vmem:[#allocation64_spill] sm:$0xff] %v6603_v54  ;;  %8086 = vst [vmem:[#allocation67_spill] sm:$0xff] %v6619_v12  ;;  %v6629_v54 = vadd.f32 %v6272_v21, %v6300_v33 }
 0x1f1   : > { %v6612_v4 = vpop.f32.mrb[44].mxu1  ;;  %v1390_v45 = vpop.f32.mrb[44].mxu0  ;;  %8089 = vst [vmem:[#allocation70_spill] sm:$0xff] %v6629_v54 }
 0x1f2   : > { %8085 = vst [vmem:[#allocation66_spill] sm:$0xff] %v6612_v4  ;;  %v6622_v9 = vadd.f32 %v1390_v45, %v6296_v32  ;;  %v6624_v11 = vpop.f32.mrb[45].mxu1  ;;  %v1392_v50 = vpop.f32.mrb[45].mxu0  ;;  %v502_v45 = vsub.s32 7, %v6261_v14  ;;  %v6656_v14 = vrot.slane %v6275_v23, %v6610_v58 }
 0x1f3   : > { %8088 = vst [vmem:[#allocation69_spill] sm:$0xff] %v6624_v11  ;;  %v6632_v4 = vadd.f32 %v1392_v50, %v6305_v34  ;;  %v6634_v16 = vpop.f32.mrb[46].mxu1  ;;  %v1394_v1 = vpop.f32.mrb[46].mxu0  ;;  %v6641_v11 = vadd.f32 %v6282_v26, %v6291_v31 }
 0x1f4   : > { %8087 = vst [vmem:[#allocation68_spill] sm:$0xff] %v6622_v9  ;;  %8091 = vst [vmem:[#allocation72_spill] sm:$0xff] %v6634_v16  ;;  %v6646_v21 = vadd.f32 %v1394_v1, %v6296_v32  ;;  %v6648_v56 = vpop.f32.mrb[47].mxu1  ;;  %v1396_v50 = vpop.f32.mrb[47].mxu0  ;;  %v6652_v16 = vadd.f32 %v6287_v20, %v6300_v33  ;;  %v6665_v32 = vrot.slane %v6275_v23, %v6619_v12 }
 0x1f5   : > { %8090 = vst [vmem:[#allocation71_spill] sm:$0xff] %v6632_v4  ;;  %8092 = vst [vmem:[#allocation73_spill] sm:$0xff] %v6641_v11  ;;  %v6661_v31 = vadd.f32 %v1396_v50, %v6305_v34  ;;  %v6670_v20 = vrot.slane %v6275_v23, %v498_v28  ;;  %v6674_v33 = vrot.slane %v6636_v6, %v6268_v17 }
 0x1f6   : > { %8093 = vst [vmem:[#allocation74_spill] sm:$0xff] %v6646_v21  ;;  %8094 = vst [vmem:[#allocation75_spill] sm:$0xff] %v6652_v16  ;;  %v6679_v34 = vrot.slane %v6275_v23, %v502_v45  ;;  %v6683_v50 = vrot.slane %v6636_v6, %v6278_v24  ;;  %v6687_v28 = vadd.f32 %v6307_v35, %v6656_v14 }
 0x1f7   : > { %8095 = vst [vmem:[#allocation76_spill] sm:$0xff] %v6661_v31  ;;  %v6691_v1 = vadd.f32 %v6315_v38, %v6665_v32  ;;  %v6699_v24 = vadd.f32 %v6323_v43, %v6656_v14  ;;  %v6703_v31 = vadd.f32 %v6333_v47, %v6665_v32  ;;  %v8096_v21 = vmax.f32 %v6310_v19, %v6313_v37 }
 0x1f9   : > { %v1433_v3 = vpop.f32.mrb[48].mxu1  ;;  %v1546_v12 = vpop.f32.mrb[48].mxu0 }
 0x1fa   : > { %v6694_v17 = vadd.f32 %v1433_v3, %v6670_v20  ;;  %v1547_v23 = vadd.f32 %v1546_v12, %v6674_v33  ;;  %v1435_v45 = vpop.f32.mrb[49].mxu1  ;;  %v1548_v26 = vpop.f32.mrb[49].mxu0 }
 0x1fb   : > { %v6706_v35 = vadd.f32 %v1435_v45, %v6679_v34  ;;  %v1549_v38 = vadd.f32 %v1548_v26, %v6683_v50  ;;  %v1437_v16 = vpop.f32.mrb[50].mxu1  ;;  %v1550_v3 = vpop.f32.mrb[50].mxu0  ;;  %v8097_v26 = vmax.f32 %v6318_v41, %v6321_v42 }
 0x1fc   : > { %v1802_v11 = vmax.f32 %v8096_v21, %v1547_v23  ;;  %v6715_v43 = vadd.f32 %v1437_v16, %v6670_v20  ;;  %v1551_v47 = vadd.f32 %v1550_v3, %v6674_v33  ;;  %v1439_v4 = vpop.f32.mrb[51].mxu1  ;;  %v1552_v54 = vpop.f32.mrb[51].mxu0  ;;  %v8099_v16 = vmax.f32 %v6326_v44, %v6331_v46 }
 0x1fd   : > { %v1803_v9 = vmax.f32 %v8097_v26, %v1549_v38  ;;  %v6724_v12 = vadd.f32 %v1439_v4, %v6679_v34  ;;  %v1553_v19 = vadd.f32 %v1552_v54, %v6683_v50  ;;  %v8100_v3 = vmax.f32 %v6336_v49, %v6341_v53 }
 0x1fe   : > { %v1806_v21 = vmax.f32 %v8099_v16, %v1551_v47  ;;  %v6741_v4 = vadd.f32 %v6347_v0, %v6656_v14  ;;  %v6747_v44 = vadd.f32 %v6355_v40, %v6665_v32  ;;  %v6751_v46 = vadd.f32 %v6363_v39, %v6656_v14  ;;  %v5310_v47 = vld [vmem:[#allocation8 + $0x300] ss:$24 sps:$4 sm:$0xff]  }
 0x1ff   : > { %8098 = vst [vmem:[#allocation77_spill] sm:$0xff] %v6724_v12  ;;  %v1807_v41 = vmax.f32 %v8100_v3, %v1553_v19  ;;  %v5313_v19 = vld [vmem:[#allocation8 + $0x308] ss:$24 sps:$4 sm:$0xff]   ;;  %v5318_v3 = vld [vmem:[#allocation8 + $0x334] ss:$24 sps:$4 sm:$0xff]  }
 0x200   : > { %v6737_v42 = vpack.c.bf16 %v1806_v21, %v1802_v11 }
 0x201   : > { %v1443_v54 = vpop.f32.mrb[52].mxu1  ;;  %v1556_v38 = vpop.f32.mrb[52].mxu0  ;;  %v6743_v26 = vpack.c.bf16 %v1807_v41, %v1803_v9  ;;  %v6759_v9 = vadd.f32 %v6374_v22, %v6665_v32  ;;  %v5321_v41 = vld [vmem:[#allocation8 + $0x33c] ss:$24 sps:$4 sm:$0xff]   ;;  %v8105_v22 = vmax.f32 %v6350_v60, %v6353_v30 }
 0x202   : > { %8101 = vst [vmem:[#allocation78_spill] sm:$0xff] %v6737_v42  ;;  %v6754_v49 = vadd.f32 %v1443_v54, %v6670_v20  ;;  %v1557_v53 = vadd.f32 %v1556_v38, %v6674_v33  ;;  %v1445_v11 = vpop.f32.mrb[53].mxu1  ;;  %v1558_v0 = vpop.f32.mrb[53].mxu0  ;;  %v8115_v30 = vld [vmem:[#allocation22_spill] sm:$0xff] }
 0x203   : > { %8102 = vst [vmem:[#allocation79_spill] sm:$0xff] %v6743_v26  ;;  %8104 = vst [vmem:[#allocation81_spill] sm:$0xff] %v6759_v9  ;;  %v6762_v40 = vadd.f32 %v1445_v11, %v6679_v34  ;;  %v1559_v16 = vadd.f32 %v1558_v0, %v6683_v50  ;;  %v1447_v39 = vpop.f32.mrb[54].mxu1  ;;  %v1560_v21 = vpop.f32.mrb[54].mxu0  ;;  %3114 = vmatprep.mubr.bf16.mxu0 %v6743_v26  ;;  %3340 = vmatprep.mubr.bf16.mxu1 %v6743_v26  ;;  %v8107_v26 = vld [vmem:[#allocation19_spill] sm:$0xff] }
 0x204   : > { %8103 = vst [vmem:[#allocation80_spill] sm:$0xff] %v6754_v49  ;;  %v1810_v38 = vmax.f32 %v8105_v22, %v1557_v53  ;;  %v6773_v11 = vadd.f32 %v1447_v39, %v6670_v20  ;;  %v1561_v0 = vadd.f32 %v1560_v21, %v6674_v33  ;;  %v1449_v23 = vpop.f32.mrb[55].mxu1  ;;  %v1562_v37 = vpop.f32.mrb[55].mxu0  ;;  %3115 = vmatmul.mubr.bf16.vlgmr.msra.gmra.mrb[80].mxu0 %v6737_v42  ;;  %v5316_v21 = vld [vmem:[#allocation8 + $0x330] ss:$24 sps:$4 sm:$0xff]  }
 0x205   : > { %v8108_v12 = vmax.f32 %v6358_v36, %v8107_v26  ;;  %v6783_v49 = vadd.f32 %v1449_v23, %v6679_v34  ;;  %v1563_v60 = vadd.f32 %v1562_v37, %v6683_v50  ;;  %3341 = vmatmul.mubr.bf16.vlgmr.msra.gmra.mrb[112].mxu1 %v6737_v42  ;;  %v8110_v53 = vmax.f32 %v6367_v27, %v6372_v59  ;;  %v5319_v22 = vld [vmem:[#allocation8 + $0x338] ss:$24 sps:$4 sm:$0xff]   ;;  %v8112_v23 = vld [vmem:[#allocation21_spill] sm:$0xff] }
 0x206   : > { %8106 = vst [vmem:[#allocation82_spill] sm:$0xff] %v6773_v11  ;;  %3196 = vmatpush1.bf16.msra.mxu0 %v5310_v47  ;;  %3422 = vmatpush1.bf16.msra.mxu1 %v5313_v19  ;;  %v6801_v45 = vadd.f32 %v8115_v30, %v6656_v14  ;;  %v8117_v27 = vld [vmem:[#allocation25_spill] sm:$0xff] }
 0x207   : > { %v1811_v54 = vmax.f32 %v8108_v12, %v1559_v16  ;;  %8109 = vst [vmem:[#allocation19_spill] sm:$0xff] %v6783_v49  ;;  %v1814_v39 = vmax.f32 %v8110_v53, %v1561_v0  ;;  %v8111_v12 = vld [vmem:[#allocation20_spill] sm:$0xff]  ;;  %3197 = vmatprep.subr.bf16.mxu0 %v5318_v3  ;;  %3423 = vmatprep.subr.bf16.mxu1 %v5321_v41  ;;  %v5330_v9 = vld [vmem:[#allocation8 + $0x394] ss:$24 sps:$4 sm:$0xff]  }
 0x208   : > { %v8113_v26 = vmax.f32 %v8111_v12, %v8112_v23  ;;  %8116 = vst [vmem:[#allocation21_spill] sm:$0xff] %v6801_v45  ;;  %v6805_v59 = vadd.f32 %v8117_v27, %v6665_v32  ;;  %v5324_v53 = vld [vmem:[#allocation8 + $0x364] ss:$24 sps:$4 sm:$0xff]   ;;  %v6819_v23 = vadd.f32 %v6418_v55, %v6665_v32 }
 0x209   : > { %v6797_v16 = vpack.c.bf16 %v1814_v39, %v1810_v38  ;;  %v1453_v47 = vpop.f32.mrb[56].mxu1  ;;  %v1566_v19 = vpop.f32.mrb[56].mxu0  ;;  %v8119_v12 = vld [vmem:[#allocation27_spill] sm:$0xff]  ;;  %v5327_v39 = vld [vmem:[#allocation8 + $0x36c] ss:$24 sps:$4 sm:$0xff]  }
 0x20a   : > { %v1815_v37 = vmax.f32 %v8113_v26, %v1563_v60  ;;  %v6811_v60 = vadd.f32 %v8119_v12, %v6656_v14  ;;  %v6814_v3 = vadd.f32 %v1453_v47, %v6670_v20  ;;  %v1567_v41 = vadd.f32 %v1566_v19, %v6674_v33  ;;  %3198 = vmatpush1.bf16.msra.mxu0 %v5316_v21  ;;  %v1455_v38 = vpop.f32.mrb[57].mxu1  ;;  %v1568_v30 = vpop.f32.mrb[57].mxu0  ;;  %v5322_v21 = vld [vmem:[#allocation8 + $0x360] ss:$24 sps:$4 sm:$0xff]   ;;  %v8124_v47 = vld [vmem:[#allocation26_spill] sm:$0xff] }
 0x20b   : > { %8114 = vst [vmem:[#allocation20_spill] sm:$0xff] %v6797_v16  ;;  %3424 = vmatpush1.bf16.msra.mxu1 %v5319_v22  ;;  %v1569_v26 = vadd.f32 %v1568_v30, %v6683_v50  ;;  %v1570_v27 = vpop.f32.mrb[58].mxu0  ;;  %v5325_v22 = vld [vmem:[#allocation8 + $0x368] ss:$24 sps:$4 sm:$0xff]   ;;  %v8121_v19 = vld [vmem:[#allocation23_spill] sm:$0xff]  ;;  %3199 = vmatprep.subr.bf16.mxu0 %v5324_v53 }
 0x20c   : > { %v6807_v0 = vpack.c.bf16 %v1815_v37, %v1811_v54  ;;  %8120 = vst [vmem:[#allocation25_spill] sm:$0xff] %v6814_v3  ;;  %v6822_v54 = vadd.f32 %v1455_v38, %v6679_v34  ;;  %v1457_v37 = vpop.f32.mrb[58].mxu1  ;;  %v8122_v12 = vld [vmem:[#allocation24_spill] sm:$0xff]  ;;  %v1571_v30 = vadd.f32 %v1570_v27, %v6674_v33  ;;  %v1572_v49 = vpop.f32.mrb[59].mxu0  ;;  %v8125_v3 = vmax.f32 %v6402_v29, %v8124_v47  ;;  %v5331_v53 = vld [vmem:[#allocation8 + $0x398] ss:$24 sps:$4 sm:$0xff]  }
 0x20d   : > { %v8123_v55 = vmax.f32 %v8121_v19, %v8122_v12  ;;  %v6833_v38 = vadd.f32 %v1457_v37, %v6670_v20  ;;  %v1459_v42 = vpop.f32.mrb[59].mxu1  ;;  %v1573_v37 = vadd.f32 %v1572_v49, %v6683_v50  ;;  %v8127_v19 = vmax.f32 %v6411_v5, %v6416_v57  ;;  %3425 = vmatprep.subr.bf16.mxu1 %v5327_v39  ;;  %v5328_v49 = vld [vmem:[#allocation8 + $0x390] ss:$24 sps:$4 sm:$0xff]  }
 0x20e   : > { %8118 = vst [vmem:[#allocation22_spill] sm:$0xff] %v6807_v0  ;;  %3124 = vmatprep.mubr.bf16.mxu0 %v6807_v0  ;;  %3350 = vmatprep.mubr.bf16.mxu1 %v6807_v0  ;;  %v5333_v0 = vld [vmem:[#allocation8 + $0x39c] ss:$24 sps:$4 sm:$0xff]   ;;  %v1819_v45 = vmax.f32 %v8125_v3, %v1569_v26  ;;  %v8128_v3 = vld [vmem:[#allocation28_spill] sm:$0xff]  ;;  %v8129_v26 = vld [vmem:[#allocation29_spill] sm:$0xff] }
 0x20f   : > { %v1818_v36 = vmax.f32 %v8123_v55, %v1567_v41  ;;  %3125 = vmatmul.mubr.bf16.gmra.mrb[84].mxu0 %v6797_v16  ;;  %v6843_v41 = vadd.f32 %v1459_v42, %v6679_v34  ;;  %v1822_v12 = vmax.f32 %v8127_v19, %v1571_v30  ;;  %3351 = vmatmul.mubr.bf16.gmra.mrb[116].mxu1 %v6797_v16  ;;  %v8132_v57 = vld [vmem:[#allocation30_spill] sm:$0xff]  ;;  %v8135_v29 = vld [vmem:[#allocation33_spill] sm:$0xff] }
 0x210   : > { %v8130_v42 = vmax.f32 %v8128_v3, %v8129_v26  ;;  %3200 = vmatpush1.bf16.msra.mxu0 %v5322_v21  ;;  %3426 = vmatpush1.bf16.msra.mxu1 %v5325_v22  ;;  %v6861_v5 = vadd.f32 %v8132_v57, %v6656_v14  ;;  %v6867_v3 = vadd.f32 %v8135_v29, %v6665_v32  ;;  %v8136_v21 = vld [vmem:[#allocation35_spill] sm:$0xff]  ;;  %v5339_v57 = vld [vmem:[#allocation8 + $0x3cc] ss:$24 sps:$4 sm:$0xff]   ;;  %v5337_v16 = vld [vmem:[#allocation8 + $0x3c8] ss:$24 sps:$4 sm:$0xff]  }
 0x211   : > { %8126 = vst [vmem:[#allocation27_spill] sm:$0xff] %v6843_v41  ;;  %3201 = vmatprep.subr.bf16.mxu0 %v5330_v9  ;;  %3427 = vmatprep.subr.bf16.mxu1 %v5333_v0  ;;  %v6857_v55 = vpack.c.bf16 %v1822_v12, %v1818_v36  ;;  %v1463_v39 = vpop.f32.mrb[60].mxu1  ;;  %v1576_v30 = vpop.f32.mrb[60].mxu0  ;;  %v6871_v22 = vadd.f32 %v8136_v21, %v6656_v14  ;;  %v5336_v12 = vld [vmem:[#allocation8 + $0x3c4] ss:$24 sps:$4 sm:$0xff]  }
 0x212   : > { %v1823_v47 = vmax.f32 %v8130_v42, %v1573_v37  ;;  %8133 = vst [vmem:[#allocation24_spill] sm:$0xff] %v6861_v5  ;;  %v6874_v9 = vadd.f32 %v1463_v39, %v6670_v20  ;;  %v1577_v36 = vadd.f32 %v1576_v30, %v6674_v33  ;;  %v1465_v0 = vpop.f32.mrb[61].mxu1  ;;  %v1578_v37 = vpop.f32.mrb[61].mxu0  ;;  %v8140_v30 = vld [vmem:[#allocation31_spill] sm:$0xff]  ;;  %v8141_v21 = vld [vmem:[#allocation32_spill] sm:$0xff]  ;;  %v8144_v39 = vld [vmem:[#allocation34_spill] sm:$0xff] }
 0x213   : > { %8131 = vst [vmem:[#allocation23_spill] sm:$0xff] %v6857_v55  ;;  %8137 = vst [vmem:[#allocation28_spill] sm:$0xff] %v6871_v22  ;;  %v6882_v29 = vadd.f32 %v1465_v0, %v6679_v34  ;;  %v1579_v26 = vadd.f32 %v1578_v37, %v6683_v50  ;;  %v1467_v42 = vpop.f32.mrb[62].mxu1  ;;  %v8142_v27 = vmax.f32 %v8140_v30, %v8141_v21  ;;  %v5334_v37 = vld [vmem:[#allocation8 + $0x3c0] ss:$24 sps:$4 sm:$0xff]  }
 0x214   : > { %v6863_v19 = vpack.c.bf16 %v1823_v47, %v1819_v45  ;;  %8138 = vst [vmem:[#allocation29_spill] sm:$0xff] %v6874_v9  ;;  %v6879_v45 = vadd.f32 %v6462_v7, %v6665_v32  ;;  %3202 = vmatpush1.bf16.msra.mxu0 %v5328_v49  ;;  %3428 = vmatpush1.bf16.msra.mxu1 %v5331_v53  ;;  %v1580_v47 = vpop.f32.mrb[62].mxu0  ;;  %v1469_v53 = vpop.f32.mrb[63].mxu1  ;;  %v5343_v30 = vld [vmem:[#allocation8 + $0x3f8] ss:$24 sps:$4 sm:$0xff]  }
 0x215   : > { %v1826_v11 = vmax.f32 %v8142_v27, %v1577_v36  ;;  %v6891_v7 = vadd.f32 %v1467_v42, %v6670_v20  ;;  %v1581_v49 = vadd.f32 %v1580_v47, %v6674_v33  ;;  %v1582_v0 = vpop.f32.mrb[63].mxu0  ;;  %v8145_v9 = vmax.f32 %v6446_v2, %v8144_v39  ;;  %v5342_v42 = vld [vmem:[#allocation8 + $0x3f4] ss:$24 sps:$4 sm:$0xff]   ;;  %3203 = vmatprep.subr.bf16.mxu0 %v5336_v12 }
 0x216   : > { %8134 = vst [vmem:[#allocation26_spill] sm:$0xff] %v6863_v19  ;;  %8139 = vst [vmem:[#allocation30_spill] sm:$0xff] %v6879_v45  ;;  %3134 = vmatprep.mubr.bf16.mxu0 %v6863_v19  ;;  %3360 = vmatprep.mubr.bf16.mxu1 %v6863_v19  ;;  %v6902_v27 = vadd.f32 %v1469_v53, %v6679_v34  ;;  %v1583_v36 = vadd.f32 %v1582_v0, %v6683_v50  ;;  %v5345_v47 = vld [vmem:[#allocation8 + $0x3fc] ss:$24 sps:$4 sm:$0xff]   ;;  %v5340_v0 = vld [vmem:[#allocation8 + $0x3f0] ss:$24 sps:$4 sm:$0xff]  }
 0x217   : > { %8143 = vst [vmem:[#allocation33_spill] sm:$0xff] %v6891_v7  ;;  %v1827_v5 = vmax.f32 %v8145_v9, %v1579_v26  ;;  %v8147_v21 = vmax.f32 %v6455_v15, %v6460_v48  ;;  %3135 = vmatmul.mubr.bf16.gmra.mrb[88].mxu0 %v6857_v55  ;;  %v8148_v9 = vld [vmem:[#allocation36_spill] sm:$0xff]  ;;  %v8149_v26 = vld [vmem:[#allocation37_spill] sm:$0xff]  ;;  %3361 = vmatmul.mubr.bf16.gmra.mrb[120].mxu1 %v6857_v55  ;;  %v8152_v48 = vld [vmem:[#allocation38_spill] sm:$0xff] }
 0x218   : > { %8146 = vst [vmem:[#allocation35_spill] sm:$0xff] %v6902_v27  ;;  %v8150_v39 = vmax.f32 %v8148_v9, %v8149_v26  ;;  %3429 = vmatprep.subr.bf16.mxu1 %v5339_v57  ;;  %3204 = vmatpush1.bf16.msra.mxu0 %v5334_v37  ;;  %v6921_v15 = vadd.f32 %v8152_v48, %v6656_v14  ;;  %v8154_v9 = vld [vmem:[#allocation41_spill] sm:$0xff]  ;;  %v5346_v27 = vld [vmem:[#allocation8 + $0x420] ss:$24 sps:$4 sm:$0xff]  }
 0x219   : > { %v1830_v41 = vmax.f32 %v8147_v21, %v1581_v49  ;;  %3430 = vmatpush1.bf16.msra.mxu1 %v5337_v16  ;;  %3205 = vmatprep.subr.bf16.mxu0 %v5342_v42  ;;  %v1473_v12 = vpop.f32.mrb[64].mxu1  ;;  %v1586_v49 = vpop.f32.mrb[64].mxu0  ;;  %v6927_v57 = vadd.f32 %v8154_v9, %v6665_v32  ;;  %v8155_v16 = vld [vmem:[#allocation43_spill] sm:$0xff]  ;;  %v5351_v26 = vld [vmem:[#allocation8 + $0x42c] ss:$24 sps:$4 sm:$0xff]  }
 0x21a   : > { %v1831_v53 = vmax.f32 %v8150_v39, %v1583_v36  ;;  %3431 = vmatprep.subr.bf16.mxu1 %v5345_v47  ;;  %v5348_v36 = vld [vmem:[#allocation8 + $0x424] ss:$24 sps:$4 sm:$0xff]   ;;  %v6931_v37 = vadd.f32 %v8155_v16, %v6656_v14  ;;  %v1475_v42 = vpop.f32.mrb[65].mxu1  ;;  %v1588_v47 = vpop.f32.mrb[65].mxu0  ;;  %v5349_v45 = vld [vmem:[#allocation8 + $0x428] ss:$24 sps:$4 sm:$0xff]  }
 0x21b   : > { %v6917_v19 = vpack.c.bf16 %v1830_v41, %v1826_v11  ;;  %v6934_v11 = vadd.f32 %v1473_v12, %v6670_v20  ;;  %v1587_v41 = vadd.f32 %v1586_v49, %v6674_v33  ;;  %v6942_v39 = vadd.f32 %v1475_v42, %v6679_v34  ;;  %v1477_v48 = vpop.f32.mrb[66].mxu1  ;;  %v1590_v9 = vpop.f32.mrb[66].mxu0  ;;  %v8159_v49 = vld [vmem:[#allocation39_spill] sm:$0xff]  ;;  %v8160_v16 = vld [vmem:[#allocation40_spill] sm:$0xff] }
 0x21c   : > { %v6923_v21 = vpack.c.bf16 %v1831_v53, %v1827_v5  ;;  %8156 = vst [vmem:[#allocation34_spill] sm:$0xff] %v6931_v37  ;;  %v6939_v5 = vadd.f32 %v6506_v63, %v6665_v32  ;;  %v1589_v53 = vadd.f32 %v1588_v47, %v6683_v50  ;;  %v8161_v2 = vmax.f32 %v8159_v49, %v8160_v16  ;;  %v1479_v42 = vpop.f32.mrb[67].mxu1  ;;  %v1592_v47 = vpop.f32.mrb[67].mxu0  ;;  %v5352_v16 = vld [vmem:[#allocation8 + $0x450] ss:$24 sps:$4 sm:$0xff]  }
 0x21d   : > { %8151 = vst [vmem:[#allocation31_spill] sm:$0xff] %v6917_v19  ;;  %8157 = vst [vmem:[#allocation36_spill] sm:$0xff] %v6934_v11  ;;  %3206 = vmatpush1.bf16.msra.mxu0 %v5340_v0  ;;  %3432 = vmatpush1.bf16.msra.mxu1 %v5343_v30  ;;  %v6953_v63 = vadd.f32 %v1477_v48, %v6670_v20  ;;  %v1591_v11 = vadd.f32 %v1590_v9, %v6674_v33  ;;  %v5354_v30 = vld [vmem:[#allocation8 + $0x454] ss:$24 sps:$4 sm:$0xff]  }
 0x21e   : > { %8153 = vst [vmem:[#allocation32_spill] sm:$0xff] %v6923_v21  ;;  %8158 = vst [vmem:[#allocation37_spill] sm:$0xff] %v6939_v5  ;;  %3144 = vmatprep.mubr.bf16.mxu0 %v6923_v21  ;;  %3370 = vmatprep.mubr.bf16.mxu1 %v6923_v21  ;;  %v1834_v55 = vmax.f32 %v8161_v2, %v1587_v41  ;;  %v8163_v21 = vld [vmem:[#allocation42_spill] sm:$0xff]  ;;  %v6962_v2 = vadd.f32 %v1479_v42, %v6679_v34  ;;  %v8179_v41 = vld [vmem:[#allocation48_spill] sm:$0xff] }
 0x21f   : > { %8162 = vst [vmem:[#allocation38_spill] sm:$0xff] %v6953_v63  ;;  %v8164_v22 = vmax.f32 %v6490_v10, %v8163_v21  ;;  %3207 = vmatprep.subr.bf16.mxu0 %v5348_v36  ;;  %v5357_v0 = vld [vmem:[#allocation8 + $0x45c] ss:$24 sps:$4 sm:$0xff]   ;;  %v1593_v48 = vadd.f32 %v1592_v47, %v6683_v50  ;;  %3145 = vmatmul.mubr.bf16.gmra.mrb[92].mxu0 %v6917_v19  ;;  %v8167_v36 = vld [vmem:[#allocation44_spill] sm:$0xff]  ;;  %v5355_v42 = vld [vmem:[#allocation8 + $0x458] ss:$24 sps:$4 sm:$0xff]  }
 0x220   : > { %8165 = vst [vmem:[#allocation41_spill] sm:$0xff] %v6962_v2  ;;  %3433 = vmatprep.subr.bf16.mxu1 %v5351_v26  ;;  %v8166_v10 = vmax.f32 %v6499_v52, %v6504_v61  ;;  %3371 = vmatmul.mubr.bf16.gmra.mrb[124].mxu1 %v6917_v19  ;;  %v8170_v47 = vld [vmem:[#allocation46_spill] sm:$0xff]  ;;  %v5358_v2 = vld [vmem:[#allocation8 + $0x480] ss:$24 sps:$4 sm:$0xff]  }
 0x221   : > { %v1835_v12 = vmax.f32 %v8164_v22, %v1589_v53  ;;  %v8168_v53 = vld [vmem:[#allocation45_spill] sm:$0xff]  ;;  %3208 = vmatpush1.bf16.msra.mxu0 %v5346_v27  ;;  %3434 = vmatpush1.bf16.msra.mxu1 %v5349_v45  ;;  %v6979_v26 = vadd.f32 %v8170_v47, %v6656_v14  ;;  %v1483_v61 = vpop.f32.mrb[68].mxu1  ;;  %v1596_v52 = vpop.f32.mrb[68].mxu0  ;;  %v8182_v63 = vld [vmem:[#allocation50_spill] sm:$0xff] }
 0x222   : > { %v1838_v22 = vmax.f32 %v8166_v10, %v1591_v11  ;;  %v8169_v9 = vmax.f32 %v8167_v36, %v8168_v53  ;;  %3209 = vmatprep.subr.bf16.mxu0 %v5354_v30  ;;  %3435 = vmatprep.subr.bf16.mxu1 %v5357_v0  ;;  %v8172_v10 = vld [vmem:[#allocation49_spill] sm:$0xff]  ;;  %v1597_v45 = vadd.f32 %v1596_v52, %v6674_v33  ;;  %v1485_v27 = vpop.f32.mrb[69].mxu1  ;;  %v1598_v36 = vpop.f32.mrb[69].mxu0  ;;  %v8175_v30 = vld [vmem:[#allocation51_spill] sm:$0xff] }
 0x223   : > { %v6985_v21 = vadd.f32 %v8172_v10, %v6665_v32  ;;  %v6995_v0 = vadd.f32 %v8175_v30, %v6656_v14  ;;  %v1599_v47 = vadd.f32 %v1598_v36, %v6683_v50  ;;  %v1600_v52 = vpop.f32.mrb[70].mxu0  ;;  %v5363_v10 = vld [vmem:[#allocation8 + $0x48c] ss:$24 sps:$4 sm:$0xff]   ;;  %v5361_v5 = vld [vmem:[#allocation8 + $0x488] ss:$24 sps:$4 sm:$0xff]   ;;  %v8183_v37 = vmax.f32 %v6534_v25, %v8182_v63 }
 0x224   : > { %v1839_v49 = vmax.f32 %v8169_v9, %v1593_v48  ;;  %v6981_v11 = vpack.c.bf16 %v1838_v22, %v1834_v55  ;;  %v6988_v48 = vadd.f32 %v1483_v61, %v6670_v20  ;;  %v5360_v9 = vld [vmem:[#allocation8 + $0x484] ss:$24 sps:$4 sm:$0xff]   ;;  %v6999_v55 = vadd.f32 %v6550_v8, %v6665_v32  ;;  %v1487_v61 = vpop.f32.mrb[70].mxu1 }
 0x225   : > { %8176 = vst [vmem:[#allocation42_spill] sm:$0xff] %v6995_v0  ;;  %v7002_v22 = vadd.f32 %v1485_v27, %v6679_v34  ;;  %3210 = vmatpush1.bf16.msra.mxu0 %v5352_v16  ;;  %3436 = vmatpush1.bf16.msra.mxu1 %v5355_v42  ;;  %v7011_v8 = vadd.f32 %v1487_v61, %v6670_v20  ;;  %v1489_v19 = vpop.f32.mrb[71].mxu1  ;;  %v1602_v27 = vpop.f32.mrb[71].mxu0  ;;  %v8187_v61 = vld [vmem:[#allocation53_spill] sm:$0xff]  ;;  %v8197_v63 = vld [vmem:[#allocation56_spill] sm:$0xff] }
 0x226   : > { %8171 = vst [vmem:[#allocation43_spill] sm:$0xff] %v6981_v11  ;;  %8173 = vst [vmem:[#allocation39_spill] sm:$0xff] %v6988_v48  ;;  %v6991_v53 = vpack.c.bf16 %v1839_v49, %v1835_v12  ;;  %v8178_v49 = vld [vmem:[#allocation47_spill] sm:$0xff]  ;;  %v1843_v12 = vmax.f32 %v8183_v37, %v1599_v47  ;;  %v1601_v48 = vadd.f32 %v1600_v52, %v6674_v33  ;;  %3211 = vmatprep.subr.bf16.mxu0 %v5360_v9  ;;  %v8186_v47 = vld [vmem:[#allocation52_spill] sm:$0xff] }
 0x227   : > { %8177 = vst [vmem:[#allocation44_spill] sm:$0xff] %v6999_v55  ;;  %v8180_v7 = vmax.f32 %v8178_v49, %v8179_v41  ;;  %8181 = vst [vmem:[#allocation45_spill] sm:$0xff] %v7011_v8  ;;  %v5369_v41 = vld [vmem:[#allocation8 + $0x4bc] ss:$24 sps:$4 sm:$0xff]   ;;  %v7024_v42 = vadd.f32 %v1489_v19, %v6679_v34  ;;  %v8185_v25 = vmax.f32 %v6543_v62, %v6548_v51  ;;  %3437 = vmatprep.subr.bf16.mxu1 %v5363_v10  ;;  %v5364_v49 = vld [vmem:[#allocation8 + $0x4b0] ss:$24 sps:$4 sm:$0xff]  }
 0x228   : > { %8174 = vst [vmem:[#allocation40_spill] sm:$0xff] %v6991_v53  ;;  %3154 = vmatprep.mubr.bf16.mxu0 %v6991_v53  ;;  %3380 = vmatprep.mubr.bf16.mxu1 %v6991_v53  ;;  %v8188_v52 = vmax.f32 %v8186_v47, %v8187_v61  ;;  %v8189_v9 = vld [vmem:[#allocation54_spill] sm:$0xff]  ;;  %v8191_v10 = vld [vmem:[#allocation57_spill] sm:$0xff]  ;;  %v5370_v53 = vld [vmem:[#allocation8 + $0x4e0] ss:$24 sps:$4 sm:$0xff]  }
 0x229   : > { %v1842_v30 = vmax.f32 %v8180_v7, %v1597_v45  ;;  %v5366_v7 = vld [vmem:[#allocation8 + $0x4b4] ss:$24 sps:$4 sm:$0xff]   ;;  %8184 = vst [vmem:[#allocation46_spill] sm:$0xff] %v7024_v42  ;;  %v1603_v45 = vadd.f32 %v1602_v27, %v6683_v50  ;;  %3155 = vmatmul.mubr.bf16.gmra.mrb[96].mxu0 %v6981_v11  ;;  %v1846_v37 = vmax.f32 %v8185_v25, %v1601_v48  ;;  %v5367_v27 = vld [vmem:[#allocation8 + $0x4b8] ss:$24 sps:$4 sm:$0xff]   ;;  %v1493_v51 = vpop.f32.mrb[72].mxu1 }
 0x22a   : > { %3381 = vmatmul.mubr.bf16.gmra.mrb[128].mxu1 %v6981_v11  ;;  %3212 = vmatpush1.bf16.msra.mxu0 %v5358_v2  ;;  %v7039_v16 = vadd.f32 %v8189_v9, %v6656_v14  ;;  %v1606_v62 = vpop.f32.mrb[72].mxu0  ;;  %v7045_v25 = vadd.f32 %v8191_v10, %v6665_v32  ;;  %v1495_v2 = vpop.f32.mrb[73].mxu1  ;;  %v5375_v10 = vld [vmem:[#allocation8 + $0x4ec] ss:$24 sps:$4 sm:$0xff]   ;;  %v5373_v42 = vld [vmem:[#allocation8 + $0x4e8] ss:$24 sps:$4 sm:$0xff]  }
 0x22b   : > { %v1847_v19 = vmax.f32 %v8188_v52, %v1603_v45  ;;  %3438 = vmatpush1.bf16.msra.mxu1 %v5361_v5  ;;  %3213 = vmatprep.subr.bf16.mxu0 %v5366_v7  ;;  %v7041_v48 = vpack.c.bf16 %v1846_v37, %v1842_v30  ;;  %v7048_v45 = vadd.f32 %v1493_v51, %v6670_v20  ;;  %v1608_v47 = vpop.f32.mrb[73].mxu0  ;;  %v5372_v52 = vld [vmem:[#allocation8 + $0x4e4] ss:$24 sps:$4 sm:$0xff]   ;;  %v1497_v51 = vpop.f32.mrb[74].mxu1  ;;  %v8200_v55 = vld [vmem:[#allocation58_spill] sm:$0xff] }
 0x22c   : > { %3439 = vmatprep.subr.bf16.mxu1 %v5369_v41  ;;  %v1607_v5 = vadd.f32 %v1606_v62, %v6674_v33  ;;  %v8194_v7 = vld [vmem:[#allocation60_spill] sm:$0xff]  ;;  %v7059_v30 = vadd.f32 %v6594_v18, %v6665_v32  ;;  %v7062_v37 = vadd.f32 %v1495_v2, %v6679_v34  ;;  %v1609_v9 = vadd.f32 %v1608_v47, %v6683_v50  ;;  %v1610_v62 = vpop.f32.mrb[74].mxu0  ;;  %v1499_v11 = vpop.f32.mrb[75].mxu1  ;;  %v8201_v8 = vld [vmem:[#allocation59_spill] sm:$0xff] }
 0x22d   : > { %8190 = vst [vmem:[#allocation49_spill] sm:$0xff] %v7041_v48  ;;  %8192 = vst [vmem:[#allocation51_spill] sm:$0xff] %v7048_v45  ;;  %v7051_v61 = vpack.c.bf16 %v1847_v19, %v1843_v12  ;;  %v7055_v41 = vadd.f32 %v8194_v7, %v6656_v14  ;;  %v8196_v19 = vld [vmem:[#allocation55_spill] sm:$0xff]  ;;  %v7071_v18 = vadd.f32 %v1497_v51, %v6670_v20  ;;  %v1612_v2 = vpop.f32.mrb[75].mxu0  ;;  %v5387_v51 = vld [vmem:[#allocation8 + $0x54c] ss:$24 sps:$4 sm:$0xff]  }
 0x22e   : > { %8195 = vst [vmem:[#allocation48_spill] sm:$0xff] %v7059_v30  ;;  %v8198_v36 = vmax.f32 %v8196_v19, %v8197_v63  ;;  %3214 = vmatpush1.bf16.msra.mxu0 %v5364_v49  ;;  %v8202_v0 = vmax.f32 %v8200_v55, %v8201_v8  ;;  %v1611_v45 = vadd.f32 %v1610_v62, %v6674_v33  ;;  %v5381_v63 = vld [vmem:[#allocation8 + $0x51c] ss:$24 sps:$4 sm:$0xff]   ;;  %v8208_v19 = vld [vmem:[#allocation64_spill] sm:$0xff]  ;;  %v5379_v47 = vld [vmem:[#allocation8 + $0x518] ss:$24 sps:$4 sm:$0xff]  }
 0x22f   : > { %8193 = vst [vmem:[#allocation47_spill] sm:$0xff] %v7051_v61  ;;  %3440 = vmatpush1.bf16.msra.mxu1 %v5367_v27  ;;  %8199 = vst [vmem:[#allocation50_spill] sm:$0xff] %v7071_v18  ;;  %3164 = vmatprep.mubr.bf16.mxu0 %v7051_v61  ;;  %v7084_v27 = vadd.f32 %v1499_v11, %v6679_v34  ;;  %v8205_v55 = vld [vmem:[#allocation62_spill] sm:$0xff]  ;;  %v8207_v62 = vld [vmem:[#allocation63_spill] sm:$0xff] }
 0x230   : > { %v1850_v7 = vmax.f32 %v8198_v36, %v1607_v5  ;;  %v1851_v12 = vmax.f32 %v8202_v0, %v1609_v9  ;;  %3390 = vmatprep.mubr.bf16.mxu1 %v7051_v61  ;;  %v5378_v36 = vld [vmem:[#allocation8 + $0x514] ss:$24 sps:$4 sm:$0xff]   ;;  %v1613_v5 = vadd.f32 %v1612_v2, %v6683_v50  ;;  %3215 = vmatprep.subr.bf16.mxu0 %v5372_v52  ;;  %v5376_v2 = vld [vmem:[#allocation8 + $0x510] ss:$24 sps:$4 sm:$0xff]   ;;  %v8217_v30 = vld [vmem:[#allocation71_spill] sm:$0xff] }
 0x231   : > { %8203 = vst [vmem:[#allocation52_spill] sm:$0xff] %v7084_v27  ;;  %3165 = vmatmul.mubr.bf16.gmra.mrb[100].mxu0 %v7041_v48  ;;  %v8204_v0 = vld [vmem:[#allocation61_spill] sm:$0xff]  ;;  %3441 = vmatprep.subr.bf16.mxu1 %v5375_v10  ;;  %v8209_v49 = vmax.f32 %v8207_v62, %v8208_v19  ;;  %v8210_v52 = vld [vmem:[#allocation66_spill] sm:$0xff]  ;;  %v5384_v62 = vld [vmem:[#allocation8 + $0x544] ss:$24 sps:$4 sm:$0xff]   ;;  %v7123_v19 = vadd.f32 %v6648_v56, %v6665_v32 }
 0x232   : > { %v8206_v8 = vmax.f32 %v8204_v0, %v8205_v55  ;;  %3391 = vmatmul.mubr.bf16.gmra.mrb[132].mxu1 %v7041_v48  ;;  %3216 = vmatpush1.bf16.msra.mxu0 %v5370_v53  ;;  %v7099_v61 = vadd.f32 %v8210_v52, %v6656_v14  ;;  %v1616_v0 = vpop.f32.mrb[76].mxu0  ;;  %v7105_v55 = vrot.slane %v6636_v6, %v6610_v58  ;;  %v5385_v48 = vld [vmem:[#allocation8 + $0x548] ss:$24 sps:$4 sm:$0xff]   ;;  %v8216_v27 = vld [vmem:[#allocation70_spill] sm:$0xff] }
 0x233   : > { %v1855_v11 = vmax.f32 %v8209_v49, %v1613_v5  ;;  %3442 = vmatpush1.bf16.msra.mxu1 %v5373_v42  ;;  %3217 = vmatprep.subr.bf16.mxu0 %v5378_v36  ;;  %v8211_v49 = vld [vmem:[#allocation69_spill] sm:$0xff]  ;;  %v1617_v5 = vadd.f32 %v1616_v0, %v6674_v33  ;;  %v1618_v36 = vpop.f32.mrb[77].mxu0  ;;  %v8218_v18 = vmax.f32 %v8216_v27, %v8217_v30 }
 0x234   : > { %v1854_v9 = vmax.f32 %v8206_v8, %v1611_v45  ;;  %3443 = vmatprep.subr.bf16.mxu1 %v5381_v63  ;;  %v1503_v45 = vpop.f32.mrb[76].mxu1  ;;  %v7109_v53 = vadd.f32 %v8211_v49, %v6665_v32  ;;  %v1620_v0 = vpop.f32.mrb[78].mxu0  ;;  %v8219_v30 = vld [vmem:[#allocation73_spill] sm:$0xff] }
 0x235   : > { %v7112_v42 = vadd.f32 %v1503_v45, %v6670_v20  ;;  %v1505_v8 = vpop.f32.mrb[77].mxu1  ;;  %v7115_v63 = vpack.c.bf16 %v1855_v11, %v1851_v12  ;;  %v1619_v45 = vadd.f32 %v1618_v36, %v6683_v50  ;;  %v8214_v11 = vld [vmem:[#allocation68_spill] sm:$0xff] }
 0x236   : > { %v7101_v10 = vpack.c.bf16 %v1854_v9, %v1850_v7  ;;  %v8213_v7 = vld [vmem:[#allocation72_spill] sm:$0xff]  ;;  %v7126_v52 = vadd.f32 %v1505_v8, %v6679_v34  ;;  %v1507_v49 = vpop.f32.mrb[78].mxu1  ;;  %v8215_v58 = vmax.f32 %v6616_v13, %v8214_v11  ;;  %3218 = vmatpush1.bf16.msra.mxu0 %v5376_v2  ;;  %v1622_v8 = vpop.f32.mrb[79].mxu0  ;;  %v5393_v13 = vld [vmem:[#allocation8 + $0x57c] ss:$24 sps:$4 sm:$0xff]  }
 0x237   : > { %8212 = vst [vmem:[#allocation53_spill] sm:$0xff] %v7112_v42  ;;  %v7119_v9 = vadd.f32 %v8213_v7, %v6656_v14  ;;  %3444 = vmatpush1.bf16.msra.mxu1 %v5379_v47  ;;  %v7135_v56 = vadd.f32 %v1507_v49, %v6670_v20  ;;  %v1509_v32 = vpop.f32.mrb[79].mxu1  ;;  %v5382_v7 = vld [vmem:[#allocation8 + $0x540] ss:$24 sps:$4 sm:$0xff]   ;;  %v1859_v12 = vmax.f32 %v8218_v18, %v1619_v45  ;;  %v8220_v18 = vld [vmem:[#allocation74_spill] sm:$0xff] }
 0x238   : > { %v1858_v14 = vmax.f32 %v8215_v58, %v1617_v5  ;;  %v1797_v36 = vmax.f32 %v7109_v53, %v7126_v52  ;;  %v1621_v42 = vadd.f32 %v1620_v0, %v6674_v33  ;;  %3174 = vmatprep.mubr.bf16.mxu0 %v7115_v63  ;;  %3400 = vmatprep.mubr.bf16.mxu1 %v7115_v63  ;;  %v5390_v58 = vld [vmem:[#allocation8 + $0x574] ss:$24 sps:$4 sm:$0xff]   ;;  %v8222_v5 = vld [vmem:[#allocation67_spill] sm:$0xff]  ;;  %v8224_v0 = vld [vmem:[#allocation76_spill] sm:$0xff] }
 0x239   : > { %v1800_v20 = vmax.f32 %v7119_v9, %v7135_v56  ;;  %v7148_v47 = vadd.f32 %v1509_v32, %v6679_v34  ;;  %v1623_v2 = vadd.f32 %v1622_v8, %v6683_v50  ;;  %3175 = vmatmul.mubr.bf16.gmra.mrb[104].mxu0 %v7101_v10  ;;  %3219 = vmatprep.subr.bf16.mxu0 %v5384_v62  ;;  %v8223_v49 = vld [vmem:[#allocation75_spill] sm:$0xff]  ;;  %v5388_v62 = vld [vmem:[#allocation8 + $0x570] ss:$24 sps:$4 sm:$0xff]  }
 0x23a   : > { %v8221_v33 = vmax.f32 %v8219_v30, %v8220_v18  ;;  %3401 = vmatmul.mubr.bf16.gmra.mrb[136].mxu1 %v7101_v10  ;;  %3445 = vmatprep.subr.bf16.mxu1 %v5387_v51  ;;  %v7158_v45 = vrot.slane %v6636_v6, %v8222_v5  ;;  %v8225_v50 = vmax.f32 %v8223_v49, %v8224_v0  ;;  %v5391_v32 = vld [vmem:[#allocation8 + $0x578] ss:$24 sps:$4 sm:$0xff]   ;;  %v5396_v18 = vld [vmem:[#allocation8 + $0x5a4] ss:$24 sps:$4 sm:$0xff]  }
 0x23b   : > { %3220 = vmatpush1.bf16.msra.mxu0 %v5382_v7  ;;  %3446 = vmatpush1.bf16.msra.mxu1 %v5385_v48  ;;  %v5399_v49 = vld [vmem:[#allocation8 + $0x5ac] ss:$24 sps:$4 sm:$0xff]   ;;  %v8226_v48 = vmax.f32 %v6687_v28, %v6694_v17  ;;  %v5405_v17 = vld [vmem:[#allocation8 + $0x5dc] ss:$24 sps:$4 sm:$0xff]   ;;  %v8228_v28 = vmax.f32 %v6699_v24, %v6715_v43  ;;  %v5448_v9 = vld [vmem:[#allocation8 + $0x2b0] ss:$24 sps:$4 sm:$0xff]  }
 0x23c   : > { %v1862_v27 = vmax.f32 %v8221_v33, %v1621_v42  ;;  %v1863_v11 = vmax.f32 %v8225_v50, %v1623_v2  ;;  %3221 = vmatprep.subr.bf16.mxu0 %v5390_v58  ;;  %3447 = vmatprep.subr.bf16.mxu1 %v5393_v13  ;;  %v1659_v42 = vpop.f32.mrb[80].mxu1  ;;  %v5394_v13 = vld [vmem:[#allocation8 + $0x5a0] ss:$24 sps:$4 sm:$0xff]   ;;  %v5402_v50 = vld [vmem:[#allocation8 + $0x5d4] ss:$24 sps:$4 sm:$0xff]  }
 0x23d   : > { %v1660_v51 = vadd.f32 %v1659_v42, %v7105_v55  ;;  %v1661_v6 = vpop.f32.mrb[81].mxu1  ;;  %v5397_v2 = vld [vmem:[#allocation8 + $0x5a8] ss:$24 sps:$4 sm:$0xff]   ;;  %v5403_v42 = vld [vmem:[#allocation8 + $0x5d8] ss:$24 sps:$4 sm:$0xff]  }
 0x23e   : > { %v7165_v8 = vpack.c.bf16 %v1862_v27, %v1858_v14  ;;  %v7168_v30 = vpack.c.bf16 %v1863_v11, %v1859_v12  ;;  %v1662_v33 = vadd.f32 %v1661_v6, %v7158_v45  ;;  %v1663_v34 = vpop.f32.mrb[82].mxu1  ;;  %v8227_v12 = vmax.f32 %v6691_v1, %v6706_v35  ;;  %v8285_v56 = vld [vmem:[#allocation79_spill] sm:$0xff] }
 0x23f   : > { %v1804_v7 = vmax.f32 %v8226_v48, %v1660_v51  ;;  %3222 = vmatpush1.bf16.msra.mxu0 %v5388_v62  ;;  %3448 = vmatpush1.bf16.msra.mxu1 %v5391_v32  ;;  %v1664_v58 = vadd.f32 %v1663_v34, %v7105_v55  ;;  %v1665_v14 = vpop.f32.mrb[83].mxu1  ;;  %v8229_v34 = vld [vmem:[#allocation77_spill] sm:$0xff] }
 0x240   : > { %v1805_v27 = vmax.f32 %v8227_v12, %v1662_v33  ;;  %3184 = vmatprep.mubr.bf16.mxu0 %v7168_v30  ;;  %3410 = vmatprep.mubr.bf16.mxu1 %v7168_v30  ;;  %v1666_v0 = vadd.f32 %v1665_v14, %v7158_v45  ;;  %v8230_v62 = vmax.f32 %v6703_v31, %v8229_v34  ;;  %v5400_v32 = vld [vmem:[#allocation8 + $0x5d0] ss:$24 sps:$4 sm:$0xff]   ;;  %v5408_v51 = vld [vmem:[#allocation8 + $0x14] ss:$24 sps:$4 sm:$0xff]  }
 0x241   : > { %v1808_v11 = vmax.f32 %v8228_v28, %v1664_v58  ;;  %3185 = vmatmul.mubr.bf16.gmra.mrb[108].mxu0 %v7165_v8  ;;  %3223 = vmatprep.subr.bf16.mxu0 %v5396_v18  ;;  %v1669_v24 = vpop.f32.mrb[84].mxu1 }
 0x242   : > { %v1809_v1 = vmax.f32 %v8230_v62, %v1666_v0  ;;  %3411 = vmatmul.mubr.bf16.gmra.mrb[140].mxu1 %v7165_v8  ;;  %3449 = vmatprep.subr.bf16.mxu1 %v5399_v49  ;;  %v1670_v6 = vadd.f32 %v1669_v24, %v7105_v55  ;;  %v1671_v18 = vpop.f32.mrb[85].mxu1  ;;  %v8231_v49 = vld [vmem:[#allocation80_spill] sm:$0xff] }
 0x243   : > { %v7189_v35 = vpack.c.bf16 %v1808_v11, %v1804_v7  ;;  %3224 = vmatpush1.bf16.msra.mxu0 %v5394_v13  ;;  %3450 = vmatpush1.bf16.msra.mxu1 %v5397_v2  ;;  %v1672_v31 = vadd.f32 %v1671_v18, %v7158_v45  ;;  %v1673_v33 = vpop.f32.mrb[86].mxu1  ;;  %v8232_v48 = vmax.f32 %v6741_v4, %v8231_v49  ;;  %v5406_v13 = vld [vmem:[#allocation8 + $0x10] ss:$24 sps:$4 sm:$0xff]   ;;  %v5411_v0 = vld [vmem:[#allocation8 + $0x44] ss:$24 sps:$4 sm:$0xff]  }
 0x244   : > { %3225 = vmatprep.subr.bf16.mxu0 %v5402_v50  ;;  %3451 = vmatprep.subr.bf16.mxu1 %v5405_v17  ;;  %v7191_v43 = vpack.c.bf16 %v1809_v1, %v1805_v27  ;;  %v1674_v58 = vadd.f32 %v1673_v33, %v7105_v55  ;;  %v1675_v14 = vpop.f32.mrb[87].mxu1  ;;  %v8233_v2 = vmax.f32 %v6747_v44, %v6762_v40  ;;  %v8234_v50 = vld [vmem:[#allocation82_spill] sm:$0xff]  ;;  %v8236_v4 = vld [vmem:[#allocation81_spill] sm:$0xff]  ;;  %v8237_v11 = vld [vmem:[#allocation19_spill] sm:$0xff] }
 0x245   : > { %v1812_v7 = vmax.f32 %v8232_v48, %v1670_v6  ;;  %v1676_v27 = vadd.f32 %v1675_v14, %v7158_v45  ;;  %v8235_v17 = vmax.f32 %v6751_v46, %v8234_v50  ;;  %v8238_v34 = vmax.f32 %v8236_v4, %v8237_v11  ;;  %v5409_v1 = vld [vmem:[#allocation8 + $0x40] ss:$24 sps:$4 sm:$0xff]   ;;  %v8239_v18 = vld [vmem:[#allocation21_spill] sm:$0xff] }
 0x246   : > { %3227 = vmatprep.mubr.bf16.mxu0 %v7191_v43  ;;  %3453 = vmatprep.mubr.bf16.mxu1 %v7191_v43  ;;  %v1813_v12 = vmax.f32 %v8233_v2, %v1672_v31  ;;  %v8240_v31 = vld [vmem:[#allocation25_spill] sm:$0xff]  ;;  %v8242_v14 = vmax.f32 %v6805_v59, %v6822_v54  ;;  %v8244_v50 = vld [vmem:[#allocation27_spill] sm:$0xff] }
 0x247   : > { %3226 = vmatpush1.bf16.msra.mxu0 %v5400_v32  ;;  %3452 = vmatpush1.bf16.msra.mxu1 %v5403_v42  ;;  %v1816_v28 = vmax.f32 %v8235_v17, %v1674_v58  ;;  %v1817_v62 = vmax.f32 %v8238_v34, %v1676_v27  ;;  %v5414_v42 = vld [vmem:[#allocation8 + $0x74] ss:$24 sps:$4 sm:$0xff]   ;;  %v8241_v33 = vmax.f32 %v8239_v18, %v8240_v31  ;;  %v5412_v58 = vld [vmem:[#allocation8 + $0x70] ss:$24 sps:$4 sm:$0xff]   ;;  %v5415_v4 = vld [vmem:[#allocation8 + $0xa0] ss:$24 sps:$4 sm:$0xff]  }
 0x248   : > { %3534 = vmatprep.subr.bf16.mxu0 %v5408_v51  ;;  %v8243_v27 = vmax.f32 %v6811_v60, %v6833_v38  ;;  %v8245_v17 = vmax.f32 %v6819_v23, %v8244_v50  ;;  %v5420_v34 = vld [vmem:[#allocation8 + $0xd4] ss:$24 sps:$4 sm:$0xff]   ;;  %v8249_v18 = vmax.f32 %v6867_v3, %v6882_v29 }
 0x249   : > { %v7213_v44 = vpack.c.bf16 %v1816_v28, %v1812_v7  ;;  %v1679_v40 = vpop.f32.mrb[88].mxu1  ;;  %v7215_v32 = vpack.c.bf16 %v1817_v62, %v1813_v12  ;;  %v5417_v12 = vld [vmem:[#allocation8 + $0xa4] ss:$24 sps:$4 sm:$0xff]  }
 0x24a   : > { %3228 = vmatmul.mubr.bf16.vlgmr.msra.gmra.mrb[80].mxu0 %v7189_v35  ;;  %3454 = vmatmul.mubr.bf16.vlgmr.msra.gmra.mrb[112].mxu1 %v7189_v35  ;;  %v1680_v46 = vadd.f32 %v1679_v40, %v7105_v55  ;;  %v1681_v24 = vpop.f32.mrb[89].mxu1  ;;  %v8247_v40 = vld [vmem:[#allocation29_spill] sm:$0xff] }
 0x24b   : > { %3535 = vmatpush1.bf16.msra.mxu0 %v5406_v13  ;;  %v1682_v51 = vadd.f32 %v1681_v24, %v7158_v45  ;;  %v1683_v6 = vpop.f32.mrb[90].mxu1  ;;  %3237 = vmatprep.mubr.bf16.mxu0 %v7215_v32 }
 0x24c   : > { %3536 = vmatprep.subr.bf16.mxu0 %v5411_v0  ;;  %3463 = vmatprep.mubr.bf16.mxu1 %v7215_v32  ;;  %v1820_v49 = vmax.f32 %v8241_v33, %v1680_v46  ;;  %v1684_v48 = vadd.f32 %v1683_v6, %v7105_v55  ;;  %v1685_v7 = vpop.f32.mrb[91].mxu1  ;;  %v5418_v6 = vld [vmem:[#allocation8 + $0xd0] ss:$24 sps:$4 sm:$0xff]  }
 0x24d   : > { %v1821_v13 = vmax.f32 %v8242_v14, %v1682_v51  ;;  %v1686_v2 = vadd.f32 %v1685_v7, %v7158_v45  ;;  %v8251_v7 = vld [vmem:[#allocation33_spill] sm:$0xff] }
 0x24e   : > { %v1824_v0 = vmax.f32 %v8243_v27, %v1684_v48  ;;  %v8250_v48 = vld [vmem:[#allocation28_spill] sm:$0xff] }
 0x24f   : > { %3537 = vmatpush1.bf16.msra.mxu0 %v5409_v1  ;;  %v1825_v28 = vmax.f32 %v8245_v17, %v1686_v2  ;;  %v8246_v1 = vld [vmem:[#allocation24_spill] sm:$0xff]  ;;  %v8254_v2 = vld [vmem:[#allocation35_spill] sm:$0xff]  ;;  %v5426_v17 = vld [vmem:[#allocation8 + $0x134] ss:$24 sps:$4 sm:$0xff]  }
 0x250   : > { %3538 = vmatprep.subr.bf16.mxu0 %v5414_v42  ;;  %v7237_v59 = vpack.c.bf16 %v1824_v0, %v1820_v49  ;;  %v8248_v42 = vmax.f32 %v8246_v1, %v8247_v40  ;;  %v5423_v49 = vld [vmem:[#allocation8 + $0x104] ss:$24 sps:$4 sm:$0xff]   ;;  %v5421_v0 = vld [vmem:[#allocation8 + $0x100] ss:$24 sps:$4 sm:$0xff]   ;;  %v5424_v40 = vld [vmem:[#allocation8 + $0x130] ss:$24 sps:$4 sm:$0xff]  }
 0x251   : > { %v1689_v54 = vpop.f32.mrb[92].mxu1  ;;  %v7239_v11 = vpack.c.bf16 %v1825_v28, %v1821_v13  ;;  %v8253_v13 = vld [vmem:[#allocation30_spill] sm:$0xff] }
 0x252   : > { %3238 = vmatmul.mubr.bf16.gmra.mrb[84].mxu0 %v7213_v44  ;;  %3464 = vmatmul.mubr.bf16.gmra.mrb[116].mxu1 %v7213_v44  ;;  %v1690_v60 = vadd.f32 %v1689_v54, %v7105_v55  ;;  %v1691_v38 = vpop.f32.mrb[93].mxu1 }
 0x253   : > { %3539 = vmatpush1.bf16.msra.mxu0 %v5412_v58  ;;  %v1692_v62 = vadd.f32 %v1691_v38, %v7158_v45  ;;  %v1693_v23 = vpop.f32.mrb[94].mxu1  ;;  %3247 = vmatprep.mubr.bf16.mxu0 %v7239_v11  ;;  %v8252_v58 = vmax.f32 %v8250_v48, %v8251_v7 }
 0x254   : > { %3540 = vmatprep.subr.bf16.mxu0 %v5417_v12  ;;  %3473 = vmatprep.mubr.bf16.mxu1 %v7239_v11  ;;  %v1828_v46 = vmax.f32 %v8248_v42, %v1690_v60  ;;  %v1694_v24 = vadd.f32 %v1693_v23, %v7105_v55  ;;  %v1695_v51 = vpop.f32.mrb[95].mxu1  ;;  %v8255_v12 = vmax.f32 %v8253_v13, %v8254_v2  ;;  %v8256_v60 = vld [vmem:[#allocation36_spill] sm:$0xff]  ;;  %v5432_v13 = vld [vmem:[#allocation8 + $0x194] ss:$24 sps:$4 sm:$0xff]  }
 0x255   : > { %v1829_v31 = vmax.f32 %v8249_v18, %v1692_v62  ;;  %v1696_v33 = vadd.f32 %v1695_v51, %v7158_v45  ;;  %v8257_v38 = vmax.f32 %v6921_v15, %v8256_v60  ;;  %v8258_v42 = vmax.f32 %v6927_v57, %v6942_v39  ;;  %v5429_v51 = vld [vmem:[#allocation8 + $0x164] ss:$24 sps:$4 sm:$0xff]   ;;  %v8260_v18 = vld [vmem:[#allocation38_spill] sm:$0xff]  ;;  %v8263_v15 = vld [vmem:[#allocation41_spill] sm:$0xff] }
 0x256   : > { %v1832_v14 = vmax.f32 %v8252_v58, %v1694_v24  ;;  %v5427_v58 = vld [vmem:[#allocation8 + $0x160] ss:$24 sps:$4 sm:$0xff]   ;;  %v8267_v60 = vmax.f32 %v6985_v21, %v7002_v22 }
 0x257   : > { %3541 = vmatpush1.bf16.msra.mxu0 %v5415_v4  ;;  %v1833_v27 = vmax.f32 %v8255_v12, %v1696_v33 }
 0x258   : > { %3542 = vmatprep.subr.bf16.mxu0 %v5420_v34  ;;  %v7261_v3 = vpack.c.bf16 %v1832_v14, %v1828_v46 }
 0x259   : > { %v1699_v29 = vpop.f32.mrb[96].mxu1  ;;  %v7263_v50 = vpack.c.bf16 %v1833_v27, %v1829_v31 }
 0x25a   : > { %3248 = vmatmul.mubr.bf16.gmra.mrb[88].mxu0 %v7237_v59  ;;  %3474 = vmatmul.mubr.bf16.gmra.mrb[120].mxu1 %v7237_v59  ;;  %v1700_v28 = vadd.f32 %v1699_v29, %v7105_v55  ;;  %v1701_v4 = vpop.f32.mrb[97].mxu1  ;;  %v8265_v29 = vld [vmem:[#allocation39_spill] sm:$0xff] }
 0x25b   : > { %3543 = vmatpush1.bf16.msra.mxu0 %v5418_v6  ;;  %v1702_v54 = vadd.f32 %v1701_v4, %v7158_v45  ;;  %v1703_v34 = vpop.f32.mrb[98].mxu1  ;;  %3257 = vmatprep.mubr.bf16.mxu0 %v7263_v50  ;;  %v8259_v6 = vld [vmem:[#allocation34_spill] sm:$0xff] }
 0x25c   : > { %3544 = vmatprep.subr.bf16.mxu0 %v5423_v49  ;;  %3483 = vmatprep.mubr.bf16.mxu1 %v7263_v50  ;;  %v1836_v62 = vmax.f32 %v8257_v38, %v1700_v28  ;;  %v1704_v23 = vadd.f32 %v1703_v34, %v7105_v55  ;;  %v1705_v1 = vpop.f32.mrb[99].mxu1  ;;  %v8261_v31 = vmax.f32 %v8259_v6, %v8260_v18  ;;  %v8262_v49 = vld [vmem:[#allocation37_spill] sm:$0xff]  ;;  %v5433_v18 = vld [vmem:[#allocation8 + $0x1c0] ss:$24 sps:$4 sm:$0xff]  }
 0x25d   : > { %v1837_v46 = vmax.f32 %v8258_v42, %v1702_v54  ;;  %v1706_v24 = vadd.f32 %v1705_v1, %v7158_v45  ;;  %v8264_v48 = vmax.f32 %v8262_v49, %v8263_v15  ;;  %v5430_v34 = vld [vmem:[#allocation8 + $0x190] ss:$24 sps:$4 sm:$0xff]  }
 0x25e   : > { %v1840_v33 = vmax.f32 %v8261_v31, %v1704_v23  ;;  %v5435_v23 = vld [vmem:[#allocation8 + $0x1c4] ss:$24 sps:$4 sm:$0xff]   ;;  %v8268_v1 = vld [vmem:[#allocation42_spill] sm:$0xff] }
 0x25f   : > { %3545 = vmatpush1.bf16.msra.mxu0 %v5421_v0  ;;  %v1841_v7 = vmax.f32 %v8264_v48, %v1706_v24  ;;  %v8271_v24 = vld [vmem:[#allocation44_spill] sm:$0xff] }
 0x260   : > { %3546 = vmatprep.subr.bf16.mxu0 %v5426_v17  ;;  %v7285_v57 = vpack.c.bf16 %v1840_v33, %v1836_v62  ;;  %v8266_v17 = vmax.f32 %v6979_v26, %v8265_v29  ;;  %v8272_v26 = vld [vmem:[#allocation46_spill] sm:$0xff] }
 0x261   : > { %v1709_v39 = vpop.f32.mrb[100].mxu1  ;;  %v7287_v14 = vpack.c.bf16 %v1841_v7, %v1837_v46  ;;  %v5438_v33 = vld [vmem:[#allocation8 + $0x1f4] ss:$24 sps:$4 sm:$0xff]  }
 0x262   : > { %3258 = vmatmul.mubr.bf16.gmra.mrb[92].mxu0 %v7261_v3  ;;  %3484 = vmatmul.mubr.bf16.gmra.mrb[124].mxu1 %v7261_v3  ;;  %v1710_v2 = vadd.f32 %v1709_v39, %v7105_v55  ;;  %v1711_v12 = vpop.f32.mrb[101].mxu1 }
 0x263   : > { %3547 = vmatpush1.bf16.msra.mxu0 %v5424_v40  ;;  %v1712_v27 = vadd.f32 %v1711_v12, %v7158_v45  ;;  %v1713_v0 = vpop.f32.mrb[102].mxu1  ;;  %3267 = vmatprep.mubr.bf16.mxu0 %v7287_v14  ;;  %v8269_v40 = vld [vmem:[#allocation45_spill] sm:$0xff] }
 0x264   : > { %3548 = vmatprep.subr.bf16.mxu0 %v5429_v51  ;;  %3493 = vmatprep.mubr.bf16.mxu1 %v7287_v14  ;;  %v1844_v28 = vmax.f32 %v8266_v17, %v1710_v2  ;;  %v1714_v4 = vadd.f32 %v1713_v0, %v7105_v55  ;;  %v1715_v54 = vpop.f32.mrb[103].mxu1  ;;  %v8270_v42 = vmax.f32 %v8268_v1, %v8269_v40  ;;  %v5444_v40 = vld [vmem:[#allocation8 + $0x254] ss:$24 sps:$4 sm:$0xff]  }
 0x265   : > { %v1845_v38 = vmax.f32 %v8267_v60, %v1712_v27  ;;  %v1716_v62 = vadd.f32 %v1715_v54, %v7158_v45  ;;  %v8273_v51 = vmax.f32 %v8271_v24, %v8272_v26  ;;  %v5436_v27 = vld [vmem:[#allocation8 + $0x1f0] ss:$24 sps:$4 sm:$0xff]   ;;  %v8276_v0 = vmax.f32 %v7045_v25, %v7062_v37  ;;  %v8279_v60 = vld [vmem:[#allocation48_spill] sm:$0xff] }
 0x266   : > { %v1848_v46 = vmax.f32 %v8270_v42, %v1714_v4  ;;  %v8277_v4 = vld [vmem:[#allocation50_spill] sm:$0xff]  ;;  %v8282_v26 = vld [vmem:[#allocation53_spill] sm:$0xff] }
 0x267   : > { %3549 = vmatpush1.bf16.msra.mxu0 %v5427_v58  ;;  %v1849_v6 = vmax.f32 %v8273_v51, %v1716_v62  ;;  %v8274_v58 = vld [vmem:[#allocation51_spill] sm:$0xff]  ;;  %v8278_v54 = vmax.f32 %v7055_v41, %v8277_v4  ;;  %v8283_v51 = vmax.f32 %v7099_v61, %v8282_v26  ;;  %v8284_v61 = vmax.f32 %v7123_v19, %v7148_v47  ;;  %v5456_v47 = vld [vmem:[#allocation8 + $0x314] ss:$24 sps:$4 sm:$0xff]   ;;  %v5478_v26 = vld [vmem:[#allocation8 + $0x490] ss:$24 sps:$4 sm:$0xff]  }
 0x268   : > { %3550 = vmatprep.subr.bf16.mxu0 %v5432_v13  ;;  %v7309_v21 = vpack.c.bf16 %v1848_v46, %v1844_v28  ;;  %v8275_v39 = vmax.f32 %v7039_v16, %v8274_v58  ;;  %v5441_v28 = vld [vmem:[#allocation8 + $0x224] ss:$24 sps:$4 sm:$0xff]   ;;  %v5463_v4 = vld [vmem:[#allocation8 + $0x3a0] ss:$24 sps:$4 sm:$0xff]  }
 0x269   : > { %v1719_v22 = vpop.f32.mrb[104].mxu1  ;;  %v7311_v31 = vpack.c.bf16 %v1849_v6, %v1845_v38  ;;  %v8280_v16 = vld [vmem:[#allocation52_spill] sm:$0xff] }
 0x26a   : > { %3268 = vmatmul.mubr.bf16.gmra.mrb[96].mxu0 %v7285_v57  ;;  %3494 = vmatmul.mubr.bf16.gmra.mrb[128].mxu1 %v7285_v57  ;;  %v1720_v49 = vadd.f32 %v1719_v22, %v7105_v55  ;;  %v1721_v15 = vpop.f32.mrb[105].mxu1  ;;  %v8281_v38 = vmax.f32 %v8279_v60, %v8280_v16  ;;  %v5453_v19 = vld [vmem:[#allocation8 + $0x2e4] ss:$24 sps:$4 sm:$0xff]  }
 0x26b   : > { %3551 = vmatpush1.bf16.msra.mxu0 %v5430_v34  ;;  %v1722_v48 = vadd.f32 %v1721_v15, %v7158_v45  ;;  %v1723_v7 = vpop.f32.mrb[106].mxu1  ;;  %3277 = vmatprep.mubr.bf16.mxu0 %v7311_v31  ;;  %v5471_v60 = vld [vmem:[#allocation8 + $0x404] ss:$24 sps:$4 sm:$0xff]  }
 0x26c   : > { %3552 = vmatprep.subr.bf16.mxu0 %v5435_v23  ;;  %3503 = vmatprep.mubr.bf16.mxu1 %v7311_v31  ;;  %v1852_v13 = vmax.f32 %v8275_v39, %v1720_v49  ;;  %v1724_v2 = vadd.f32 %v1723_v7, %v7105_v55  ;;  %v1725_v12 = vpop.f32.mrb[107].mxu1  ;;  %v5439_v23 = vld [vmem:[#allocation8 + $0x220] ss:$24 sps:$4 sm:$0xff]   ;;  %v5459_v39 = vld [vmem:[#allocation8 + $0x344] ss:$24 sps:$4 sm:$0xff]  }
 0x26d   : > { %v1853_v29 = vmax.f32 %v8276_v0, %v1722_v48  ;;  %v1726_v17 = vadd.f32 %v1725_v12, %v7158_v45  ;;  %v5447_v48 = vld [vmem:[#allocation8 + $0x284] ss:$24 sps:$4 sm:$0xff]   ;;  %v5457_v12 = vld [vmem:[#allocation8 + $0x340] ss:$24 sps:$4 sm:$0xff]   ;;  %v5460_v0 = vld [vmem:[#allocation8 + $0x370] ss:$24 sps:$4 sm:$0xff]  }
 0x26e   : > { %v1856_v34 = vmax.f32 %v8278_v54, %v1724_v2  ;;  %v8287_v2 = vld [vmem:[#allocation22_spill] sm:$0xff]  ;;  %v8290_v16 = vld [vmem:[#allocation23_spill] sm:$0xff] }
 0x26f   : > { %3553 = vmatpush1.bf16.msra.mxu0 %v5433_v18  ;;  %v1857_v62 = vmax.f32 %v8281_v38, %v1726_v17  ;;  %v8288_v17 = vld [vmem:[#allocation20_spill] sm:$0xff]  ;;  %v5468_v54 = vld [vmem:[#allocation8 + $0x3d4] ss:$24 sps:$4 sm:$0xff]  }
 0x270   : > { %3554 = vmatprep.subr.bf16.mxu0 %v5438_v33  ;;  %v7333_v25 = vpack.c.bf16 %v1856_v34, %v1852_v13  ;;  %v5442_v33 = vld [vmem:[#allocation8 + $0x250] ss:$24 sps:$4 sm:$0xff]   ;;  %v8291_v38 = vld [vmem:[#allocation32_spill] sm:$0xff] }
 0x271   : > { %v1729_v37 = vpop.f32.mrb[108].mxu1  ;;  %v7335_v1 = vpack.c.bf16 %v1857_v62, %v1853_v29  ;;  %v8286_v13 = vld [vmem:[#allocation78_spill] sm:$0xff]  ;;  %v5465_v29 = vld [vmem:[#allocation8 + $0x3a4] ss:$24 sps:$4 sm:$0xff]   ;;  %v5469_v62 = vld [vmem:[#allocation8 + $0x400] ss:$24 sps:$4 sm:$0xff]  }
 0x272   : > { %3278 = vmatmul.mubr.bf16.gmra.mrb[100].mxu0 %v7309_v21  ;;  %3504 = vmatmul.mubr.bf16.gmra.mrb[132].mxu1 %v7309_v21  ;;  %v1730_v41 = vadd.f32 %v1729_v37, %v7105_v55  ;;  %v1731_v42 = vpop.f32.mrb[109].mxu1  ;;  %v5466_v34 = vld [vmem:[#allocation8 + $0x3d0] ss:$24 sps:$4 sm:$0xff]  }
 0x273   : > { %3555 = vmatpush1.bf16.msra.mxu0 %v5436_v27  ;;  %v1732_v46 = vadd.f32 %v1731_v42, %v7158_v45  ;;  %v1733_v24 = vpop.f32.mrb[110].mxu1  ;;  %3287 = vmatprep.mubr.bf16.mxu0 %v7335_v1  ;;  %v5462_v27 = vld [vmem:[#allocation8 + $0x374] ss:$24 sps:$4 sm:$0xff]   ;;  %v5472_v37 = vld [vmem:[#allocation8 + $0x430] ss:$24 sps:$4 sm:$0xff]   ;;  %v8293_v42 = vld [vmem:[#allocation40_spill] sm:$0xff] }
 0x274   : > { %3556 = vmatprep.subr.bf16.mxu0 %v5441_v28  ;;  %3513 = vmatprep.mubr.bf16.mxu1 %v7335_v1  ;;  %v1860_v6 = vmax.f32 %v8283_v51, %v1730_v41  ;;  %v1734_v18 = vadd.f32 %v1733_v24, %v7105_v55  ;;  %v1735_v22 = vpop.f32.mrb[111].mxu1  ;;  %v5445_v55 = vld [vmem:[#allocation8 + $0x280] ss:$24 sps:$4 sm:$0xff]   ;;  %v8289_v28 = vld [vmem:[#allocation26_spill] sm:$0xff]  ;;  %v5483_v51 = vld [vmem:[#allocation8 + $0x4c4] ss:$24 sps:$4 sm:$0xff]  }
 0x275   : > { %v1861_v49 = vmax.f32 %v1797_v36, %v1732_v46  ;;  %v1736_v15 = vadd.f32 %v1735_v22, %v7158_v45  ;;  %v5450_v36 = vld [vmem:[#allocation8 + $0x2b4] ss:$24 sps:$4 sm:$0xff]   ;;  %v5454_v45 = vld [vmem:[#allocation8 + $0x310] ss:$24 sps:$4 sm:$0xff]   ;;  %v8292_v41 = vld [vmem:[#allocation31_spill] sm:$0xff] }
 0x276   : > { %v1864_v7 = vmax.f32 %v1800_v20, %v1734_v18  ;;  %v5451_v20 = vld [vmem:[#allocation8 + $0x2e0] ss:$24 sps:$4 sm:$0xff]   ;;  %v5480_v24 = vld [vmem:[#allocation8 + $0x494] ss:$24 sps:$4 sm:$0xff]  }
 0x277   : > { %3557 = vmatpush1.bf16.msra.mxu0 %v5439_v23  ;;  %v1865_v58 = vmax.f32 %v8284_v61, %v1736_v15  ;;  %v5474_v23 = vld [vmem:[#allocation8 + $0x434] ss:$24 sps:$4 sm:$0xff]   ;;  %v5475_v46 = vld [vmem:[#allocation8 + $0x460] ss:$24 sps:$4 sm:$0xff]   ;;  %v5489_v15 = vld [vmem:[#allocation8 + $0x524] ss:$24 sps:$4 sm:$0xff]  }
 0x278   : > { %3558 = vmatprep.subr.bf16.mxu0 %v5444_v40  ;;  %v7357_v53 = vpack.c.bf16 %v1864_v7, %v1860_v6  ;;  %v5477_v40 = vld [vmem:[#allocation8 + $0x464] ss:$24 sps:$4 sm:$0xff]   ;;  %v5481_v22 = vld [vmem:[#allocation8 + $0x4c0] ss:$24 sps:$4 sm:$0xff]   ;;  %v5492_v61 = vld [vmem:[#allocation8 + $0x554] ss:$24 sps:$4 sm:$0xff]  }
 0x279   : > { %v7359_v52 = vpack.c.bf16 %v1865_v58, %v1861_v49  ;;  %v8294_v6 = vld [vmem:[#allocation43_spill] sm:$0xff]  ;;  %v5484_v49 = vld [vmem:[#allocation8 + $0x4f0] ss:$24 sps:$4 sm:$0xff]  }
 0x27a   : > { %3288 = vmatmul.mubr.bf16.gmra.mrb[104].mxu0 %v7333_v25  ;;  %3514 = vmatmul.mubr.bf16.gmra.mrb[136].mxu1 %v7333_v25  ;;  %v8295_v18 = vld [vmem:[#allocation47_spill] sm:$0xff]  ;;  %v5490_v58 = vld [vmem:[#allocation8 + $0x550] ss:$24 sps:$4 sm:$0xff]  }
 0x27b   : > { %3559 = vmatpush1.bf16.msra.mxu0 %v5442_v33  ;;  %3297 = vmatprep.mubr.bf16.mxu0 %v7359_v52  ;;  %v5486_v33 = vld [vmem:[#allocation8 + $0x4f4] ss:$24 sps:$4 sm:$0xff]   ;;  %v5487_v7 = vld [vmem:[#allocation8 + $0x520] ss:$24 sps:$4 sm:$0xff]  }
 0x27c   : > { %3560 = vmatprep.subr.bf16.mxu0 %v5447_v48  ;;  %3523 = vmatprep.mubr.bf16.mxu1 %v7359_v52  ;;  %v8296_v48 = vld [vmem:[#allocation49_spill] sm:$0xff] }
 0x27f   : > { %3561 = vmatpush1.bf16.msra.mxu0 %v5445_v55  ;;  %v5495_v55 = vld [vmem:[#allocation8 + $0x584] ss:$24 sps:$4 sm:$0xff]  }
 0x280   : > { %3562 = vmatprep.subr.bf16.mxu0 %v5450_v36  ;;  %v5493_v36 = vld [vmem:[#allocation8 + $0x580] ss:$24 sps:$4 sm:$0xff]  }
 0x282   : > { %3298 = vmatmul.mubr.bf16.gmra.mrb[108].mxu0 %v7357_v53  ;;  %3524 = vmatmul.mubr.bf16.gmra.mrb[140].mxu1 %v7357_v53 }
 0x283   : > { %3563 = vmatpush1.bf16.msra.mxu0 %v5448_v9  ;;  %3566 = vmatprep.mubr.bf16.mxu0 %v8285_v56  ;;  %v5498_v9 = vld [vmem:[#allocation8 + $0x5b4] ss:$24 sps:$4 sm:$0xff]   ;;  %v5499_v56 = vld [vmem:[#allocation8 + $0x5e0] ss:$24 sps:$4 sm:$0xff]  }
 0x284   : > { %3564 = vmatprep.subr.bf16.mxu0 %v5453_v19  ;;  %v5496_v19 = vld [vmem:[#allocation8 + $0x5b0] ss:$24 sps:$4 sm:$0xff]  }
 0x287   : > { %3565 = vmatpush1.bf16.msra.mxu0 %v5451_v20  ;;  %v5506_v20 = vld [vmem:[#allocation10 + $0x50] sm:$0xff]  }
 0x288   : > { %3647 = vmatprep.subr.bf16.mxu0 %v5456_v47  ;;  %v5514_v47 = vld [vmem:[#allocation10 + $0x70] sm:$0xff]  }
 0x28a   : > { %3567 = vmatmul.mubr.bf16.vlgmr.msra.gmra.mrb[112].mxu0 %v8286_v13 }
 0x28b   : > { %3576 = vmatprep.mubr.bf16.mxu0 %v8287_v2  ;;  %3648 = vmatpush1.bf16.msra.mxu0 %v5454_v45  ;;  %v8298_v45 = vld [vmem:[#allocation65_spill] sm:$0xff] }
 0x28c   : > { %3649 = vmatprep.subr.bf16.mxu0 %v5459_v39  ;;  %v8299_v39 = vld [vmem:[#allocation18_spill] sm:$0xff] }
 0x28f   : > { %3650 = vmatpush1.bf16.msra.mxu0 %v5457_v12 }
 0x290   : > { %3651 = vmatprep.subr.bf16.mxu0 %v5462_v27 }
 0x292   : > { %3577 = vmatmul.mubr.bf16.gmra.mrb[116].mxu0 %v8288_v17 }
 0x293   : > { %3586 = vmatprep.mubr.bf16.mxu0 %v8289_v28  ;;  %3652 = vmatpush1.bf16.msra.mxu0 %v5460_v0 }
 0x294   : > { %3653 = vmatprep.subr.bf16.mxu0 %v5465_v29 }
 0x297   : > { %3654 = vmatpush1.bf16.msra.mxu0 %v5463_v4 }
 0x298   : > { %3655 = vmatprep.subr.bf16.mxu0 %v5468_v54 }
 0x29a   : > { %3587 = vmatmul.mubr.bf16.gmra.mrb[120].mxu0 %v8290_v16 }
 0x29b   : > { %3596 = vmatprep.mubr.bf16.mxu0 %v8291_v38  ;;  %3656 = vmatpush1.bf16.msra.mxu0 %v5466_v34 }
 0x29c   : > { %3657 = vmatprep.subr.bf16.mxu0 %v5471_v60 }
 0x29f   : > { %3658 = vmatpush1.bf16.msra.mxu0 %v5469_v62 }
 0x2a0   : > { %3659 = vmatprep.subr.bf16.mxu0 %v5474_v23 }
 0x2a2   : > { %3597 = vmatmul.mubr.bf16.gmra.mrb[124].mxu0 %v8292_v41 }
 0x2a3   : > { %3606 = vmatprep.mubr.bf16.mxu0 %v8293_v42  ;;  %3660 = vmatpush1.bf16.msra.mxu0 %v5472_v37  ;;  %v5517_v42 = vld [vmem:[#allocation10 + $0x38] sm:$0xff]  }
 0x2a4   : > { %3661 = vmatprep.subr.bf16.mxu0 %v5477_v40  ;;  %v5516_v40 = vld [vmem:[#allocation10 + $0x78] sm:$0xff]  }
 0x2a7   : > { %3662 = vmatpush1.bf16.msra.mxu0 %v5475_v46 }
 0x2a8   : > { %3663 = vmatprep.subr.bf16.mxu0 %v5480_v24 }
 0x2aa   : > { %3607 = vmatmul.mubr.bf16.gmra.mrb[128].mxu0 %v8294_v6 }
 0x2ab   : > { %3616 = vmatprep.mubr.bf16.mxu0 %v8295_v18  ;;  %3664 = vmatpush1.bf16.msra.mxu0 %v5478_v26 }
 0x2ac   : > { %3665 = vmatprep.subr.bf16.mxu0 %v5483_v51 }
 0x2af   : > { %3666 = vmatpush1.bf16.msra.mxu0 %v5481_v22 }
 0x2b0   : > { %3667 = vmatprep.subr.bf16.mxu0 %v5486_v33 }
 0x2b2   : > { %3617 = vmatmul.mubr.bf16.gmra.mrb[132].mxu0 %v8296_v48 }
 0x2b3   : > { %3626 = vmatprep.mubr.bf16.mxu0 %v7115_v63  ;;  %3668 = vmatpush1.bf16.msra.mxu0 %v5484_v49  ;;  %v5501_v63 = vld [vmem:[#allocation8 + $0x5e4] ss:$24 sps:$4 sm:$0xff]  }
 0x2b4   : > { %3669 = vmatprep.subr.bf16.mxu0 %v5489_v15 }
 0x2b7   : > { %3670 = vmatpush1.bf16.msra.mxu0 %v5487_v7 }
 0x2b8   : > { %3671 = vmatprep.subr.bf16.mxu0 %v5492_v61 }
 0x2ba   : > { %3627 = vmatmul.mubr.bf16.gmra.mrb[136].mxu0 %v7101_v10  ;;  %v5502_v10 = vld [vmem:[#allocation10 + $0x40] sm:$0xff]  }
 0x2bb   : > { %3636 = vmatprep.mubr.bf16.mxu0 %v7168_v30  ;;  %3672 = vmatpush1.bf16.msra.mxu0 %v5490_v58  ;;  %v5504_v30 = vld [vmem:[#allocation10 + $0x48] sm:$0xff]  }
 0x2bc   : > { %3673 = vmatprep.subr.bf16.mxu0 %v5495_v55  ;;  %4694 = vmatprep.subr.bf16.mxu1 %v5502_v10 }
 0x2bf   : > { %3674 = vmatpush1.bf16.msra.mxu0 %v5493_v36 }
 0x2c0   : > { %3675 = vmatprep.subr.bf16.mxu0 %v5498_v9 }
 0x2c2   : > { %3637 = vmatmul.mubr.bf16.gmra.mrb[140].mxu0 %v7165_v8  ;;  %v5503_v8 = vld [vmem:[#allocation10] sm:$0xff]  }
 0x2c3   : > { %3676 = vmatpush1.bf16.msra.mxu0 %v5496_v19  ;;  %3679 = vmatprep.mubr.bf16.mxu0 %v7191_v43  ;;  %v5505_v43 = vld [vmem:[#allocation10 + $0x8] sm:$0xff]  }
 0x2c4   : > { %3677 = vmatprep.subr.bf16.mxu0 %v5501_v63  ;;  %4695 = vmatpush3.bf16.msra.mxu1 %v5503_v8 }
 0x2c5   : > { %4696 = vmatprep.subr.bf16.mxu1 %v5504_v30 }
 0x2c7   : > { %3678 = vmatpush1.bf16.msra.mxu0 %v5499_v56 }
 0x2c8   : > { %4697 = vmatpush3.bf16.msra.mxu1 %v5505_v43 }
 0x2c9   : > { %4698 = vmatprep.subr.bf16.mxu1 %v5506_v20 }
 0x2ca   : > { %3680 = vmatmul.mubr.bf16.vlgmr.msra.gmra.mrb[112].mxu0 %v7189_v35  ;;  %v5507_v35 = vld [vmem:[#allocation10 + $0x10] sm:$0xff]  }
 0x2cb   : > { %3689 = vmatprep.mubr.bf16.mxu0 %v7215_v32  ;;  %v5509_v32 = vld [vmem:[#allocation10 + $0x18] sm:$0xff]  }
 0x2cc   : > { %4699 = vmatpush3.bf16.msra.mxu1 %v5507_v35 }
 0x2d2   : > { %3690 = vmatmul.mubr.bf16.gmra.mrb[116].mxu0 %v7213_v44  ;;  %v5508_v44 = vld [vmem:[#allocation10 + $0x58] sm:$0xff]  }
 0x2d3   : > { %3699 = vmatprep.mubr.bf16.mxu0 %v7239_v11  ;;  %4700 = vmatprep.subr.bf16.mxu1 %v5508_v44  ;;  %v5511_v11 = vld [vmem:[#allocation10 + $0x20] sm:$0xff]  }
 0x2d4   : > { %4701 = vmatpush3.bf16.msra.mxu1 %v5509_v32 }
 0x2da   : > { %3700 = vmatmul.mubr.bf16.gmra.mrb[120].mxu0 %v7237_v59  ;;  %v5510_v59 = vld [vmem:[#allocation10 + $0x60] sm:$0xff]  }
 0x2db   : > { %3709 = vmatprep.mubr.bf16.mxu0 %v7263_v50  ;;  %4702 = vmatprep.subr.bf16.mxu1 %v5510_v59  ;;  %v5512_v50 = vld [vmem:[#allocation10 + $0x68] sm:$0xff]  }
 0x2dc   : > { %4703 = vmatpush3.bf16.msra.mxu1 %v5511_v11 }
 0x2dd   : > { %4704 = vmatprep.subr.bf16.mxu1 %v5512_v50 }
 0x2e2   : > { %3710 = vmatmul.mubr.bf16.gmra.mrb[124].mxu0 %v7261_v3  ;;  %v5513_v3 = vld [vmem:[#allocation10 + $0x28] sm:$0xff]  }
 0x2e3   : > { %3719 = vmatprep.mubr.bf16.mxu0 %v7287_v14  ;;  %4705 = vmatpush3.bf16.msra.mxu1 %v5513_v3  ;;  %v5515_v14 = vld [vmem:[#allocation10 + $0x30] sm:$0xff]  }
 0x2e4   : > { %4706 = vmatprep.subr.bf16.mxu1 %v5514_v47 }
 0x2e7   : > { %4707 = vmatpush3.bf16.msra.mxu1 %v5515_v14 }
 0x2e8   : > { %4708 = vmatprep.subr.bf16.mxu1 %v5516_v40 }
 0x2ea   : > { %3720 = vmatmul.mubr.bf16.gmra.mrb[128].mxu0 %v7285_v57  ;;  %v7400_v57 = vld [vmem:[%s7907_s4] sm:$0x3f] }
 0x2eb   : > { %3729 = vmatprep.mubr.bf16.mxu0 %v7311_v31  ;;  %v8297_v31 = vld [vmem:[#allocation17_spill] sm:$0xff]  ;;  %4709 = vmatpush3.bf16.msra.mxu1 %v5517_v42 }
 0x2f2   : > { %3730 = vmatmul.mubr.bf16.gmra.mrb[132].mxu0 %v7309_v21  ;;  %v7404_v21 = vrot.slane %v7400_v57, %v8297_v31 }
 0x2f3   : > { %3739 = vmatprep.mubr.bf16.mxu0 %v7335_v1  ;;  %v7408_v1 = vrot.slane %v7400_v57, %v8298_v45 }
 0x2fa   : > { %3740 = vmatmul.mubr.bf16.gmra.mrb[136].mxu0 %v7333_v25  ;;  %v7412_v25 = vrot.slane %v7400_v57, %v8299_v39 }
 0x2fb   : > { %3749 = vmatprep.mubr.bf16.mxu0 %v7359_v52 }
 0x302   : > { %3750 = vmatmul.mubr.bf16.gmra.mrb[140].mxu0 %v7357_v53  ;;  %v7416_v53 = vrot.slane %v7400_v57, %v8222_v5 }
 0x31d   : > { %v3229_v52 = vpop.f32.mrb[80].mxu0  ;;  %v3455_v13 = vpop.f32.mrb[112].mxu1 }
 0x31e   : > { %v7419_v2 = vadd.f32 %v3229_v52, %v7404_v21  ;;  %v7422_v12 = vadd.f32 %v3455_v13, %v7408_v1  ;;  %v3231_v27 = vpop.f32.mrb[81].mxu0  ;;  %v3457_v0 = vpop.f32.mrb[113].mxu1 }
 0x31f   : > { %v7425_v29 = vadd.f32 %v3231_v27, %v7412_v25  ;;  %v7428_v17 = vadd.f32 %v3457_v0, %v7416_v53  ;;  %v3233_v28 = vpop.f32.mrb[82].mxu0  ;;  %v3459_v4 = vpop.f32.mrb[114].mxu1 }
 0x320   : > { %v7433_v54 = vadd.f32 %v3233_v28, %v7404_v21  ;;  %v7436_v34 = vadd.f32 %v3459_v4, %v7408_v1  ;;  %v3235_v60 = vpop.f32.mrb[83].mxu0  ;;  %v3461_v16 = vpop.f32.mrb[115].mxu1 }
 0x321   : > { %v7441_v62 = vadd.f32 %v3235_v60, %v7412_v25  ;;  %v7444_v23 = vadd.f32 %v3461_v16, %v7416_v53 }
 0x325   : > { %v3239_v46 = vpop.f32.mrb[84].mxu0  ;;  %v3465_v24 = vpop.f32.mrb[116].mxu1 }
 0x326   : > { %v7451_v26 = vadd.f32 %v3239_v46, %v7404_v21  ;;  %v7454_v51 = vadd.f32 %v3465_v24, %v7408_v1  ;;  %v3241_v6 = vpop.f32.mrb[85].mxu0  ;;  %v3467_v18 = vpop.f32.mrb[117].mxu1 }
 0x327   : > { %v7457_v22 = vadd.f32 %v3241_v6, %v7412_v25  ;;  %v7460_v33 = vadd.f32 %v3467_v18, %v7416_v53  ;;  %v3243_v49 = vpop.f32.mrb[86].mxu0  ;;  %v3469_v15 = vpop.f32.mrb[118].mxu1 }
 0x328   : > { %v7465_v7 = vadd.f32 %v3243_v49, %v7404_v21  ;;  %v7468_v61 = vadd.f32 %v3469_v15, %v7408_v1  ;;  %v3245_v58 = vpop.f32.mrb[87].mxu0  ;;  %v3471_v55 = vpop.f32.mrb[119].mxu1 }
 0x329   : > { %v7473_v9 = vadd.f32 %v3245_v58, %v7412_v25  ;;  %v7476_v19 = vadd.f32 %v3471_v55, %v7416_v53 }
 0x32d   : > { %v3249_v10 = vpop.f32.mrb[88].mxu0  ;;  %v3475_v8 = vpop.f32.mrb[120].mxu1 }
 0x32e   : > { %v7483_v30 = vadd.f32 %v3249_v10, %v7404_v21  ;;  %v7486_v43 = vadd.f32 %v3475_v8, %v7408_v1  ;;  %v3251_v20 = vpop.f32.mrb[89].mxu0  ;;  %v3477_v35 = vpop.f32.mrb[121].mxu1 }
 0x32f   : > { %v7489_v44 = vadd.f32 %v3251_v20, %v7412_v25  ;;  %v7492_v32 = vadd.f32 %v3477_v35, %v7416_v53  ;;  %v3253_v59 = vpop.f32.mrb[90].mxu0  ;;  %v3479_v11 = vpop.f32.mrb[122].mxu1 }
 0x330   : > { %v7497_v3 = vadd.f32 %v3253_v59, %v7404_v21  ;;  %v7500_v47 = vadd.f32 %v3479_v11, %v7408_v1  ;;  %v3255_v14 = vpop.f32.mrb[91].mxu0  ;;  %v3481_v31 = vpop.f32.mrb[123].mxu1 }
 0x331   : > { %v7505_v39 = vadd.f32 %v3255_v14, %v7412_v25  ;;  %v7508_v52 = vadd.f32 %v3481_v31, %v7416_v53 }
 0x335   : > { %v3259_v0 = vpop.f32.mrb[92].mxu0  ;;  %v3485_v28 = vpop.f32.mrb[124].mxu1 }
 0x336   : > { %v7515_v4 = vadd.f32 %v3259_v0, %v7404_v21  ;;  %v7518_v60 = vadd.f32 %v3485_v28, %v7408_v1  ;;  %v3261_v16 = vpop.f32.mrb[93].mxu0  ;;  %v3487_v40 = vpop.f32.mrb[125].mxu1 }
 0x337   : > { %v7521_v42 = vadd.f32 %v3261_v16, %v7412_v25  ;;  %v7524_v46 = vadd.f32 %v3487_v40, %v7416_v53  ;;  %v3263_v24 = vpop.f32.mrb[94].mxu0  ;;  %v3489_v6 = vpop.f32.mrb[126].mxu1 }
 0x338   : > { %v7529_v49 = vadd.f32 %v3263_v24, %v7404_v21  ;;  %v7532_v15 = vadd.f32 %v3489_v6, %v7408_v1  ;;  %v3265_v58 = vpop.f32.mrb[95].mxu0  ;;  %v3491_v55 = vpop.f32.mrb[127].mxu1 }
 0x339   : > { %v7537_v8 = vadd.f32 %v3265_v58, %v7412_v25  ;;  %v7540_v20 = vadd.f32 %v3491_v55, %v7416_v53 }
 0x33d   : > { %v3269_v11 = vpop.f32.mrb[96].mxu0  ;;  %v3495_v14 = vpop.f32.mrb[128].mxu1 }
 0x33e   : > { %v7547_v31 = vadd.f32 %v3269_v11, %v7404_v21  ;;  %v7550_v0 = vadd.f32 %v3495_v14, %v7408_v1  ;;  %v3271_v28 = vpop.f32.mrb[97].mxu0  ;;  %v3497_v16 = vpop.f32.mrb[129].mxu1 }
 0x33f   : > { %v7553_v40 = vadd.f32 %v3271_v28, %v7412_v25  ;;  %v7556_v24 = vadd.f32 %v3497_v16, %v7416_v53  ;;  %v3273_v6 = vpop.f32.mrb[98].mxu0  ;;  %v3499_v58 = vpop.f32.mrb[130].mxu1 }
 0x340   : > { %v7561_v59 = vadd.f32 %v3273_v6, %v7404_v21  ;;  %v7564_v11 = vadd.f32 %v3499_v58, %v7408_v1  ;;  %v3275_v14 = vpop.f32.mrb[99].mxu0  ;;  %v3501_v35 = vpop.f32.mrb[131].mxu1 }
 0x341   : > { %v7569_v10 = vadd.f32 %v3275_v14, %v7412_v25  ;;  %v7572_v16 = vadd.f32 %v3501_v35, %v7416_v53 }
 0x345   : > { %v3279_v18 = vpop.f32.mrb[100].mxu0  ;;  %v3505_v58 = vpop.f32.mrb[132].mxu1 }
 0x346   : > { %v7579_v27 = vadd.f32 %v3279_v18, %v7404_v21  ;;  %v7582_v13 = vadd.f32 %v3505_v58, %v7408_v1  ;;  %v3281_v28 = vpop.f32.mrb[101].mxu0  ;;  %v3507_v14 = vpop.f32.mrb[133].mxu1 }
 0x347   : > { %v7585_v45 = vadd.f32 %v3281_v28, %v7412_v25  ;;  %v7588_v35 = vadd.f32 %v3507_v14, %v7416_v53  ;;  %v3283_v55 = vpop.f32.mrb[102].mxu0  ;;  %v3509_v50 = vpop.f32.mrb[134].mxu1 }
 0x348   : > { %v7593_v56 = vadd.f32 %v3283_v55, %v7404_v21  ;;  %v7596_v18 = vadd.f32 %v3509_v50, %v7408_v1  ;;  %v3285_v58 = vpop.f32.mrb[103].mxu0  ;;  %v3511_v63 = vpop.f32.mrb[135].mxu1 }
 0x349   : > { %v7601_v36 = vadd.f32 %v3285_v58, %v7412_v25  ;;  %v7604_v14 = vadd.f32 %v3511_v63, %v7416_v53 }
 0x34a   : > { %8300 = vst [vmem:[#allocation54_spill] sm:$0xff] %v7593_v56  ;;  %8301 = vst [vmem:[#allocation57_spill] sm:$0xff] %v7596_v18 }
 0x34b   : > { %8302 = vst [vmem:[#allocation60_spill] sm:$0xff] %v7601_v36  ;;  %8303 = vst [vmem:[#allocation55_spill] sm:$0xff] %v7604_v14 }
 0x34d   : > { %v3289_v48 = vpop.f32.mrb[104].mxu0  ;;  %v3515_v50 = vpop.f32.mrb[136].mxu1 }
 0x34e   : > { %v7611_v41 = vadd.f32 %v3289_v48, %v7404_v21  ;;  %v7614_v37 = vadd.f32 %v3515_v50, %v7408_v1  ;;  %v3291_v28 = vpop.f32.mrb[105].mxu0  ;;  %v3517_v58 = vpop.f32.mrb[137].mxu1 }
 0x34f   : > { %v7617_v38 = vadd.f32 %v3291_v28, %v7412_v25  ;;  %v7620_v63 = vadd.f32 %v3517_v58, %v7416_v53  ;;  %v3293_v6 = vpop.f32.mrb[106].mxu0  ;;  %v3519_v5 = vpop.f32.mrb[138].mxu1 }
 0x350   : > { %8304 = vst [vmem:[#allocation56_spill] sm:$0xff] %v7611_v41  ;;  %8305 = vst [vmem:[#allocation58_spill] sm:$0xff] %v7614_v37  ;;  %v7625_v14 = vadd.f32 %v3293_v6, %v7404_v21  ;;  %v7628_v48 = vadd.f32 %v3519_v5, %v7408_v1  ;;  %v3295_v50 = vpop.f32.mrb[107].mxu0  ;;  %v3521_v36 = vpop.f32.mrb[139].mxu1 }
 0x351   : > { %8306 = vst [vmem:[#allocation59_spill] sm:$0xff] %v7620_v63  ;;  %v7633_v18 = vadd.f32 %v3295_v50, %v7412_v25  ;;  %v7636_v58 = vadd.f32 %v3521_v36, %v7416_v53 }
 0x352   : > { %8307 = vst [vmem:[#allocation61_spill] sm:$0xff] %v7625_v14  ;;  %8308 = vst [vmem:[#allocation62_spill] sm:$0xff] %v7628_v48 }
 0x353   : > { %8309 = vst [vmem:[#allocation63_spill] sm:$0xff] %v7633_v18  ;;  %8310 = vst [vmem:[#allocation64_spill] sm:$0xff] %v7636_v58 }
 0x355   : > { %v3299_v37 = vpop.f32.mrb[108].mxu0  ;;  %v3525_v5 = vpop.f32.mrb[140].mxu1 }
 0x356   : > { %v7643_v41 = vadd.f32 %v3299_v37, %v7404_v21  ;;  %v7646_v56 = vadd.f32 %v3525_v5, %v7408_v1  ;;  %v3301_v28 = vpop.f32.mrb[109].mxu0  ;;  %v3527_v50 = vpop.f32.mrb[141].mxu1 }
 0x357   : > { %v7649_v63 = vadd.f32 %v3301_v28, %v7412_v25  ;;  %v7652_v36 = vadd.f32 %v3527_v50, %v7416_v53  ;;  %v3303_v55 = vpop.f32.mrb[110].mxu0  ;;  %v3529_v48 = vpop.f32.mrb[142].mxu1 }
 0x358   : > { %8311 = vst [vmem:[#allocation66_spill] sm:$0xff] %v7646_v56  ;;  %v7657_v58 = vadd.f32 %v3303_v55, %v7404_v21  ;;  %v7660_v37 = vadd.f32 %v3529_v48, %v7408_v1  ;;  %v3305_v5 = vpop.f32.mrb[111].mxu0  ;;  %v3531_v18 = vpop.f32.mrb[143].mxu1  ;;  %v8317_v55 = vld [vmem:[#allocation16_spill] sm:$0xff]  ;;  %v8320_v21 = vmax.f32 %v7419_v2, %v7422_v12 }
 0x359   : > { %8312 = vst [vmem:[#allocation69_spill] sm:$0xff] %v7652_v36  ;;  %v7665_v14 = vadd.f32 %v3305_v5, %v7412_v25  ;;  %v7668_v50 = vadd.f32 %v3531_v18, %v7416_v53  ;;  %v8318_v1 = vsub.s32 4, %v8317_v55  ;;  %v8319_v56 = vsub.s32 5, %v8317_v55 }
 0x35a   : > { %8313 = vst [vmem:[#allocation72_spill] sm:$0xff] %v7657_v58  ;;  %8314 = vst [vmem:[#allocation68_spill] sm:$0xff] %v7660_v37  ;;  %v8321_v55 = vmax.f32 %v7425_v29, %v7428_v17  ;;  %v8324_v17 = vmax.f32 %v7451_v26, %v7454_v51 }
 0x35b   : > { %8315 = vst [vmem:[#allocation70_spill] sm:$0xff] %v7665_v14  ;;  %8316 = vst [vmem:[#allocation71_spill] sm:$0xff] %v7668_v50  ;;  %v7677_v48 = vrot.slane %v7400_v57, %v8318_v1  ;;  %v7682_v28 = vrot.slane %v7400_v57, %v8319_v56  ;;  %v8322_v56 = vmax.f32 %v7433_v54, %v7436_v34 }
 0x39d   : > { %v3681_v25 = vpop.f32.mrb[112].mxu0 }
 0x39e   : > { %v4838_v53 = vadd.f32 %v3681_v25, %v7677_v48  ;;  %v3683_v18 = vpop.f32.mrb[113].mxu0 }
 0x39f   : > { %v4839_v5 = vadd.f32 %v3683_v18, %v7682_v28  ;;  %v3685_v6 = vpop.f32.mrb[114].mxu0  ;;  %v8323_v18 = vmax.f32 %v7441_v62, %v7444_v23  ;;  %v8325_v62 = vmax.f32 %v7457_v22, %v7460_v33  ;;  %v8328_v33 = vmax.f32 %v7483_v30, %v7486_v43 }
 0x3a0   : > { %v3792_v50 = vmax.f32 %v8320_v21, %v4838_v53  ;;  %v4840_v14 = vadd.f32 %v3685_v6, %v7677_v48  ;;  %v3687_v1 = vpop.f32.mrb[115].mxu0 }
 0x3a1   : > { %v3793_v37 = vmax.f32 %v8321_v55, %v4839_v5  ;;  %v4841_v57 = vadd.f32 %v3687_v1, %v7682_v28 }
 0x3a2   : > { %v3794_v25 = vmax.f32 %v8322_v56, %v4840_v14 }
 0x3a3   : > { %v3795_v58 = vmax.f32 %v8323_v18, %v4841_v57 }
 0x3a4   : > { %v3824_v36 = vpack.c.bf16 %v3794_v25, %v3792_v50  ;;  %v8327_v50 = vmax.f32 %v7473_v9, %v7476_v19  ;;  %v8329_v9 = vmax.f32 %v7489_v44, %v7492_v32  ;;  %v8332_v32 = vmax.f32 %v7515_v4, %v7518_v60 }
 0x3a5   : > { %v3691_v2 = vpop.f32.mrb[116].mxu0  ;;  %v3825_v12 = vpack.c.bf16 %v3795_v58, %v3793_v37  ;;  %v8326_v58 = vmax.f32 %v7465_v7, %v7468_v61 }
 0x3a6   : > { %v4842_v6 = vadd.f32 %v3691_v2, %v7677_v48  ;;  %v3693_v21 = vpop.f32.mrb[117].mxu0  ;;  %v8330_v2 = vmax.f32 %v7497_v3, %v7500_v47 }
 0x3a7   : > { %v4843_v53 = vadd.f32 %v3693_v21, %v7682_v28  ;;  %v3695_v29 = vpop.f32.mrb[118].mxu0  ;;  %4007 = vmatprep.mubr.bf16.mxu1 %v3825_v12 }
 0x3a8   : > { %v3796_v5 = vmax.f32 %v8324_v17, %v4842_v6  ;;  %v4844_v54 = vadd.f32 %v3695_v29, %v7677_v48  ;;  %v3697_v34 = vpop.f32.mrb[119].mxu0  ;;  %4008 = vmatmul.mubr.bf16.vlgmr.msra.gmra.mrb[144].mxu1 %v3824_v36  ;;  %v8331_v6 = vmax.f32 %v7505_v39, %v7508_v52  ;;  %v8333_v39 = vmax.f32 %v7521_v42, %v7524_v46 }
 0x3a9   : > { %v3797_v23 = vmax.f32 %v8325_v62, %v4843_v53  ;;  %v4845_v14 = vadd.f32 %v3697_v34, %v7682_v28  ;;  %v8334_v62 = vmax.f32 %v7529_v49, %v7532_v15  ;;  %v8336_v46 = vmax.f32 %v7547_v31, %v7550_v0 }
 0x3aa   : > { %v3798_v37 = vmax.f32 %v8326_v58, %v4844_v54 }
 0x3ab   : > { %v3799_v1 = vmax.f32 %v8327_v50, %v4845_v14  ;;  %v8335_v14 = vmax.f32 %v7537_v8, %v7540_v20  ;;  %v8337_v8 = vmax.f32 %v7553_v40, %v7556_v24  ;;  %v8340_v24 = vmax.f32 %v7579_v27, %v7582_v13 }
 0x3ac   : > { %v3826_v26 = vpack.c.bf16 %v3798_v37, %v3796_v5 }
 0x3ad   : > { %v3701_v51 = vpop.f32.mrb[120].mxu0  ;;  %v3827_v55 = vpack.c.bf16 %v3799_v1, %v3797_v23 }
 0x3ae   : > { %v4846_v57 = vadd.f32 %v3701_v51, %v7677_v48  ;;  %v3703_v36 = vpop.f32.mrb[121].mxu0 }
 0x3af   : > { %v4847_v56 = vadd.f32 %v3703_v36, %v7682_v28  ;;  %v3705_v22 = vpop.f32.mrb[122].mxu0  ;;  %4015 = vmatprep.mubr.bf16.mxu1 %v3827_v55 }
 0x3b0   : > { %v3800_v25 = vmax.f32 %v8328_v33, %v4846_v57  ;;  %v4848_v7 = vadd.f32 %v3705_v22, %v7677_v48  ;;  %v3707_v61 = vpop.f32.mrb[123].mxu0  ;;  %4016 = vmatmul.mubr.bf16.gmra.mrb[148].mxu1 %v3826_v26  ;;  %v8338_v57 = vmax.f32 %v7561_v59, %v7564_v11 }
 0x3b1   : > { %v3801_v19 = vmax.f32 %v8329_v9, %v4847_v56  ;;  %v4849_v18 = vadd.f32 %v3707_v61, %v7682_v28  ;;  %v8339_v56 = vmax.f32 %v7569_v10, %v7572_v16  ;;  %v8341_v10 = vmax.f32 %v7585_v45, %v7588_v35  ;;  %v8348_v35 = vld [vmem:[#allocation56_spill] sm:$0xff] }
 0x3b2   : > { %v3802_v12 = vmax.f32 %v8330_v2, %v4848_v7  ;;  %v8343_v2 = vld [vmem:[#allocation57_spill] sm:$0xff] }
 0x3b3   : > { %v3803_v21 = vmax.f32 %v8331_v6, %v4849_v18  ;;  %v8342_v18 = vld [vmem:[#allocation54_spill] sm:$0xff] }
 0x3b4   : > { %v3828_v30 = vpack.c.bf16 %v3802_v12, %v3800_v25  ;;  %v8344_v12 = vmax.f32 %v8342_v18, %v8343_v2 }
 0x3b5   : > { %v3711_v43 = vpop.f32.mrb[124].mxu0  ;;  %v3829_v53 = vpack.c.bf16 %v3803_v21, %v3801_v19  ;;  %v8345_v21 = vld [vmem:[#allocation60_spill] sm:$0xff] }
 0x3b6   : > { %v4850_v29 = vadd.f32 %v3711_v43, %v7677_v48  ;;  %v3713_v17 = vpop.f32.mrb[125].mxu0 }
 0x3b7   : > { %v4851_v5 = vadd.f32 %v3713_v17, %v7682_v28  ;;  %v3715_v44 = vpop.f32.mrb[126].mxu0  ;;  %4023 = vmatprep.mubr.bf16.mxu1 %v3829_v53 }
 0x3b8   : > { %v3804_v54 = vmax.f32 %v8332_v32, %v4850_v29  ;;  %v4852_v3 = vadd.f32 %v3715_v44, %v7677_v48  ;;  %v3717_v47 = vpop.f32.mrb[127].mxu0  ;;  %4024 = vmatmul.mubr.bf16.gmra.mrb[152].mxu1 %v3828_v30  ;;  %v8346_v30 = vld [vmem:[#allocation55_spill] sm:$0xff]  ;;  %v8349_v32 = vld [vmem:[#allocation58_spill] sm:$0xff] }
 0x3b9   : > { %v3805_v52 = vmax.f32 %v8333_v39, %v4851_v5  ;;  %v4853_v34 = vadd.f32 %v3717_v47, %v7682_v28  ;;  %v8347_v43 = vmax.f32 %v8345_v21, %v8346_v30 }
 0x3ba   : > { %v3806_v23 = vmax.f32 %v8334_v62, %v4852_v3 }
 0x3bb   : > { %v3807_v58 = vmax.f32 %v8335_v14, %v4853_v34  ;;  %v8353_v14 = vld [vmem:[#allocation61_spill] sm:$0xff] }
 0x3bc   : > { %v3830_v4 = vpack.c.bf16 %v3806_v23, %v3804_v54  ;;  %v8350_v54 = vmax.f32 %v8348_v35, %v8349_v32 }
 0x3bd   : > { %v3721_v60 = vpop.f32.mrb[128].mxu0  ;;  %v3831_v37 = vpack.c.bf16 %v3807_v58, %v3805_v52  ;;  %v8351_v52 = vld [vmem:[#allocation59_spill] sm:$0xff]  ;;  %v8354_v58 = vld [vmem:[#allocation62_spill] sm:$0xff] }
 0x3be   : > { %v4854_v50 = vadd.f32 %v3721_v60, %v7677_v48  ;;  %v3723_v1 = vpop.f32.mrb[129].mxu0  ;;  %v8352_v34 = vmax.f32 %v7617_v38, %v8351_v52 }
 0x3bf   : > { %v4855_v26 = vadd.f32 %v3723_v1, %v7682_v28  ;;  %v3725_v42 = vpop.f32.mrb[130].mxu0  ;;  %4031 = vmatprep.mubr.bf16.mxu1 %v3831_v37  ;;  %v8356_v37 = vld [vmem:[#allocation63_spill] sm:$0xff] }
 0x3c0   : > { %v3808_v51 = vmax.f32 %v8336_v46, %v4854_v50  ;;  %v4856_v49 = vadd.f32 %v3725_v42, %v7677_v48  ;;  %v3727_v15 = vpop.f32.mrb[131].mxu0  ;;  %4032 = vmatmul.mubr.bf16.gmra.mrb[156].mxu1 %v3830_v4  ;;  %v8355_v4 = vmax.f32 %v8353_v14, %v8354_v58  ;;  %v8357_v50 = vld [vmem:[#allocation64_spill] sm:$0xff] }
 0x3c1   : > { %v3809_v20 = vmax.f32 %v8337_v8, %v4855_v26  ;;  %v4857_v55 = vadd.f32 %v3727_v15, %v7682_v28  ;;  %v8358_v1 = vmax.f32 %v8356_v37, %v8357_v50 }
 0x3c2   : > { %v3810_v36 = vmax.f32 %v8338_v57, %v4856_v49 }
 0x3c3   : > { %v3811_v22 = vmax.f32 %v8339_v56, %v4857_v55 }
 0x3c4   : > { %v3832_v31 = vpack.c.bf16 %v3810_v36, %v3808_v51 }
 0x3c5   : > { %v3731_v0 = vpop.f32.mrb[132].mxu0  ;;  %v3833_v33 = vpack.c.bf16 %v3811_v22, %v3809_v20  ;;  %v8359_v20 = vld [vmem:[#allocation66_spill] sm:$0xff]  ;;  %v8361_v22 = vld [vmem:[#allocation69_spill] sm:$0xff] }
 0x3c6   : > { %v4858_v25 = vadd.f32 %v3731_v0, %v7677_v48  ;;  %v3733_v7 = vpop.f32.mrb[133].mxu0  ;;  %v8360_v55 = vmax.f32 %v7643_v41, %v8359_v20 }
 0x3c7   : > { %v4859_v61 = vadd.f32 %v3733_v7, %v7682_v28  ;;  %v3735_v40 = vpop.f32.mrb[134].mxu0  ;;  %4039 = vmatprep.mubr.bf16.mxu1 %v3833_v33  ;;  %v8364_v7 = vld [vmem:[#allocation68_spill] sm:$0xff] }
 0x3c8   : > { %v3812_v9 = vmax.f32 %v8340_v24, %v4858_v25  ;;  %v4860_v59 = vadd.f32 %v3735_v40, %v7677_v48  ;;  %v3737_v11 = vpop.f32.mrb[135].mxu0  ;;  %4040 = vmatmul.mubr.bf16.gmra.mrb[160].mxu1 %v3832_v31  ;;  %v8362_v31 = vmax.f32 %v7649_v63, %v8361_v22  ;;  %v8363_v25 = vld [vmem:[#allocation72_spill] sm:$0xff]  ;;  %v8366_v24 = vld [vmem:[#allocation70_spill] sm:$0xff] }
 0x3c9   : > { %v3813_v16 = vmax.f32 %v8341_v10, %v4859_v61  ;;  %v4861_v19 = vadd.f32 %v3737_v11, %v7682_v28  ;;  %v8365_v61 = vmax.f32 %v8363_v25, %v8364_v7  ;;  %v7815_v63 = vld [vmem:[%s7909_s6] ss:$0 sm:$0xff] }
 0x3ca   : > { %v3814_v6 = vmax.f32 %v8344_v12, %v4860_v59 }
 0x3cb   : > { %v3815_v53 = vmax.f32 %v8347_v43, %v4861_v19 }
 0x3cc   : > { %v3834_v13 = vpack.c.bf16 %v3814_v6, %v3812_v9  ;;  %v8367_v9 = vld [vmem:[#allocation71_spill] sm:$0xff] }
 0x3cd   : > { %v3741_v27 = vpop.f32.mrb[136].mxu0  ;;  %v3835_v29 = vpack.c.bf16 %v3815_v53, %v3813_v16  ;;  %v8368_v59 = vmax.f32 %v8366_v24, %v8367_v9 }
 0x3ce   : > { %v4862_v17 = vadd.f32 %v3741_v27, %v7677_v48  ;;  %v3743_v5 = vpop.f32.mrb[137].mxu0 }
 0x3cf   : > { %v4863_v44 = vadd.f32 %v3743_v5, %v7682_v28  ;;  %v3745_v45 = vpop.f32.mrb[138].mxu0  ;;  %4047 = vmatprep.mubr.bf16.mxu1 %v3835_v29 }
 0x3d0   : > { %v3816_v3 = vmax.f32 %v8350_v54, %v4862_v17  ;;  %v4864_v47 = vadd.f32 %v3745_v45, %v7677_v48  ;;  %v3747_v39 = vpop.f32.mrb[139].mxu0  ;;  %4048 = vmatmul.mubr.bf16.gmra.mrb[164].mxu1 %v3834_v13 }
 0x3d1   : > { %v3817_v62 = vmax.f32 %v8352_v34, %v4863_v44  ;;  %v4865_v23 = vadd.f32 %v3747_v39, %v7682_v28 }
 0x3d2   : > { %v3818_v60 = vmax.f32 %v8355_v4, %v4864_v47 }
 0x3d3   : > { %v3819_v26 = vmax.f32 %v8358_v1, %v4865_v23 }
 0x3d4   : > { %v3836_v42 = vpack.c.bf16 %v3818_v60, %v3816_v3 }
 0x3d5   : > { %v3751_v46 = vpop.f32.mrb[140].mxu0  ;;  %v3837_v51 = vpack.c.bf16 %v3819_v26, %v3817_v62 }
 0x3d6   : > { %v4866_v49 = vadd.f32 %v3751_v46, %v7677_v48  ;;  %v3753_v15 = vpop.f32.mrb[141].mxu0 }
 0x3d7   : > { %v4867_v8 = vadd.f32 %v3753_v15, %v7682_v28  ;;  %v3755_v38 = vpop.f32.mrb[142].mxu0  ;;  %4055 = vmatprep.mubr.bf16.mxu1 %v3837_v51 }
 0x3d8   : > { %v3820_v57 = vmax.f32 %v8360_v55, %v4866_v49  ;;  %v4868_v36 = vadd.f32 %v3755_v38, %v7677_v48  ;;  %v3757_v56 = vpop.f32.mrb[143].mxu0  ;;  %4056 = vmatmul.mubr.bf16.gmra.mrb[168].mxu1 %v3836_v42 }
 0x3d9   : > { %v3821_v0 = vmax.f32 %v8362_v31, %v4867_v8  ;;  %v4869_v33 = vadd.f32 %v3757_v56, %v7682_v28 }
 0x3da   : > { %v3822_v40 = vmax.f32 %v8365_v61, %v4868_v36 }
 0x3db   : > { %v3823_v11 = vmax.f32 %v8368_v59, %v4869_v33 }
 0x3dc   : > { %v3838_v41 = vpack.c.bf16 %v3822_v40, %v3820_v57 }
 0x3dd   : > { %v3839_v10 = vpack.c.bf16 %v3823_v11, %v3821_v0 }
 0x3df   : > { %4063 = vmatprep.mubr.bf16.mxu1 %v3839_v10 }
 0x3e0   : > { %4064 = vmatmul.mubr.bf16.gmra.mrb[172].mxu1 %v3838_v41 }
 0x47b   : > { %v4710_v48 = vpop.f32.mrb[144].mxu1 }
 0x47c   : > { %v4711_v16 = vpop.f32.mrb[145].mxu1 }
 0x47d   : > { %v4712_v28 = vadd.f32 %v4711_v16, %v4710_v48  ;;  %v4713_v19 = vpop.f32.mrb[146].mxu1 }
 0x47e   : > { %v4714_v18 = vpop.f32.mrb[147].mxu1 }
 0x47f   : > { %v4715_v2 = vadd.f32 %v4714_v18, %v4713_v19  ;;  %v4010_v12 = vadd.f32 %v4712_v28, %v7815_v63 }
 0x481   : > { %4072 = vmax.xlane.f32.xlu0 %v4010_v12  ;;  %v4013_v21 = vadd.f32 %v4715_v2, %v7815_v63 }
 0x483   : > { %v4716_v6 = vpop.f32.mrb[148].mxu1 }
 0x484   : > { %v4717_v30 = vpop.f32.mrb[149].mxu1 }
 0x485   : > { %v4718_v43 = vadd.f32 %v4717_v30, %v4716_v6  ;;  %v4719_v53 = vpop.f32.mrb[150].mxu1  ;;  %4074 = vmax.xlane.f32.xlu0 %v4013_v21 }
 0x486   : > { %v4720_v13 = vpop.f32.mrb[151].mxu1 }
 0x487   : > { %v4721_v27 = vadd.f32 %v4720_v13, %v4719_v53  ;;  %v4018_v29 = vadd.f32 %v4718_v43, %v7815_v63 }
 0x489   : > { %4076 = vmax.xlane.f32.xlu1 %v4018_v29  ;;  %v4021_v5 = vadd.f32 %v4721_v27, %v7815_v63 }
 0x48b   : > { %v4722_v17 = vpop.f32.mrb[152].mxu1 }
 0x48c   : > { %v4723_v44 = vpop.f32.mrb[153].mxu1 }
 0x48d   : > { %v4724_v45 = vadd.f32 %v4723_v44, %v4722_v17  ;;  %v4725_v35 = vpop.f32.mrb[154].mxu1  ;;  %4078 = vmax.xlane.f32.xlu1 %v4021_v5 }
 0x48e   : > { %v4726_v32 = vpop.f32.mrb[155].mxu1 }
 0x48f   : > { %v4727_v54 = vadd.f32 %v4726_v32, %v4725_v35  ;;  %v4026_v3 = vadd.f32 %v4724_v45, %v7815_v63 }
 0x491   : > { %4080 = vmax.xlane.f32.xlu0 %v4026_v3  ;;  %v4029_v47 = vadd.f32 %v4727_v54, %v7815_v63 }
 0x493   : > { %v4728_v39 = vpop.f32.mrb[156].mxu1  ;;  %4082 = vmax.xlane.f32.xlu1 %v4029_v47 }
 0x494   : > { %v4729_v52 = vpop.f32.mrb[157].mxu1 }
 0x495   : > { %v4730_v34 = vadd.f32 %v4729_v52, %v4728_v39  ;;  %v4731_v62 = vpop.f32.mrb[158].mxu1 }
 0x496   : > { %v4732_v23 = vpop.f32.mrb[159].mxu1 }
 0x497   : > { %v4733_v14 = vadd.f32 %v4732_v23, %v4731_v62  ;;  %v4034_v58 = vadd.f32 %v4730_v34, %v7815_v63 }
 0x499   : > { %4084 = vmax.xlane.f32.xlu0 %v4034_v58  ;;  %v4037_v4 = vadd.f32 %v4733_v14, %v7815_v63 }
 0x49b   : > { %v4734_v60 = vpop.f32.mrb[160].mxu1  ;;  %4086 = vmax.xlane.f32.xlu1 %v4037_v4 }
 0x49c   : > { %v4735_v37 = vpop.f32.mrb[161].mxu1 }
 0x49d   : > { %v4736_v50 = vadd.f32 %v4735_v37, %v4734_v60  ;;  %v4737_v1 = vpop.f32.mrb[162].mxu1 }
 0x49e   : > { %v4738_v26 = vpop.f32.mrb[163].mxu1 }
 0x49f   : > { %v4739_v42 = vadd.f32 %v4738_v26, %v4737_v1  ;;  %v4042_v46 = vadd.f32 %v4736_v50, %v7815_v63 }
 0x4a1   : > { %4088 = vmax.xlane.f32.xlu0 %v4042_v46  ;;  %v4045_v51 = vadd.f32 %v4739_v42, %v7815_v63 }
 0x4a3   : > { %v4740_v49 = vpop.f32.mrb[164].mxu1  ;;  %4090 = vmax.xlane.f32.xlu1 %v4045_v51 }
 0x4a4   : > { %v4741_v15 = vpop.f32.mrb[165].mxu1 }
 0x4a5   : > { %v4742_v8 = vadd.f32 %v4741_v15, %v4740_v49  ;;  %v4743_v38 = vpop.f32.mrb[166].mxu1 }
 0x4a6   : > { %v4744_v20 = vpop.f32.mrb[167].mxu1 }
 0x4a7   : > { %v4745_v55 = vadd.f32 %v4744_v20, %v4743_v38  ;;  %v4050_v57 = vadd.f32 %v4742_v8, %v7815_v63 }
 0x4a9   : > { %4092 = vmax.xlane.f32.xlu0 %v4050_v57  ;;  %v4053_v36 = vadd.f32 %v4745_v55, %v7815_v63 }
 0x4ab   : > { %v4746_v56 = vpop.f32.mrb[168].mxu1  ;;  %4094 = vmax.xlane.f32.xlu1 %v4053_v36 }
 0x4ac   : > { %v4747_v22 = vpop.f32.mrb[169].mxu1 }
 0x4ad   : > { %v4748_v31 = vadd.f32 %v4747_v22, %v4746_v56  ;;  %v4749_v0 = vpop.f32.mrb[170].mxu1 }
 0x4ae   : > { %v4750_v33 = vpop.f32.mrb[171].mxu1 }
 0x4af   : > { %v4751_v25 = vadd.f32 %v4750_v33, %v4749_v0  ;;  %v4058_v7 = vadd.f32 %v4748_v31, %v7815_v63 }
 0x4b1   : > { %4096 = vmax.xlane.f32.xlu0 %v4058_v7  ;;  %v4061_v61 = vadd.f32 %v4751_v25, %v7815_v63 }
 0x4b3   : > { %v4752_v40 = vpop.f32.mrb[172].mxu1  ;;  %4098 = vmax.xlane.f32.xlu1 %v4061_v61 }
 0x4b4   : > { %v4753_v24 = vpop.f32.mrb[173].mxu1 }
 0x4b5   : > { %v4754_v9 = vadd.f32 %v4753_v24, %v4752_v40  ;;  %v4755_v59 = vpop.f32.mrb[174].mxu1 }
 0x4b6   : > { %v4756_v11 = vpop.f32.mrb[175].mxu1 }
 0x4b7   : > { %v4757_v41 = vadd.f32 %v4756_v11, %v4755_v59  ;;  %v4066_v10 = vadd.f32 %v4754_v9, %v7815_v63 }
 0x4b9   : > { %4100 = vmax.xlane.f32.xlu0 %v4066_v10  ;;  %v4069_v48 = vadd.f32 %v4757_v41, %v7815_v63 }
 0x4bb   : > { %4102 = vmax.xlane.f32.xlu1 %v4069_v48 }
 0x50e   : > { %v4073_v16 = vpop.xlane.xlu0 %4072 }
 0x50f   : > { %v4671_v28 = vmul.f32 -1.442695, %v4073_v16 }
 0x511   : > { %5518 = vpow2.f32 %v4671_v28 }
 0x512   : > { %v4075_v19 = vpop.xlane.xlu0 %4074 }
 0x513   : > { %v4672_v18 = vmul.f32 -1.442695, %v4075_v19 }
 0x515   : > { %5520 = vpow2.f32 %v4672_v18 }
 0x516   : > { %v4077_v2 = vpop.xlane.xlu1 %4076 }
 0x517   : > { %v4673_v12 = vmul.f32 -1.442695, %v4077_v2 }
 0x519   : > { %5522 = vpow2.f32 %v4673_v12 }
 0x51a   : > { %v4079_v6 = vpop.xlane.xlu1 %4078 }
 0x51b   : > { %v5519_v21 = vpop.eup %5518  ;;  %v4674_v30 = vmul.f32 -1.442695, %v4079_v6 }
 0x51c   : > { %v4152_v43 = vadd.f32 1.0, %v5519_v21 }
 0x51d   : > { %5524 = vpow2.f32 %v4674_v30 }
 0x51e   : > { %5526 = vrcp.f32 %v4152_v43  ;;  %v4081_v53 = vpop.xlane.xlu0 %4080 }
 0x51f   : > { %v5521_v13 = vpop.eup %5520  ;;  %v4675_v63 = vmul.f32 -1.442695, %v4081_v53 }
 0x520   : > { %v4153_v27 = vadd.f32 1.0, %v5521_v13  ;;  %v4083_v29 = vpop.xlane.xlu1 %4082 }
 0x521   : > { %5528 = vpow2.f32 %v4675_v63  ;;  %v4676_v17 = vmul.f32 -1.442695, %v4083_v29 }
 0x522   : > { %5530 = vrcp.f32 %v4153_v27 }
 0x523   : > { %v5523_v5 = vpop.eup %5522  ;;  %5532 = vpow2.f32 %v4676_v17 }
 0x524   : > { %v4154_v44 = vadd.f32 1.0, %v5523_v5 }
 0x526   : > { %5534 = vrcp.f32 %v4154_v44  ;;  %v4085_v45 = vpop.xlane.xlu0 %4084 }
 0x527   : > { %v5525_v35 = vpop.eup %5524  ;;  %v4677_v32 = vmul.f32 -1.442695, %v4085_v45 }
 0x528   : > { %v5527_v54 = vpop.eup %5526  ;;  %v4155_v3 = vadd.f32 1.0, %v5525_v35  ;;  %v4087_v47 = vpop.xlane.xlu1 %4086 }
 0x529   : > { %4200 = vst [vmem:[%s7834_s14] sm:$0xff] %v5527_v54  ;;  %5536 = vpow2.f32 %v4677_v32  ;;  %v4678_v39 = vmul.f32 -1.442695, %v4087_v47 }
 0x52a   : > { %5538 = vrcp.f32 %v4155_v3 }
 0x52b   : > { %v5529_v52 = vpop.eup %5528  ;;  %5540 = vpow2.f32 %v4678_v39 }
 0x52c   : > { %v5531_v34 = vpop.eup %5530  ;;  %v4156_v62 = vadd.f32 1.0, %v5529_v52 }
 0x52d   : > { %v5533_v23 = vpop.eup %5532  ;;  %4201 = vst [vmem:[%s7834_s14 + $0x8] sm:$0xff] %v5531_v34 }
 0x52e   : > { %5542 = vrcp.f32 %v4156_v62  ;;  %v4157_v14 = vadd.f32 1.0, %v5533_v23  ;;  %v4089_v58 = vpop.xlane.xlu0 %4088 }
 0x52f   : > { %v4679_v4 = vmul.f32 -1.442695, %v4089_v58 }
 0x530   : > { %v5535_v60 = vpop.eup %5534  ;;  %5544 = vrcp.f32 %v4157_v14  ;;  %v4091_v37 = vpop.xlane.xlu1 %4090 }
 0x531   : > { %4202 = vst [vmem:[%s7834_s14 + $0x10] sm:$0xff] %v5535_v60  ;;  %5546 = vpow2.f32 %v4679_v4  ;;  %v4680_v50 = vmul.f32 -1.442695, %v4091_v37 }
 0x533   : > { %v5537_v1 = vpop.eup %5536  ;;  %5548 = vpow2.f32 %v4680_v50 }
 0x534   : > { %v5539_v26 = vpop.eup %5538  ;;  %v4158_v42 = vadd.f32 1.0, %v5537_v1 }
 0x535   : > { %v5541_v46 = vpop.eup %5540  ;;  %4203 = vst [vmem:[%s7834_s14 + $0x18] sm:$0xff] %v5539_v26 }
 0x536   : > { %5550 = vrcp.f32 %v4158_v42  ;;  %v4159_v51 = vadd.f32 1.0, %v5541_v46  ;;  %v4093_v49 = vpop.xlane.xlu0 %4092 }
 0x537   : > { %v4681_v15 = vmul.f32 -1.442695, %v4093_v49 }
 0x538   : > { %v5543_v8 = vpop.eup %5542  ;;  %5552 = vrcp.f32 %v4159_v51  ;;  %v4095_v38 = vpop.xlane.xlu1 %4094 }
 0x539   : > { %4204 = vst [vmem:[%s7834_s14 + $0x20] sm:$0xff] %v5543_v8  ;;  %5554 = vpow2.f32 %v4681_v15  ;;  %v4682_v20 = vmul.f32 -1.442695, %v4095_v38 }
 0x53a   : > { %v5545_v55 = vpop.eup %5544 }
 0x53b   : > { %v5547_v57 = vpop.eup %5546  ;;  %4205 = vst [vmem:[%s7834_s14 + $0x28] sm:$0xff] %v5545_v55  ;;  %5556 = vpow2.f32 %v4682_v20 }
 0x53c   : > { %v4160_v36 = vadd.f32 1.0, %v5547_v57 }
 0x53d   : > { %v5549_v56 = vpop.eup %5548 }
 0x53e   : > { %5558 = vrcp.f32 %v4160_v36  ;;  %v4161_v22 = vadd.f32 1.0, %v5549_v56  ;;  %v4097_v31 = vpop.xlane.xlu0 %4096 }
 0x53f   : > { %v4683_v0 = vmul.f32 -1.442695, %v4097_v31 }
 0x540   : > { %v5551_v33 = vpop.eup %5550  ;;  %5560 = vrcp.f32 %v4161_v22  ;;  %v4099_v25 = vpop.xlane.xlu1 %4098 }
 0x541   : > { %4206 = vst [vmem:[%s7834_s14 + $0x30] sm:$0xff] %v5551_v33  ;;  %5562 = vpow2.f32 %v4683_v0  ;;  %v4684_v7 = vmul.f32 -1.442695, %v4099_v25 }
 0x542   : > { %v5553_v61 = vpop.eup %5552 }
 0x543   : > { %v5555_v40 = vpop.eup %5554  ;;  %4207 = vst [vmem:[%s7834_s14 + $0x38] sm:$0xff] %v5553_v61  ;;  %5564 = vpow2.f32 %v4684_v7 }
 0x544   : > { %v4162_v24 = vadd.f32 1.0, %v5555_v40 }
 0x545   : > { %v5557_v9 = vpop.eup %5556 }
 0x546   : > { %5566 = vrcp.f32 %v4162_v24  ;;  %v4163_v59 = vadd.f32 1.0, %v5557_v9  ;;  %v4101_v11 = vpop.xlane.xlu0 %4100 }
 0x547   : > { %v4685_v41 = vmul.f32 -1.442695, %v4101_v11 }
 0x548   : > { %v5559_v10 = vpop.eup %5558  ;;  %5568 = vrcp.f32 %v4163_v59  ;;  %v4103_v48 = vpop.xlane.xlu1 %4102 }
 0x549   : > { %4208 = vst [vmem:[%s7834_s14 + $0x40] sm:$0xff] %v5559_v10  ;;  %5570 = vpow2.f32 %v4685_v41  ;;  %v4686_v16 = vmul.f32 -1.442695, %v4103_v48 }
 0x54a   : > { %v5561_v28 = vpop.eup %5560 }
 0x54b   : > { %v5563_v19 = vpop.eup %5562  ;;  %4209 = vst [vmem:[%s7834_s14 + $0x48] sm:$0xff] %v5561_v28  ;;  %5572 = vpow2.f32 %v4686_v16 }
 0x54c   : > { %v4164_v18 = vadd.f32 1.0, %v5563_v19 }
 0x54d   : > { %v5565_v2 = vpop.eup %5564 }
 0x54e   : > { %5574 = vrcp.f32 %v4164_v18  ;;  %v4165_v12 = vadd.f32 1.0, %v5565_v2 }
 0x550   : > { %v5567_v6 = vpop.eup %5566  ;;  %5576 = vrcp.f32 %v4165_v12 }
 0x551   : > { %4210 = vst [vmem:[%s7834_s14 + $0x50] sm:$0xff] %v5567_v6 }
 0x552   : > { %v5569_v21 = vpop.eup %5568 }
 0x553   : > { %v5571_v30 = vpop.eup %5570  ;;  %4211 = vst [vmem:[%s7834_s14 + $0x58] sm:$0xff] %v5569_v21 }
 0x554   : > { %v4166_v43 = vadd.f32 1.0, %v5571_v30 }
 0x555   : > { %v5573_v53 = vpop.eup %5572 }
 0x556   : > { %5578 = vrcp.f32 %v4166_v43  ;;  %v4167_v13 = vadd.f32 1.0, %v5573_v53 }
 0x558   : > { %v5575_v63 = vpop.eup %5574  ;;  %5580 = vrcp.f32 %v4167_v13 }
 0x559   : > { %4212 = vst [vmem:[%s7834_s14 + $0x60] sm:$0xff] %v5575_v63 }
 0x55a   : > { %v5577_v27 = vpop.eup %5576 }
 0x55b   : > { %4213 = vst [vmem:[%s7834_s14 + $0x68] sm:$0xff] %v5577_v27 }
 0x560   : > { %v5579_v29 = vpop.eup %5578 }
 0x561   : > { %4214 = vst [vmem:[%s7834_s14 + $0x70] sm:$0xff] %v5579_v29 }
 0x562   : > { %v5581_v17 = vpop.eup %5580 }
 0x563   : > { %4215 = vst [vmem:[%s7834_s14 + $0x78] sm:$0xff] %v5581_v17 }
 0x564   : > { %5745 = shalt.err (!%p5742_p13)
}
 0x565   : > { %s5746_s9 = scalar_lea.hbm %s7855_s23, 2048  ;;  %s5750_s11 = scalar_lea.hbm %s7910_s7, 4096 }
 0x566   : > { %p5747_p9 = scmp.ne.s32.totalorder %s7855_s23, %s5746_s9  ;;  %p5751_p6 = scmp.lt.u32.totalorder %s7855_s23, %s7910_s7 }
 0x567   : > { %p5752_p10 = scmp.lt.u32.totalorder %s5750_s11, %s5746_s9  ;;  %p5754_p4 = scmp.lt.u32.totalorder %s5746_s9, %s7855_s23 }
 0x568   : > { %p5748_p0 = pnand %p5747_p9, %p6032_p8 }
 0x569   : > { %p5753_p3 = por %p5752_p10, %p5751_p6 }
 0x56a   : > { %p5749_p11 = pneg %p5748_p0 }
 0x56b   : > { %p5755_p5 = por %p5754_p4, %p5753_p3 }
 0x56d   : > { %p5756_p7 = pnand %p5755_p5, %p5749_p11 }
 0x56f   : > { %5759 = shalt.err (!%p5756_p7)
}
 0x570   : > { %s5821_s21 = smov 128   ;;  %s5822_s19 = smov 8  }
 0x571   : > { %4984 = dma.vmem_to_hbm [thread:$0]  (%p6032_p8), %s7857_s10, 2048, %s7855_s23, %s4217_s22, %s5821_s21, %s5821_s21, %s5822_s19  }
 0x572 PF: > { %s4245_s17 = sand.u32 1, %s5794_s24   ;;  %p8369_p12 = scmp.ne.s32.totalorder %s8021_s8, 0 }
 0x573   : > { %p8370_p2 = scmp.ge.s32.totalorder %s5806_s27, 2  ;;  %s4246_s28 = scalar_lea.sflag [#allocation4], %s4245_s17 }
 0x575   : > { %p5004_p1 = pnand %p8370_p2, %p8369_p12 }
 0x577   : > { %5789 = dma.done.wait (!%p5004_p1), %s4246_s28, 2048  }
 0x578   : > { %5791 = vsyncadd (!%p5004_p1), %s4246_s28, 4294965248  ;;  %p22_p13 = scmp.ge.s32.totalorder %s6019_s1, 4   ;;  %s8371_s24 = smov %s5798_s25 }
 0x579   : > { %s8372_s25 = smov %s5802_s26  ;;  %s8373_s26 = smov %s6028_s16 }
 0x57a   : > { %s8374_s27 = smov %s6019_s1  ;;  %24 = sbr.rel (!%p22_p13) target bundleno = 9 (0x9), region = 109 }
 0x581   :  { %4251 = vsyncpa [#allocation3], 1 }
 0x582   :  { %4253 = vsyncpa [#allocation3 + $0x1], 1 }
 0x583   :  { %4254 = vsyncpa [#allocation6], 1 }
 0x584   :  { %4255 = vsyncpa [#allocation9], 1 }
 0x585   :  { %4256 = vsyncpa [#allocation4], 1 }
 0x586   :  { %4258 = vsyncpa [#allocation4 + $0x1], 1 }

</bundles_post_ra>
